<compile_context>
chip_gen: v7x
topology: tpu7x:2x2x1
jax: 0.10.0
libtpu: 0.0.40
codegen_flags: <defaults>
</compile_context>

<pallas_src>
import jax
import jax.numpy as jnp
from jax import lax
from jax.experimental import pallas as pl
from jax.experimental.pallas import tpu as pltpu

# ---------------- config (small, deterministic) ----------------
PADDING_IDX = 1          # must not be 0 (module assertion)
VOCAB = 32
NUM_LAYERS = 2
EMBED_DIM = 256          # multiple of 128 -> lane-dense activations & output store
FFN_DIM = 512
NUM_HEADS = 2
HEAD_DIM = EMBED_DIM // NUM_HEADS   # 128: per-head slices are whole (8,128) lane tiles
MAX_SEQ_LEN = 16
NUM_SEGMENTS = 2
NUM_BOTTLENECK = 0       # fuse_bottleneck=None path
B, T = 2, 8
N_TOK = B * T
G_HEADS = B * NUM_HEADS
LN_EPS = 1e-5
NEG_INF = -1e9           # finite "-inf": avoids NaN if a row's keys are all padding


# ---------------- kernel helpers ----------------
def _layer_norm(x, gamma, beta):
    mu = jnp.mean(x, axis=-1, keepdims=True)
    xc = x - mu
    var = jnp.mean(xc * xc, axis=-1, keepdims=True)
    return xc * lax.rsqrt(var + LN_EPS) * gamma + beta


# ---------------- fused forward kernel (single program, whole batch) ----------------
def _fused_forward_kernel(x_ref, bias_ref, wqkv_ref, wo_ref, w1_ref, w2_ref,
                          vecs_ref, o_ref):
    """Pre-combined embeddings -> NUM_LAYERS post-norm encoder layers (whole batch)."""
    D, H, hd = EMBED_DIM, NUM_HEADS, HEAD_DIM
    G = G_HEADS

    x = x_ref[...]                                   # (B*T, D) f32, keep-mask applied
    bias = bias_ref[...]                             # (G, 1, T) f32 additive key-pad bias

    def to_heads(m):                                 # (B*T, D) -> (G, T, hd), head-major
        # hd == 128: every slice is a whole lane tile, so this is tile copies +
        # a leading-dim reshape (no cross-lane shuffles).
        flat = jnp.concatenate(
            [m[b * T:(b + 1) * T, h * hd:(h + 1) * hd]
             for b in range(B) for h in range(H)], axis=0)       # (G*T, hd)
        return flat.reshape(G, T, hd)

    def from_heads(m):                               # (G, T, hd) -> (B*T, D)
        flat = m.reshape(G * T, hd)
        return jnp.concatenate(
            [jnp.concatenate([flat[(b * H + h) * T:(b * H + h + 1) * T]
                              for h in range(H)], axis=1)
             for b in range(B)], axis=0)

    # --- encoder layers (post-norm, relu FFN), statically unrolled ---
    for l in range(NUM_LAYERS):
        vec = vecs_ref[l]     # (6, D): [b_out, ln1_g, ln1_b, b_fc2, ln2_g, ln2_b]

        # Fused QKV projection: one (B*T, D) x (D, 3D) bf16 MXU push, f32 accum.
        # 1/sqrt(hd) is folded into the Q weights at init.
        # TODO(synk): real checkpoints: add the qkv bias here (q-part pre-scaled too).
        qkv = jnp.dot(x.astype(jnp.bfloat16), wqkv_ref[l],
                      preferred_element_type=jnp.float32)        # (B*T, 3D) f32

        q = to_heads(qkv[:, 0 * D:1 * D]).astype(jnp.bfloat16)   # (G, T, hd)
        k = to_heads(qkv[:, 1 * D:2 * D]).astype(jnp.bfloat16)
        v = to_heads(qkv[:, 2 * D:3 * D]).astype(jnp.bfloat16)

        # One batched matmul over ALL B*H heads (no per-head loop).
        s = jnp.einsum('gqd,gkd->gqk', q, k,
                       preferred_element_type=jnp.float32)       # (G, T, T) f32
        s = s + bias                                             # mask padded keys
        m = jnp.max(s, axis=-1, keepdims=True)
        p = jnp.exp(s - m)
        denom = jnp.sum(p, axis=-1, keepdims=True)
        p = p * pl.reciprocal(denom, approx=True)                # EUP path
        # TODO(synk): at production T, tile queries/keys with a flash-style running
        # max/sum instead of materializing the full (T, T) score matrix.
        ctx = jnp.einsum('gqk,gkd->gqd', p.astype(jnp.bfloat16), v,
                         preferred_element_type=jnp.float32)     # (G, T, hd)

        attn_out = jnp.dot(from_heads(ctx).astype(jnp.bfloat16), wo_ref[l],
                           preferred_element_type=jnp.float32) + vec[0:1]

        # residual + layer norm (f32)
        x = _layer_norm(x + attn_out, vec[1:2], vec[2:3])

        # feed forward (relu), bf16 operands / f32 accumulation
        h1 = jnp.dot(x.astype(jnp.bfloat16), w1_ref[l],
                     preferred_element_type=jnp.float32)
        h1 = jnp.maximum(h1, 0.0)
        h2 = jnp.dot(h1.astype(jnp.bfloat16), w2_ref[l],
                     preferred_element_type=jnp.float32) + vec[3:4]
        x = _layer_norm(x + h2, vec[4:5], vec[5:6])

    # D = 256 is a multiple of 128 -> unmasked, lane-dense vector stores.
    o_ref[...] = x


# ---------------- pallas_call wrapper ----------------
def fused_forward(x0, attn_bias, params):
    args = (x0, attn_bias, params['w_qkv'], params['w_o'],
            params['w_fc1'], params['w_fc2'], params['vecs'])
    # Single program: whole arrays resident in VMEM (~2.4 MiB total), no grid,
    # so nothing is needlessly double-buffered.
    # TODO(synk): at production sizes add a layer grid axis ("arbitrary") and tile T
    # so only one layer's weights + one (tq, tk) score tile live in VMEM (v7x 64 MiB/TC).
    in_specs = [pl.BlockSpec(memory_space=pltpu.MemorySpace.VMEM) for _ in args]
    return pl.pallas_call(
        _fused_forward_kernel,
        out_shape=jax.ShapeDtypeStruct((N_TOK, EMBED_DIM), jnp.float32),
        in_specs=in_specs,
        out_specs=pl.BlockSpec(memory_space=pltpu.MemorySpace.VMEM),
    )(*args)


# ---------------- parameters (deterministic, BERT-style init, packed slabs) ----------------
def _normal(key, shape, std=0.02):
    return (std * jax.random.normal(key, shape)).astype(jnp.float32)


def init_params(key):
    D, F, L = EMBED_DIM, FFN_DIM, NUM_LAYERS
    scale = float(HEAD_DIM) ** -0.5
    k_tok, k_pos, k_seg, k_layers = jax.random.split(key, 4)

    embed_tokens = _normal(k_tok, (VOCAB, D)).at[PADDING_IDX].set(0.0)
    # fairseq PositionalEmbedding (learned, offset by padding): table has
    # max_seq_len + num_bottleneck + padding_idx + 1 rows, padding row zeroed.
    num_pos = MAX_SEQ_LEN + NUM_BOTTLENECK + PADDING_IDX + 1
    embed_positions = _normal(k_pos, (num_pos, D)).at[PADDING_IDX].set(0.0)
    segment_embeddings = _normal(k_seg, (NUM_SEGMENTS, D))

    w_qkv, w_o, w_fc1, w_fc2, vecs = [], [], [], [], []
    for l in range(L):
        kl = jax.random.fold_in(k_layers, l)
        kq, kk, kv, ko, k1, k2 = jax.random.split(kl, 6)
        # weights stored as W.T (in, out); torch Linear computes x @ W.T + b
        wq = _normal(kq, (D, D)) * scale          # fold 1/sqrt(hd) into Q (q bias is zero)
        wk = _normal(kk, (D, D))
        wv = _normal(kv, (D, D))
        w_qkv.append(jnp.concatenate([wq, wk, wv], axis=1))       # (D, 3D)
        w_o.append(_normal(ko, (D, D)))                           # (D, D)
        w_fc1.append(_normal(k1, (D, F)))                         # (D, F)
        w_fc2.append(_normal(k2, (F, D)))                         # (F, D)
        # packed per-layer D-sized vectors: [b_out, ln1_g, ln1_b, b_fc2, ln2_g, ln2_b]
        vecs.append(jnp.stack([jnp.zeros((D,), jnp.float32),
                               jnp.ones((D,), jnp.float32),
                               jnp.zeros((D,), jnp.float32),
                               jnp.zeros((D,), jnp.float32),
                               jnp.ones((D,), jnp.float32),
                               jnp.zeros((D,), jnp.float32)]))

    return dict(
        embed_tokens=embed_tokens,
        embed_positions=embed_positions,
        segment_embeddings=segment_embeddings,
        # bf16 MXU operands; accumulation stays f32 inside the kernel.
        w_qkv=jnp.stack(w_qkv).astype(jnp.bfloat16),   # (L, D, 3D)
        w_o=jnp.stack(w_o).astype(jnp.bfloat16),       # (L, D, D)
        w_fc1=jnp.stack(w_fc1).astype(jnp.bfloat16),   # (L, D, F)
        w_fc2=jnp.stack(w_fc2).astype(jnp.bfloat16),   # (L, F, D)
        vecs=jnp.stack(vecs))                          # (L, 6, D) f32


# ---------------- forward (module semantics) ----------------
def forward(tokens, segment_labels, params):
    """tokens, segment_labels: (B, T) int32. Returns (inner_states list of (T,B,C), sentence_rep (B,C))."""
    # Embedding gathers + combine in plain JAX (no clean Pallas gather at this size);
    # passing ONE pre-summed activation tensor cuts kernel input DMA from 3x to 1x.
    tok_emb = params['embed_tokens'][tokens]                                  # (B,T,D)
    non_pad = (tokens != PADDING_IDX).astype(jnp.int32)
    positions = jnp.cumsum(non_pad, axis=1) * non_pad + PADDING_IDX           # make_positions
    pos_emb = params['embed_positions'][positions]                            # (B,T,D)
    seg_emb = params['segment_embeddings'][segment_labels]                    # (B,T,D)

    pad = (tokens == PADDING_IDX).astype(jnp.float32)                         # (B,T)
    keep = (1.0 - pad)[:, :, None]                                            # (B,T,1)
    # embed_scale=None, quant_noise=None, emb_layer_norm=None, dropout=identity (eval)
    x0 = ((tok_emb + pos_emb + seg_emb) * keep).reshape(N_TOK, EMBED_DIM)     # (B*T, D)

    # additive key-padding bias, replicated per head -> (B*H, 1, T); finite -1e9
    # instead of -inf so fully-padded rows stay NaN-free.
    attn_bias = jnp.broadcast_to(pad[:, None, None, :] * NEG_INF,
                                 (B, NUM_HEADS, 1, T)).reshape(G_HEADS, 1, T)

    # TODO(synk): layerdrop / fuse_bottleneck='token'/'attention' paths not exercised
    # (module defaults: layerdrop=0.0, fuse_bottleneck=None).
    x = fused_forward(x0, attn_bias, params)                                  # (B*T, D)

    x = x.reshape(B, T, EMBED_DIM).transpose(1, 0, 2)    # T x B x C
    sentence_rep = x[0, :, :]                            # B x C
    inner_states = [x]
    return inner_states, sentence_rep


# ---------------- main ----------------
if __name__ == "__main__":
    root = jax.random.PRNGKey(0)
    k_param, k_tok = jax.random.split(root)

    params = init_params(k_param)

    tokens = jax.random.randint(k_tok, (B, T), 2, VOCAB).astype(jnp.int32)
    tokens = tokens.at[0, -2:].set(PADDING_IDX)       # some padding to exercise the mask
    segment_labels = jnp.concatenate(
        [jnp.zeros((B, T // 2), jnp.int32), jnp.ones((B, T - T // 2), jnp.int32)], axis=1)

    inner_states, sentence_rep = forward(tokens, segment_labels, params)
    jax.block_until_ready(inner_states[0])
    jax.block_until_ready(sentence_rep)

    assert inner_states[0].shape == (T, B, EMBED_DIM)
    assert sentence_rep.shape == (B, EMBED_DIM)
    assert bool(jnp.all(jnp.isfinite(inner_states[0])))
    print("KERNEL_OK")
</pallas_src>

<mosaic_0001>
module attributes {stable_mosaic.version = 11 : i64} {
  func.func @_fused_forward_kernel(%arg0: memref<16x256xf32, #tpu.memory_space<vmem>>, %arg1: memref<4x1x8xf32, #tpu.memory_space<vmem>>, %arg2: memref<2x256x768xbf16, #tpu.memory_space<vmem>>, %arg3: memref<2x256x256xbf16, #tpu.memory_space<vmem>>, %arg4: memref<2x256x512xbf16, #tpu.memory_space<vmem>>, %arg5: memref<2x512x256xbf16, #tpu.memory_space<vmem>>, %arg6: memref<2x6x256xf32, #tpu.memory_space<vmem>>, %arg7: memref<16x256xf32, #tpu.memory_space<vmem>>) attributes {dimension_semantics = [], scalar_prefetch = 0 : i64, scratch_operands = 0 : i64, tpu.core_type = #tpu.core_type<tc>} {
    %c0 = arith.constant 0 : index
    %c0_0 = arith.constant 0 : index
    %0 = vector.load %arg0[%c0, %c0_0] : memref<16x256xf32, #tpu.memory_space<vmem>>, vector<16x256xf32>
    %c0_1 = arith.constant 0 : index
    %c0_2 = arith.constant 0 : index
    %c0_3 = arith.constant 0 : index
    %1 = vector.load %arg1[%c0_1, %c0_2, %c0_3] : memref<4x1x8xf32, #tpu.memory_space<vmem>>, vector<4x1x8xf32>
    %c0_4 = arith.constant 0 : index
    %c0_5 = arith.constant 0 : index
    %c0_6 = arith.constant 0 : index
    %2 = vector.load %arg6[%c0_4, %c0_5, %c0_6] : memref<2x6x256xf32, #tpu.memory_space<vmem>>, vector<1x6x256xf32>
    %3 = vector.shape_cast %2 : vector<1x6x256xf32> to vector<6x256xf32>
    %4 = arith.truncf %0 : vector<16x256xf32> to vector<16x256xbf16>
    %c0_7 = arith.constant 0 : index
    %c0_8 = arith.constant 0 : index
    %c0_9 = arith.constant 0 : index
    %5 = vector.load %arg2[%c0_7, %c0_8, %c0_9] : memref<2x256x768xbf16, #tpu.memory_space<vmem>>, vector<1x256x768xbf16>
    %6 = vector.shape_cast %5 : vector<1x256x768xbf16> to vector<256x768xbf16>
    %cst = arith.constant dense<0.000000e+00> : vector<16x768xf32>
    %7 = tpu.matmul %4, %6, %cst {dimension_numbers = #tpu.dot_dimension_numbers<[1], [0], [0], [1], [0, 0, 1, 1], [], []>} : vector<16x256xbf16>, vector<256x768xbf16>, vector<16x768xf32> -> vector<16x768xf32>
    %8 = vector.extract_strided_slice %7 {offsets = [0, 0], sizes = [16, 256], strides = [1, 1]} : vector<16x768xf32> to vector<16x256xf32>
    %9 = vector.extract_strided_slice %8 {offsets = [0, 0], sizes = [8, 128], strides = [1, 1]} : vector<16x256xf32> to vector<8x128xf32>
    %10 = vector.extract_strided_slice %8 {offsets = [0, 128], sizes = [8, 128], strides = [1, 1]} : vector<16x256xf32> to vector<8x128xf32>
    %11 = vector.extract_strided_slice %8 {offsets = [8, 0], sizes = [8, 128], strides = [1, 1]} : vector<16x256xf32> to vector<8x128xf32>
    %12 = vector.extract_strided_slice %8 {offsets = [8, 128], sizes = [8, 128], strides = [1, 1]} : vector<16x256xf32> to vector<8x128xf32>
    %13 = tpu.concatenate %9, %10, %11, %12 in 0 : vector<8x128xf32>, vector<8x128xf32>, vector<8x128xf32>, vector<8x128xf32> -> vector<32x128xf32>
    %14 = vector.shape_cast %13 : vector<32x128xf32> to vector<4x8x128xf32>
    %15 = arith.truncf %14 : vector<4x8x128xf32> to vector<4x8x128xbf16>
    %16 = vector.extract_strided_slice %7 {offsets = [0, 256], sizes = [16, 256], strides = [1, 1]} : vector<16x768xf32> to vector<16x256xf32>
    %17 = vector.extract_strided_slice %16 {offsets = [0, 0], sizes = [8, 128], strides = [1, 1]} : vector<16x256xf32> to vector<8x128xf32>
    %18 = vector.extract_strided_slice %16 {offsets = [0, 128], sizes = [8, 128], strides = [1, 1]} : vector<16x256xf32> to vector<8x128xf32>
    %19 = vector.extract_strided_slice %16 {offsets = [8, 0], sizes = [8, 128], strides = [1, 1]} : vector<16x256xf32> to vector<8x128xf32>
    %20 = vector.extract_strided_slice %16 {offsets = [8, 128], sizes = [8, 128], strides = [1, 1]} : vector<16x256xf32> to vector<8x128xf32>
    %21 = tpu.concatenate %17, %18, %19, %20 in 0 : vector<8x128xf32>, vector<8x128xf32>, vector<8x128xf32>, vector<8x128xf32> -> vector<32x128xf32>
    %22 = vector.shape_cast %21 : vector<32x128xf32> to vector<4x8x128xf32>
    %23 = arith.truncf %22 : vector<4x8x128xf32> to vector<4x8x128xbf16>
    %24 = vector.extract_strided_slice %7 {offsets = [0, 512], sizes = [16, 256], strides = [1, 1]} : vector<16x768xf32> to vector<16x256xf32>
    %25 = vector.extract_strided_slice %24 {offsets = [0, 0], sizes = [8, 128], strides = [1, 1]} : vector<16x256xf32> to vector<8x128xf32>
    %26 = vector.extract_strided_slice %24 {offsets = [0, 128], sizes = [8, 128], strides = [1, 1]} : vector<16x256xf32> to vector<8x128xf32>
    %27 = vector.extract_strided_slice %24 {offsets = [8, 0], sizes = [8, 128], strides = [1, 1]} : vector<16x256xf32> to vector<8x128xf32>
    %28 = vector.extract_strided_slice %24 {offsets = [8, 128], sizes = [8, 128], strides = [1, 1]} : vector<16x256xf32> to vector<8x128xf32>
    %29 = tpu.concatenate %25, %26, %27, %28 in 0 : vector<8x128xf32>, vector<8x128xf32>, vector<8x128xf32>, vector<8x128xf32> -> vector<32x128xf32>
    %30 = vector.shape_cast %29 : vector<32x128xf32> to vector<4x8x128xf32>
    %31 = arith.truncf %30 : vector<4x8x128xf32> to vector<4x8x128xbf16>
    "tpu.trace_start"() <{level = 10 : i32, message = "gqd,gkd->gqk"}> : () -> ()
    %cst_10 = arith.constant dense<0.000000e+00> : vector<4x8x8xf32>
    %32 = tpu.matmul %15, %23, %cst_10 {dimension_numbers = #tpu.dot_dimension_numbers<[2], [2], [1], [1], [0, 0, 0, 1, 1, 1], [0], [0]>} : vector<4x8x128xbf16>, vector<4x8x128xbf16>, vector<4x8x8xf32> -> vector<4x8x8xf32>
    "tpu.trace_stop"() : () -> ()
    %33 = vector.broadcast %1 : vector<4x1x8xf32> to vector<4x8x8xf32>
    %34 = arith.addf %32, %33 : vector<4x8x8xf32>
    %cst_11 = arith.constant dense<0xFF800000> : vector<4x8xf32>
    %35 = vector.multi_reduction <maximumf>, %34, %cst_11 [2] : vector<4x8x8xf32> to vector<4x8xf32>
    %36 = vector.shape_cast %35 : vector<4x8xf32> to vector<4x8x1xf32>
    %37 = vector.broadcast %36 : vector<4x8x1xf32> to vector<4x8x8xf32>
    %38 = arith.subf %34, %37 : vector<4x8x8xf32>
    %39 = math.exp %38 : vector<4x8x8xf32>
    %cst_12 = arith.constant dense<0.000000e+00> : vector<4x8xf32>
    %40 = vector.multi_reduction <add>, %39, %cst_12 [2] : vector<4x8x8xf32> to vector<4x8xf32>
    %41 = vector.shape_cast %40 : vector<4x8xf32> to vector<4x8x1xf32>
    %42 = tpu.reciprocal %41 {approx = true} : vector<4x8x1xf32> -> vector<4x8x1xf32>
    %43 = vector.broadcast %42 : vector<4x8x1xf32> to vector<4x8x8xf32>
    %44 = arith.mulf %39, %43 : vector<4x8x8xf32>
    %45 = arith.truncf %44 : vector<4x8x8xf32> to vector<4x8x8xbf16>
    "tpu.trace_start"() <{level = 10 : i32, message = "gqk,gkd->gqd"}> : () -> ()
    %cst_13 = arith.constant dense<0.000000e+00> : vector<4x8x128xf32>
    %46 = tpu.matmul %45, %31, %cst_13 {dimension_numbers = #tpu.dot_dimension_numbers<[2], [1], [1], [2], [0, 0, 0, 1, 1, 2], [0], [0]>} : vector<4x8x8xbf16>, vector<4x8x128xbf16>, vector<4x8x128xf32> -> vector<4x8x128xf32>
    "tpu.trace_stop"() : () -> ()
    %47 = vector.shape_cast %46 : vector<4x8x128xf32> to vector<32x128xf32>
    %48 = vector.extract_strided_slice %47 {offsets = [0, 0], sizes = [8, 128], strides = [1, 1]} : vector<32x128xf32> to vector<8x128xf32>
    %49 = vector.extract_strided_slice %47 {offsets = [8, 0], sizes = [8, 128], strides = [1, 1]} : vector<32x128xf32> to vector<8x128xf32>
    %50 = tpu.concatenate %48, %49 in 1 : vector<8x128xf32>, vector<8x128xf32> -> vector<8x256xf32>
    %51 = vector.extract_strided_slice %47 {offsets = [16, 0], sizes = [8, 128], strides = [1, 1]} : vector<32x128xf32> to vector<8x128xf32>
    %52 = vector.extract_strided_slice %47 {offsets = [24, 0], sizes = [8, 128], strides = [1, 1]} : vector<32x128xf32> to vector<8x128xf32>
    %53 = tpu.concatenate %51, %52 in 1 : vector<8x128xf32>, vector<8x128xf32> -> vector<8x256xf32>
    %54 = tpu.concatenate %50, %53 in 0 : vector<8x256xf32>, vector<8x256xf32> -> vector<16x256xf32>
    %55 = arith.truncf %54 : vector<16x256xf32> to vector<16x256xbf16>
    %c0_14 = arith.constant 0 : index
    %c0_15 = arith.constant 0 : index
    %c0_16 = arith.constant 0 : index
    %56 = vector.load %arg3[%c0_14, %c0_15, %c0_16] : memref<2x256x256xbf16, #tpu.memory_space<vmem>>, vector<1x256x256xbf16>
    %57 = vector.shape_cast %56 : vector<1x256x256xbf16> to vector<256x256xbf16>
    %cst_17 = arith.constant dense<0.000000e+00> : vector<16x256xf32>
    %58 = tpu.matmul %55, %57, %cst_17 {dimension_numbers = #tpu.dot_dimension_numbers<[1], [0], [0], [1], [0, 0, 1, 1], [], []>} : vector<16x256xbf16>, vector<256x256xbf16>, vector<16x256xf32> -> vector<16x256xf32>
    %59 = vector.extract_strided_slice %3 {offsets = [0, 0], sizes = [1, 256], strides = [1, 1]} : vector<6x256xf32> to vector<1x256xf32>
    %60 = vector.broadcast %59 : vector<1x256xf32> to vector<16x256xf32>
    %61 = arith.addf %58, %60 : vector<16x256xf32>
    %62 = arith.addf %0, %61 : vector<16x256xf32>
    %63 = vector.extract_strided_slice %3 {offsets = [1, 0], sizes = [1, 256], strides = [1, 1]} : vector<6x256xf32> to vector<1x256xf32>
    %64 = vector.extract_strided_slice %3 {offsets = [2, 0], sizes = [1, 256], strides = [1, 1]} : vector<6x256xf32> to vector<1x256xf32>
    %cst_18 = arith.constant dense<0.000000e+00> : vector<16xf32>
    %65 = vector.multi_reduction <add>, %62, %cst_18 [1] : vector<16x256xf32> to vector<16xf32>
    %66 = vector.shape_cast %65 : vector<16xf32> to vector<16x1xf32>
    %cst_19 = arith.constant 2.560000e+02 : f32
    %67 = vector.broadcast %cst_19 : f32 to vector<16x1xf32>
    %68 = arith.divf %66, %67 : vector<16x1xf32>
    %69 = vector.broadcast %68 : vector<16x1xf32> to vector<16x256xf32>
    %70 = arith.subf %62, %69 : vector<16x256xf32>
    %71 = arith.mulf %70, %70 : vector<16x256xf32>
    %cst_20 = arith.constant dense<0.000000e+00> : vector<16xf32>
    %72 = vector.multi_reduction <add>, %71, %cst_20 [1] : vector<16x256xf32> to vector<16xf32>
    %73 = vector.shape_cast %72 : vector<16xf32> to vector<16x1xf32>
    %cst_21 = arith.constant 2.560000e+02 : f32
    %74 = vector.broadcast %cst_21 : f32 to vector<16x1xf32>
    %75 = arith.divf %73, %74 : vector<16x1xf32>
    %cst_22 = arith.constant 9.99999974E-6 : f32
    %76 = vector.broadcast %cst_22 : f32 to vector<16x1xf32>
    %77 = arith.addf %75, %76 : vector<16x1xf32>
    %78 = math.rsqrt %77 : vector<16x1xf32>
    %79 = vector.broadcast %78 : vector<16x1xf32> to vector<16x256xf32>
    %80 = arith.mulf %70, %79 : vector<16x256xf32>
    %81 = vector.broadcast %63 : vector<1x256xf32> to vector<16x256xf32>
    %82 = arith.mulf %80, %81 : vector<16x256xf32>
    %83 = vector.broadcast %64 : vector<1x256xf32> to vector<16x256xf32>
    %84 = arith.addf %82, %83 : vector<16x256xf32>
    %85 = arith.truncf %84 : vector<16x256xf32> to vector<16x256xbf16>
    %c0_23 = arith.constant 0 : index
    %c0_24 = arith.constant 0 : index
    %c0_25 = arith.constant 0 : index
    %86 = vector.load %arg4[%c0_23, %c0_24, %c0_25] : memref<2x256x512xbf16, #tpu.memory_space<vmem>>, vector<1x256x512xbf16>
    %87 = vector.shape_cast %86 : vector<1x256x512xbf16> to vector<256x512xbf16>
    %cst_26 = arith.constant dense<0.000000e+00> : vector<16x512xf32>
    %88 = tpu.matmul %85, %87, %cst_26 {dimension_numbers = #tpu.dot_dimension_numbers<[1], [0], [0], [1], [0, 0, 1, 1], [], []>} : vector<16x256xbf16>, vector<256x512xbf16>, vector<16x512xf32> -> vector<16x512xf32>
    %cst_27 = arith.constant 0.000000e+00 : f32
    %89 = vector.broadcast %cst_27 : f32 to vector<16x512xf32>
    %90 = arith.maximumf %88, %89 : vector<16x512xf32>
    %91 = arith.truncf %90 : vector<16x512xf32> to vector<16x512xbf16>
    %c0_28 = arith.constant 0 : index
    %c0_29 = arith.constant 0 : index
    %c0_30 = arith.constant 0 : index
    %92 = vector.load %arg5[%c0_28, %c0_29, %c0_30] : memref<2x512x256xbf16, #tpu.memory_space<vmem>>, vector<1x512x256xbf16>
    %93 = vector.shape_cast %92 : vector<1x512x256xbf16> to vector<512x256xbf16>
    %cst_31 = arith.constant dense<0.000000e+00> : vector<16x256xf32>
    %94 = tpu.matmul %91, %93, %cst_31 {dimension_numbers = #tpu.dot_dimension_numbers<[1], [0], [0], [1], [0, 0, 1, 1], [], []>} : vector<16x512xbf16>, vector<512x256xbf16>, vector<16x256xf32> -> vector<16x256xf32>
    %95 = vector.extract_strided_slice %3 {offsets = [3, 0], sizes = [1, 256], strides = [1, 1]} : vector<6x256xf32> to vector<1x256xf32>
    %96 = vector.broadcast %95 : vector<1x256xf32> to vector<16x256xf32>
    %97 = arith.addf %94, %96 : vector<16x256xf32>
    %98 = arith.addf %84, %97 : vector<16x256xf32>
    %99 = vector.extract_strided_slice %3 {offsets = [4, 0], sizes = [1, 256], strides = [1, 1]} : vector<6x256xf32> to vector<1x256xf32>
    %100 = vector.extract_strided_slice %3 {offsets = [5, 0], sizes = [1, 256], strides = [1, 1]} : vector<6x256xf32> to vector<1x256xf32>
    %cst_32 = arith.constant dense<0.000000e+00> : vector<16xf32>
    %101 = vector.multi_reduction <add>, %98, %cst_32 [1] : vector<16x256xf32> to vector<16xf32>
    %102 = vector.shape_cast %101 : vector<16xf32> to vector<16x1xf32>
    %cst_33 = arith.constant 2.560000e+02 : f32
    %103 = vector.broadcast %cst_33 : f32 to vector<16x1xf32>
    %104 = arith.divf %102, %103 : vector<16x1xf32>
    %105 = vector.broadcast %104 : vector<16x1xf32> to vector<16x256xf32>
    %106 = arith.subf %98, %105 : vector<16x256xf32>
    %107 = arith.mulf %106, %106 : vector<16x256xf32>
    %cst_34 = arith.constant dense<0.000000e+00> : vector<16xf32>
    %108 = vector.multi_reduction <add>, %107, %cst_34 [1] : vector<16x256xf32> to vector<16xf32>
    %109 = vector.shape_cast %108 : vector<16xf32> to vector<16x1xf32>
    %cst_35 = arith.constant 2.560000e+02 : f32
    %110 = vector.broadcast %cst_35 : f32 to vector<16x1xf32>
    %111 = arith.divf %109, %110 : vector<16x1xf32>
    %cst_36 = arith.constant 9.99999974E-6 : f32
    %112 = vector.broadcast %cst_36 : f32 to vector<16x1xf32>
    %113 = arith.addf %111, %112 : vector<16x1xf32>
    %114 = math.rsqrt %113 : vector<16x1xf32>
    %115 = vector.broadcast %114 : vector<16x1xf32> to vector<16x256xf32>
    %116 = arith.mulf %106, %115 : vector<16x256xf32>
    %117 = vector.broadcast %99 : vector<1x256xf32> to vector<16x256xf32>
    %118 = arith.mulf %116, %117 : vector<16x256xf32>
    %119 = vector.broadcast %100 : vector<1x256xf32> to vector<16x256xf32>
    %120 = arith.addf %118, %119 : vector<16x256xf32>
    %c1 = arith.constant 1 : index
    %c0_37 = arith.constant 0 : index
    %c0_38 = arith.constant 0 : index
    %121 = vector.load %arg6[%c1, %c0_37, %c0_38] : memref<2x6x256xf32, #tpu.memory_space<vmem>>, vector<1x6x256xf32>
    %122 = vector.shape_cast %121 : vector<1x6x256xf32> to vector<6x256xf32>
    %123 = arith.truncf %120 : vector<16x256xf32> to vector<16x256xbf16>
    %c1_39 = arith.constant 1 : index
    %c0_40 = arith.constant 0 : index
    %c0_41 = arith.constant 0 : index
    %124 = vector.load %arg2[%c1_39, %c0_40, %c0_41] : memref<2x256x768xbf16, #tpu.memory_space<vmem>>, vector<1x256x768xbf16>
    %125 = vector.shape_cast %124 : vector<1x256x768xbf16> to vector<256x768xbf16>
    %cst_42 = arith.constant dense<0.000000e+00> : vector<16x768xf32>
    %126 = tpu.matmul %123, %125, %cst_42 {dimension_numbers = #tpu.dot_dimension_numbers<[1], [0], [0], [1], [0, 0, 1, 1], [], []>} : vector<16x256xbf16>, vector<256x768xbf16>, vector<16x768xf32> -> vector<16x768xf32>
    %127 = vector.extract_strided_slice %126 {offsets = [0, 0], sizes = [16, 256], strides = [1, 1]} : vector<16x768xf32> to vector<16x256xf32>
    %128 = vector.extract_strided_slice %127 {offsets = [0, 0], sizes = [8, 128], strides = [1, 1]} : vector<16x256xf32> to vector<8x128xf32>
    %129 = vector.extract_strided_slice %127 {offsets = [0, 128], sizes = [8, 128], strides = [1, 1]} : vector<16x256xf32> to vector<8x128xf32>
    %130 = vector.extract_strided_slice %127 {offsets = [8, 0], sizes = [8, 128], strides = [1, 1]} : vector<16x256xf32> to vector<8x128xf32>
    %131 = vector.extract_strided_slice %127 {offsets = [8, 128], sizes = [8, 128], strides = [1, 1]} : vector<16x256xf32> to vector<8x128xf32>
    %132 = tpu.concatenate %128, %129, %130, %131 in 0 : vector<8x128xf32>, vector<8x128xf32>, vector<8x128xf32>, vector<8x128xf32> -> vector<32x128xf32>
    %133 = vector.shape_cast %132 : vector<32x128xf32> to vector<4x8x128xf32>
    %134 = arith.truncf %133 : vector<4x8x128xf32> to vector<4x8x128xbf16>
    %135 = vector.extract_strided_slice %126 {offsets = [0, 256], sizes = [16, 256], strides = [1, 1]} : vector<16x768xf32> to vector<16x256xf32>
    %136 = vector.extract_strided_slice %135 {offsets = [0, 0], sizes = [8, 128], strides = [1, 1]} : vector<16x256xf32> to vector<8x128xf32>
    %137 = vector.extract_strided_slice %135 {offsets = [0, 128], sizes = [8, 128], strides = [1, 1]} : vector<16x256xf32> to vector<8x128xf32>
    %138 = vector.extract_strided_slice %135 {offsets = [8, 0], sizes = [8, 128], strides = [1, 1]} : vector<16x256xf32> to vector<8x128xf32>
    %139 = vector.extract_strided_slice %135 {offsets = [8, 128], sizes = [8, 128], strides = [1, 1]} : vector<16x256xf32> to vector<8x128xf32>
    %140 = tpu.concatenate %136, %137, %138, %139 in 0 : vector<8x128xf32>, vector<8x128xf32>, vector<8x128xf32>, vector<8x128xf32> -> vector<32x128xf32>
    %141 = vector.shape_cast %140 : vector<32x128xf32> to vector<4x8x128xf32>
    %142 = arith.truncf %141 : vector<4x8x128xf32> to vector<4x8x128xbf16>
    %143 = vector.extract_strided_slice %126 {offsets = [0, 512], sizes = [16, 256], strides = [1, 1]} : vector<16x768xf32> to vector<16x256xf32>
    %144 = vector.extract_strided_slice %143 {offsets = [0, 0], sizes = [8, 128], strides = [1, 1]} : vector<16x256xf32> to vector<8x128xf32>
    %145 = vector.extract_strided_slice %143 {offsets = [0, 128], sizes = [8, 128], strides = [1, 1]} : vector<16x256xf32> to vector<8x128xf32>
    %146 = vector.extract_strided_slice %143 {offsets = [8, 0], sizes = [8, 128], strides = [1, 1]} : vector<16x256xf32> to vector<8x128xf32>
    %147 = vector.extract_strided_slice %143 {offsets = [8, 128], sizes = [8, 128], strides = [1, 1]} : vector<16x256xf32> to vector<8x128xf32>
    %148 = tpu.concatenate %144, %145, %146, %147 in 0 : vector<8x128xf32>, vector<8x128xf32>, vector<8x128xf32>, vector<8x128xf32> -> vector<32x128xf32>
    %149 = vector.shape_cast %148 : vector<32x128xf32> to vector<4x8x128xf32>
    %150 = arith.truncf %149 : vector<4x8x128xf32> to vector<4x8x128xbf16>
    "tpu.trace_start"() <{level = 10 : i32, message = "gqd,gkd->gqk"}> : () -> ()
    %cst_43 = arith.constant dense<0.000000e+00> : vector<4x8x8xf32>
    %151 = tpu.matmul %134, %142, %cst_43 {dimension_numbers = #tpu.dot_dimension_numbers<[2], [2], [1], [1], [0, 0, 0, 1, 1, 1], [0], [0]>} : vector<4x8x128xbf16>, vector<4x8x128xbf16>, vector<4x8x8xf32> -> vector<4x8x8xf32>
    "tpu.trace_stop"() : () -> ()
    %152 = vector.broadcast %1 : vector<4x1x8xf32> to vector<4x8x8xf32>
    %153 = arith.addf %151, %152 : vector<4x8x8xf32>
    %cst_44 = arith.constant dense<0xFF800000> : vector<4x8xf32>
    %154 = vector.multi_reduction <maximumf>, %153, %cst_44 [2] : vector<4x8x8xf32> to vector<4x8xf32>
    %155 = vector.shape_cast %154 : vector<4x8xf32> to vector<4x8x1xf32>
    %156 = vector.broadcast %155 : vector<4x8x1xf32> to vector<4x8x8xf32>
    %157 = arith.subf %153, %156 : vector<4x8x8xf32>
    %158 = math.exp %157 : vector<4x8x8xf32>
    %cst_45 = arith.constant dense<0.000000e+00> : vector<4x8xf32>
    %159 = vector.multi_reduction <add>, %158, %cst_45 [2] : vector<4x8x8xf32> to vector<4x8xf32>
    %160 = vector.shape_cast %159 : vector<4x8xf32> to vector<4x8x1xf32>
    %161 = tpu.reciprocal %160 {approx = true} : vector<4x8x1xf32> -> vector<4x8x1xf32>
    %162 = vector.broadcast %161 : vector<4x8x1xf32> to vector<4x8x8xf32>
    %163 = arith.mulf %158, %162 : vector<4x8x8xf32>
    %164 = arith.truncf %163 : vector<4x8x8xf32> to vector<4x8x8xbf16>
    "tpu.trace_start"() <{level = 10 : i32, message = "gqk,gkd->gqd"}> : () -> ()
    %cst_46 = arith.constant dense<0.000000e+00> : vector<4x8x128xf32>
    %165 = tpu.matmul %164, %150, %cst_46 {dimension_numbers = #tpu.dot_dimension_numbers<[2], [1], [1], [2], [0, 0, 0, 1, 1, 2], [0], [0]>} : vector<4x8x8xbf16>, vector<4x8x128xbf16>, vector<4x8x128xf32> -> vector<4x8x128xf32>
    "tpu.trace_stop"() : () -> ()
    %166 = vector.shape_cast %165 : vector<4x8x128xf32> to vector<32x128xf32>
    %167 = vector.extract_strided_slice %166 {offsets = [0, 0], sizes = [8, 128], strides = [1, 1]} : vector<32x128xf32> to vector<8x128xf32>
    %168 = vector.extract_strided_slice %166 {offsets = [8, 0], sizes = [8, 128], strides = [1, 1]} : vector<32x128xf32> to vector<8x128xf32>
    %169 = tpu.concatenate %167, %168 in 1 : vector<8x128xf32>, vector<8x128xf32> -> vector<8x256xf32>
    %170 = vector.extract_strided_slice %166 {offsets = [16, 0], sizes = [8, 128], strides = [1, 1]} : vector<32x128xf32> to vector<8x128xf32>
    %171 = vector.extract_strided_slice %166 {offsets = [24, 0], sizes = [8, 128], strides = [1, 1]} : vector<32x128xf32> to vector<8x128xf32>
    %172 = tpu.concatenate %170, %171 in 1 : vector<8x128xf32>, vector<8x128xf32> -> vector<8x256xf32>
    %173 = tpu.concatenate %169, %172 in 0 : vector<8x256xf32>, vector<8x256xf32> -> vector<16x256xf32>
    %174 = arith.truncf %173 : vector<16x256xf32> to vector<16x256xbf16>
    %c1_47 = arith.constant 1 : index
    %c0_48 = arith.constant 0 : index
    %c0_49 = arith.constant 0 : index
    %175 = vector.load %arg3[%c1_47, %c0_48, %c0_49] : memref<2x256x256xbf16, #tpu.memory_space<vmem>>, vector<1x256x256xbf16>
    %176 = vector.shape_cast %175 : vector<1x256x256xbf16> to vector<256x256xbf16>
    %cst_50 = arith.constant dense<0.000000e+00> : vector<16x256xf32>
    %177 = tpu.matmul %174, %176, %cst_50 {dimension_numbers = #tpu.dot_dimension_numbers<[1], [0], [0], [1], [0, 0, 1, 1], [], []>} : vector<16x256xbf16>, vector<256x256xbf16>, vector<16x256xf32> -> vector<16x256xf32>
    %178 = vector.extract_strided_slice %122 {offsets = [0, 0], sizes = [1, 256], strides = [1, 1]} : vector<6x256xf32> to vector<1x256xf32>
    %179 = vector.broadcast %178 : vector<1x256xf32> to vector<16x256xf32>
    %180 = arith.addf %177, %179 : vector<16x256xf32>
    %181 = arith.addf %120, %180 : vector<16x256xf32>
    %182 = vector.extract_strided_slice %122 {offsets = [1, 0], sizes = [1, 256], strides = [1, 1]} : vector<6x256xf32> to vector<1x256xf32>
    %183 = vector.extract_strided_slice %122 {offsets = [2, 0], sizes = [1, 256], strides = [1, 1]} : vector<6x256xf32> to vector<1x256xf32>
    %cst_51 = arith.constant dense<0.000000e+00> : vector<16xf32>
    %184 = vector.multi_reduction <add>, %181, %cst_51 [1] : vector<16x256xf32> to vector<16xf32>
    %185 = vector.shape_cast %184 : vector<16xf32> to vector<16x1xf32>
    %cst_52 = arith.constant 2.560000e+02 : f32
    %186 = vector.broadcast %cst_52 : f32 to vector<16x1xf32>
    %187 = arith.divf %185, %186 : vector<16x1xf32>
    %188 = vector.broadcast %187 : vector<16x1xf32> to vector<16x256xf32>
    %189 = arith.subf %181, %188 : vector<16x256xf32>
    %190 = arith.mulf %189, %189 : vector<16x256xf32>
    %cst_53 = arith.constant dense<0.000000e+00> : vector<16xf32>
    %191 = vector.multi_reduction <add>, %190, %cst_53 [1] : vector<16x256xf32> to vector<16xf32>
    %192 = vector.shape_cast %191 : vector<16xf32> to vector<16x1xf32>
    %cst_54 = arith.constant 2.560000e+02 : f32
    %193 = vector.broadcast %cst_54 : f32 to vector<16x1xf32>
    %194 = arith.divf %192, %193 : vector<16x1xf32>
    %cst_55 = arith.constant 9.99999974E-6 : f32
    %195 = vector.broadcast %cst_55 : f32 to vector<16x1xf32>
    %196 = arith.addf %194, %195 : vector<16x1xf32>
    %197 = math.rsqrt %196 : vector<16x1xf32>
    %198 = vector.broadcast %197 : vector<16x1xf32> to vector<16x256xf32>
    %199 = arith.mulf %189, %198 : vector<16x256xf32>
    %200 = vector.broadcast %182 : vector<1x256xf32> to vector<16x256xf32>
    %201 = arith.mulf %199, %200 : vector<16x256xf32>
    %202 = vector.broadcast %183 : vector<1x256xf32> to vector<16x256xf32>
    %203 = arith.addf %201, %202 : vector<16x256xf32>
    %204 = arith.truncf %203 : vector<16x256xf32> to vector<16x256xbf16>
    %c1_56 = arith.constant 1 : index
    %c0_57 = arith.constant 0 : index
    %c0_58 = arith.constant 0 : index
    %205 = vector.load %arg4[%c1_56, %c0_57, %c0_58] : memref<2x256x512xbf16, #tpu.memory_space<vmem>>, vector<1x256x512xbf16>
    %206 = vector.shape_cast %205 : vector<1x256x512xbf16> to vector<256x512xbf16>
    %cst_59 = arith.constant dense<0.000000e+00> : vector<16x512xf32>
    %207 = tpu.matmul %204, %206, %cst_59 {dimension_numbers = #tpu.dot_dimension_numbers<[1], [0], [0], [1], [0, 0, 1, 1], [], []>} : vector<16x256xbf16>, vector<256x512xbf16>, vector<16x512xf32> -> vector<16x512xf32>
    %cst_60 = arith.constant 0.000000e+00 : f32
    %208 = vector.broadcast %cst_60 : f32 to vector<16x512xf32>
    %209 = arith.maximumf %207, %208 : vector<16x512xf32>
    %210 = arith.truncf %209 : vector<16x512xf32> to vector<16x512xbf16>
    %c1_61 = arith.constant 1 : index
    %c0_62 = arith.constant 0 : index
    %c0_63 = arith.constant 0 : index
    %211 = vector.load %arg5[%c1_61, %c0_62, %c0_63] : memref<2x512x256xbf16, #tpu.memory_space<vmem>>, vector<1x512x256xbf16>
    %212 = vector.shape_cast %211 : vector<1x512x256xbf16> to vector<512x256xbf16>
    %cst_64 = arith.constant dense<0.000000e+00> : vector<16x256xf32>
    %213 = tpu.matmul %210, %212, %cst_64 {dimension_numbers = #tpu.dot_dimension_numbers<[1], [0], [0], [1], [0, 0, 1, 1], [], []>} : vector<16x512xbf16>, vector<512x256xbf16>, vector<16x256xf32> -> vector<16x256xf32>
    %214 = vector.extract_strided_slice %122 {offsets = [3, 0], sizes = [1, 256], strides = [1, 1]} : vector<6x256xf32> to vector<1x256xf32>
    %215 = vector.broadcast %214 : vector<1x256xf32> to vector<16x256xf32>
    %216 = arith.addf %213, %215 : vector<16x256xf32>
    %217 = arith.addf %203, %216 : vector<16x256xf32>
    %218 = vector.extract_strided_slice %122 {offsets = [4, 0], sizes = [1, 256], strides = [1, 1]} : vector<6x256xf32> to vector<1x256xf32>
    %219 = vector.extract_strided_slice %122 {offsets = [5, 0], sizes = [1, 256], strides = [1, 1]} : vector<6x256xf32> to vector<1x256xf32>
    %cst_65 = arith.constant dense<0.000000e+00> : vector<16xf32>
    %220 = vector.multi_reduction <add>, %217, %cst_65 [1] : vector<16x256xf32> to vector<16xf32>
    %221 = vector.shape_cast %220 : vector<16xf32> to vector<16x1xf32>
    %cst_66 = arith.constant 2.560000e+02 : f32
    %222 = vector.broadcast %cst_66 : f32 to vector<16x1xf32>
    %223 = arith.divf %221, %222 : vector<16x1xf32>
    %224 = vector.broadcast %223 : vector<16x1xf32> to vector<16x256xf32>
    %225 = arith.subf %217, %224 : vector<16x256xf32>
    %226 = arith.mulf %225, %225 : vector<16x256xf32>
    %cst_67 = arith.constant dense<0.000000e+00> : vector<16xf32>
    %227 = vector.multi_reduction <add>, %226, %cst_67 [1] : vector<16x256xf32> to vector<16xf32>
    %228 = vector.shape_cast %227 : vector<16xf32> to vector<16x1xf32>
    %cst_68 = arith.constant 2.560000e+02 : f32
    %229 = vector.broadcast %cst_68 : f32 to vector<16x1xf32>
    %230 = arith.divf %228, %229 : vector<16x1xf32>
    %cst_69 = arith.constant 9.99999974E-6 : f32
    %231 = vector.broadcast %cst_69 : f32 to vector<16x1xf32>
    %232 = arith.addf %230, %231 : vector<16x1xf32>
    %233 = math.rsqrt %232 : vector<16x1xf32>
    %234 = vector.broadcast %233 : vector<16x1xf32> to vector<16x256xf32>
    %235 = arith.mulf %225, %234 : vector<16x256xf32>
    %236 = vector.broadcast %218 : vector<1x256xf32> to vector<16x256xf32>
    %237 = arith.mulf %235, %236 : vector<16x256xf32>
    %238 = vector.broadcast %219 : vector<1x256xf32> to vector<16x256xf32>
    %239 = arith.addf %237, %238 : vector<16x256xf32>
    %c0_70 = arith.constant 0 : index
    %c0_71 = arith.constant 0 : index
    %240 = vector.load %arg7[%c0_70, %c0_71] : memref<16x256xf32, #tpu.memory_space<vmem>>, vector<16x256xf32>
    tpu.vector_store %arg7[%c0_70, %c0_71], %239 {strides = array<i32>} : memref<16x256xf32, #tpu.memory_space<vmem>>, vector<16x256xf32>,
    return
  }
}

</mosaic_0001>

<bundles_post_ra>
// kernel: tpu_custom_call.1
= control target key start
LH: loop header
LB: loop body
LE: loop exit
PB: predicated region body
PF: predicated region fallthrough
CT: control target
= control target key end

     0   :  { %12 = vsyncpa [#allocation3], 0  ;;  %s7200_s0 = inlined_call_operand.vmem [shape: f32[16,256], index: 0, kind: input, shape index: {}]   ;;  %s7201_s1 = inlined_call_operand.vmem [shape: f32[4,1,8], index: 1, kind: input, shape index: {}]   ;;  %s7202_s2 = inlined_call_operand.hbm [shape: bf16[2,256,768], index: 2, kind: input, shape index: {}]   ;;  %s7203_s3 = inlined_call_operand.hbm [shape: bf16[2,256,256], index: 3, kind: input, shape index: {}]   ;;  %s7204_s4 = inlined_call_operand.hbm [shape: bf16[2,256,512], index: 4, kind: input, shape index: {}]   ;;  %s7205_s5 = inlined_call_operand.hbm [shape: bf16[2,512,256], index: 5, kind: input, shape index: {}]   ;;  %s7206_s6 = inlined_call_operand.vmem [shape: f32[2,6,256], index: 6, kind: input, shape index: {}]   ;;  %s7207_s7 = inlined_call_operand.hbm [shape: f32[16,256], index: 7, kind: output, shape index: {}]  }
   0x1   :  { %13 = vsyncpa [#allocation6], 0 }
   0x2   :  { %14 = vsyncpa [#allocation9], 0 }
   0x3   :  { %15 = vsyncpa [#allocation4], 0  ;;  %s6653_s24 = smov [#allocation5]   ;;  %s6535_s28 = scalar_lea.hbm %s7203_s3, 8192 }
   0x4   :  { %s37_s25 = sshll.u32 %s6653_s24, 4  ;;  %p6536_p0 = scmp.ne.s32.totalorder %s7203_s3, %s6535_s28  ;;  %s38_s25 = int_to_ptr.vmem [resolvable:$true] %s37_s25 }
   0x5   :  { %p6539_p1 = scmp.lt.u32.totalorder %s6535_s28, %s7203_s3 }
   0x7   :  { %p6541_p2 = pnand %p6539_p1, %p6536_p0 }
   0x9   :  { %6544 = shalt.err (!%p6541_p2)
}
   0xa   :  { %s6545_s10 = scalar_lea.vmem %s38_s25, 8192  ;;  %p6550_p4 = scmp.lt.s32.totalorder %s38_s25, %s38_s25 }
   0xb   :  { %p6546_p3 = scmp.ne.s32.totalorder %s38_s25, %s6545_s10  ;;  %p6551_p5 = scmp.lt.s32.totalorder %s6545_s10, %s6545_s10 }
   0xd   :  { %p6552_p6 = por %p6551_p5, %p6550_p4 }
   0xf   :  { %p6553_p7 = pnand %p6552_p6, %p6546_p3 }
  0x11   :  { %6556 = shalt.err (!%p6553_p7)
}
  0x12   :  { %s6654_s11 = smov 128   ;;  %s6655_s12 = smov 8  }
  0x13   :  { %43 = dma.hbm_to_vmem [thread:$0]  %s7203_s3, 8192, %s38_s25, [#allocation6], %s6654_s11, %s6654_s11, %s6655_s12  }
  0x14   :  { %s6656_s15 = smov [#allocation2]   ;;  %s6557_s19 = scalar_lea.hbm %s7202_s2, 24576 }
  0x15   :  { %s25_s16 = sshll.u32 %s6656_s15, 4  ;;  %p6558_p8 = scmp.ne.s32.totalorder %s7202_s2, %s6557_s19  ;;  %s26_s16 = int_to_ptr.vmem [resolvable:$true] %s25_s16 }
  0x16   :  { %p6561_p9 = scmp.lt.u32.totalorder %s6557_s19, %s7202_s2 }
  0x18   :  { %p6563_p10 = pnand %p6561_p9, %p6558_p8 }
  0x1a   :  { %6566 = shalt.err (!%p6563_p10)
}
  0x1b   :  { %s6567_s24 = scalar_lea.vmem %s26_s16, 24576  ;;  %p6572_p12 = scmp.lt.s32.totalorder %s26_s16, %s26_s16 }
  0x1c   :  { %p6568_p11 = scmp.ne.s32.totalorder %s26_s16, %s6567_s24  ;;  %p6573_p13 = scmp.lt.s32.totalorder %s6567_s24, %s6567_s24 }
  0x1e   :  { %p6574_p0 = por %p6573_p13, %p6572_p12 }
  0x20   :  { %p6575_p1 = pnand %p6574_p0, %p6568_p11 }
  0x22   :  { %6578 = shalt.err (!%p6575_p1)
}
  0x23   :  { %s6657_s3 = smov 384   ;;  %s6658_s25 = smov 24  }
  0x24   :  { %31 = dma.hbm_to_vmem [thread:$0]  %s7202_s2, 24576, %s26_s16, [#allocation3], %s6657_s3, %s6657_s3, %s6658_s25  }
  0x25   :  { %s6659_s28 = smov [#allocation7]   ;;  %s6579_s9 = scalar_lea.hbm %s7204_s4, 16384 }
  0x26   :  { %s49_s29 = sshll.u32 %s6659_s28, 4  ;;  %p6580_p2 = scmp.ne.s32.totalorder %s7204_s4, %s6579_s9  ;;  %s50_s29 = int_to_ptr.vmem [resolvable:$true] %s49_s29 }
  0x27   :  { %p6583_p3 = scmp.lt.u32.totalorder %s6579_s9, %s7204_s4 }
  0x29   :  { %p6585_p4 = pnand %p6583_p3, %p6580_p2 }
  0x2b   :  { %6588 = shalt.err (!%p6585_p4)
}
  0x2c   :  { %s6589_s17 = scalar_lea.vmem %s50_s29, 16384  ;;  %p6594_p6 = scmp.lt.s32.totalorder %s50_s29, %s50_s29 }
  0x2d   :  { %p6590_p5 = scmp.ne.s32.totalorder %s50_s29, %s6589_s17  ;;  %p6595_p7 = scmp.lt.s32.totalorder %s6589_s17, %s6589_s17 }
  0x2f   :  { %p6596_p8 = por %p6595_p7, %p6594_p6 }
  0x31   :  { %p6597_p9 = pnand %p6596_p8, %p6590_p5 }
  0x33   :  { %6600 = shalt.err (!%p6597_p9)
}
  0x34   :  { %s6660_s2 = smov 256   ;;  %s6661_s16 = smov 16  }
  0x35   :  { %55 = dma.hbm_to_vmem [thread:$0]  %s7204_s4, 16384, %s50_s29, [#allocation6], %s6660_s2, %s6660_s2, %s6661_s16  }
  0x36   :  { %s6662_s20 = smov [#allocation8]   ;;  %s6601_s24 = scalar_lea.hbm %s7205_s5, 16384 }
  0x37   :  { %s61_s21 = sshll.u32 %s6662_s20, 4  ;;  %p6602_p10 = scmp.ne.s32.totalorder %s7205_s5, %s6601_s24  ;;  %s62_s21 = int_to_ptr.vmem [resolvable:$true] %s61_s21 }
  0x38   :  { %p6605_p11 = scmp.lt.u32.totalorder %s6601_s24, %s7205_s5 }
  0x3a   :  { %p6607_p12 = pnand %p6605_p11, %p6602_p10 }
  0x3c   :  { %6610 = shalt.err (!%p6607_p12)
}
  0x3d   :  { %s6611_s28 = scalar_lea.vmem %s62_s21, 16384  ;;  %p6616_p0 = scmp.lt.s32.totalorder %s62_s21, %s62_s21 }
  0x3e   :  { %p6612_p13 = scmp.ne.s32.totalorder %s62_s21, %s6611_s28  ;;  %p6617_p1 = scmp.lt.s32.totalorder %s6611_s28, %s6611_s28 }
  0x40   :  { %p6618_p2 = por %p6617_p1, %p6616_p0 }
  0x42   :  { %p6619_p3 = pnand %p6618_p2, %p6612_p13 }
  0x44   :  { %6622 = shalt.err (!%p6619_p3)
}
  0x45   :  { %67 = dma.hbm_to_vmem [thread:$0]  %s7205_s5, 16384, %s62_s21, [#allocation9], %s6654_s11, %s6654_s11, %s6655_s12  }
  0x46   :  { %6645 = dma.done.wait [#allocation3], 24576  }
  0x47   :  { %6646 = vsyncadd [#allocation3], 4294942720 }
  0x48   :  { %6647 = dma.done.wait [#allocation6], 24576  }
  0x49   :  { %6648 = vsyncadd [#allocation6], 4294942720 }
  0x4a   :  { %6649 = dma.done.wait [#allocation9], 16384  }
  0x4b   :  { %6650 = vsyncadd [#allocation9], 4294950912  ;;  %v5709_v0 = vld [vmem:[#allocation2 + $0xc] ss:$24 sps:$4 sm:$0xff]   ;;  %v5711_v1 = vld [vmem:[#allocation2 + $0x8] ss:$24 sps:$4 sm:$0xff]  }
  0x4c   :  { %714 = vmatprep.subr.bf16.mxu1 %v5709_v0  ;;  %v5712_v2 = vld [vmem:[#allocation2 + $0x4] ss:$24 sps:$4 sm:$0xff]   ;;  %v5716_v4 = vld [vmem:[#allocation2] ss:$24 sps:$4 sm:$0xff]   ;;  %v5718_v6 = vld [vmem:[#allocation2 + $0x34] ss:$24 sps:$4 sm:$0xff]  }
  0x4d   :  { %715 = vmatpush1.bf16.msra.mxu1 %v5711_v1  ;;  %v5714_v3 = vld [vmem:[#allocation2 + $0x3c] ss:$24 sps:$4 sm:$0xff]   ;;  %v5717_v5 = vld [vmem:[#allocation2 + $0x38] ss:$24 sps:$4 sm:$0xff]   ;;  %671 = vmatprep.subr.bf16.mxu0 %v5712_v2  ;;  %v5720_v7 = vld [vmem:[#allocation2 + $0x6c] ss:$24 sps:$4 sm:$0xff]  }
  0x4e   :  { %716 = vmatprep.subr.bf16.mxu1 %v5714_v3  ;;  %672 = vmatpush1.bf16.msra.mxu0 %v5716_v4  ;;  %v5722_v8 = vld [vmem:[#allocation2 + $0x30] ss:$24 sps:$4 sm:$0xff]   ;;  %v5724_v10 = vld [vmem:[#allocation2 + $0x64] ss:$24 sps:$4 sm:$0xff]   ;;  %v5728_v12 = vld [vmem:[#allocation2 + $0x60] ss:$24 sps:$4 sm:$0xff]  }
  0x4f   :  { %673 = vmatprep.subr.bf16.mxu0 %v5718_v6  ;;  %v5723_v9 = vld [vmem:[#allocation2 + $0x68] ss:$24 sps:$4 sm:$0xff]   ;;  %v5726_v11 = vld [vmem:[#allocation2 + $0x9c] ss:$24 sps:$4 sm:$0xff]   ;;  %v5729_v14 = vld [vmem:[#allocation2 + $0x98] ss:$24 sps:$4 sm:$0xff]  }
  0x50   :  { %v5730_v13 = vld [vmem:[#allocation2 + $0x94] ss:$24 sps:$4 sm:$0xff]   ;;  %v5734_v16 = vld [vmem:[#allocation2 + $0x90] ss:$24 sps:$4 sm:$0xff]   ;;  %v5736_v17 = vld [vmem:[#allocation2 + $0xc4] ss:$24 sps:$4 sm:$0xff]  }
  0x51   :  { %717 = vmatpush1.bf16.msra.mxu1 %v5717_v5  ;;  %v5732_v15 = vld [vmem:[#allocation2 + $0xcc] ss:$24 sps:$4 sm:$0xff]   ;;  %v5735_v18 = vld [vmem:[#allocation2 + $0xc8] ss:$24 sps:$4 sm:$0xff]   ;;  %v5738_v19 = vld [vmem:[#allocation2 + $0xfc] ss:$24 sps:$4 sm:$0xff]  }
  0x52   :  { %718 = vmatprep.subr.bf16.mxu1 %v5720_v7  ;;  %674 = vmatpush1.bf16.msra.mxu0 %v5722_v8  ;;  %v5740_v20 = vld [vmem:[#allocation2 + $0xc0] ss:$24 sps:$4 sm:$0xff]   ;;  %v5742_v21 = vld [vmem:[#allocation2 + $0xf4] ss:$24 sps:$4 sm:$0xff]   ;;  %v5746_v24 = vld [vmem:[#allocation2 + $0xf0] ss:$24 sps:$4 sm:$0xff]  }
  0x53   :  { %675 = vmatprep.subr.bf16.mxu0 %v5724_v10  ;;  %v5741_v22 = vld [vmem:[#allocation2 + $0xf8] ss:$24 sps:$4 sm:$0xff]   ;;  %v5744_v23 = vld [vmem:[#allocation2 + $0x12c] ss:$24 sps:$4 sm:$0xff]   ;;  %v5747_v26 = vld [vmem:[#allocation2 + $0x128] ss:$24 sps:$4 sm:$0xff]  }
  0x54   :  { %v5748_v25 = vld [vmem:[#allocation2 + $0x124] ss:$24 sps:$4 sm:$0xff]   ;;  %v5752_v28 = vld [vmem:[#allocation2 + $0x120] ss:$24 sps:$4 sm:$0xff]   ;;  %v5754_v29 = vld [vmem:[#allocation2 + $0x154] ss:$24 sps:$4 sm:$0xff]  }
  0x55   :  { %719 = vmatpush1.bf16.msra.mxu1 %v5723_v9  ;;  %v5750_v27 = vld [vmem:[#allocation2 + $0x15c] ss:$24 sps:$4 sm:$0xff]   ;;  %v5753_v30 = vld [vmem:[#allocation2 + $0x158] ss:$24 sps:$4 sm:$0xff]   ;;  %v5756_v31 = vld [vmem:[#allocation2 + $0x18c] ss:$24 sps:$4 sm:$0xff]  }
  0x56   :  { %720 = vmatprep.subr.bf16.mxu1 %v5726_v11  ;;  %676 = vmatpush1.bf16.msra.mxu0 %v5728_v12  ;;  %v5758_v32 = vld [vmem:[#allocation2 + $0x150] ss:$24 sps:$4 sm:$0xff]   ;;  %v5760_v33 = vld [vmem:[#allocation2 + $0x184] ss:$24 sps:$4 sm:$0xff]   ;;  %v5764_v36 = vld [vmem:[#allocation2 + $0x180] ss:$24 sps:$4 sm:$0xff]  }
  0x57   :  { %677 = vmatprep.subr.bf16.mxu0 %v5730_v13  ;;  %v5759_v34 = vld [vmem:[#allocation2 + $0x188] ss:$24 sps:$4 sm:$0xff]   ;;  %v5762_v35 = vld [vmem:[#allocation2 + $0x1bc] ss:$24 sps:$4 sm:$0xff]   ;;  %v5765_v38 = vld [vmem:[#allocation2 + $0x1b8] ss:$24 sps:$4 sm:$0xff]  }
  0x58   :  { %v5766_v37 = vld [vmem:[#allocation2 + $0x1b4] ss:$24 sps:$4 sm:$0xff]   ;;  %v5770_v40 = vld [vmem:[#allocation2 + $0x1b0] ss:$24 sps:$4 sm:$0xff]   ;;  %v5772_v41 = vld [vmem:[#allocation2 + $0x1e4] ss:$24 sps:$4 sm:$0xff]  }
  0x59   :  { %721 = vmatpush1.bf16.msra.mxu1 %v5729_v14  ;;  %v5768_v39 = vld [vmem:[#allocation2 + $0x1ec] ss:$24 sps:$4 sm:$0xff]   ;;  %v5771_v42 = vld [vmem:[#allocation2 + $0x1e8] ss:$24 sps:$4 sm:$0xff]   ;;  %v5774_v43 = vld [vmem:[#allocation2 + $0x21c] ss:$24 sps:$4 sm:$0xff]  }
  0x5a   :  { %722 = vmatprep.subr.bf16.mxu1 %v5732_v15  ;;  %678 = vmatpush1.bf16.msra.mxu0 %v5734_v16  ;;  %v5776_v44 = vld [vmem:[#allocation2 + $0x1e0] ss:$24 sps:$4 sm:$0xff]   ;;  %v84_v45 = vld [vmem:[%s7200_s0 + $0x8] sm:$0xff]  ;;  %v5784_v52 = vld [vmem:[#allocation2 + $0x244] ss:$24 sps:$4 sm:$0xff]   ;;  %vm6664_vm0 = vmmov 0  }
  0x5b   :  { %679 = vmatprep.subr.bf16.mxu0 %v5736_v17  ;;  %v86_v46 = vld [vmem:[%s7200_s0 + $0x18] sm:$0xff]  ;;  %v5778_v47 = vld [vmem:[#allocation2 + $0x214] ss:$24 sps:$4 sm:$0xff]   ;;  %v5782_v51 = vld [vmem:[#allocation2 + $0x210] ss:$24 sps:$4 sm:$0xff]   ;;  %vm1048_vm1 = vcmask 1043456  }
  0x5c   :  { %v94_v48 = vpack.c.bf16 %v86_v46, %v84_v45  ;;  %v5777_v49 = vld [vmem:[#allocation2 + $0x218] ss:$24 sps:$4 sm:$0xff]   ;;  %v5780_v50 = vld [vmem:[#allocation2 + $0x24c] ss:$24 sps:$4 sm:$0xff]   ;;  %v5783_v53 = vld [vmem:[#allocation2 + $0x248] ss:$24 sps:$4 sm:$0xff]  }
  0x5d   :  { %723 = vmatpush1.bf16.msra.mxu1 %v5735_v18  ;;  %v5786_v54 = vld [vmem:[#allocation2 + $0x27c] ss:$24 sps:$4 sm:$0xff]   ;;  %v5788_v55 = vld [vmem:[#allocation2 + $0x240] ss:$24 sps:$4 sm:$0xff]   ;;  %v5792_v58 = vld [vmem:[#allocation2 + $0x2ac] ss:$24 sps:$4 sm:$0xff]  }
  0x5e   :  { %724 = vmatprep.subr.bf16.mxu1 %v5738_v19  ;;  %680 = vmatpush1.bf16.msra.mxu0 %v5740_v20  ;;  %v5790_v56 = vld [vmem:[#allocation2 + $0x274] ss:$24 sps:$4 sm:$0xff]   ;;  %v5789_v57 = vld [vmem:[#allocation2 + $0x278] ss:$24 sps:$4 sm:$0xff]   ;;  %v5796_v60 = vld [vmem:[#allocation2 + $0x2a4] ss:$24 sps:$4 sm:$0xff]  }
  0x5f   :  { %681 = vmatprep.subr.bf16.mxu0 %v5742_v21  ;;  %746 = vmatprep.mubr.bf16.mxu1 %v94_v48  ;;  %v5794_v59 = vld [vmem:[#allocation2 + $0x270] ss:$24 sps:$4 sm:$0xff]   ;;  %v5798_v62 = vld [vmem:[#allocation2 + $0x2dc] ss:$24 sps:$4 sm:$0xff]   ;;  %v5800_v63 = vld [vmem:[#allocation2 + $0x2a0] ss:$24 sps:$4 sm:$0xff]  }
  0x60   :  { %703 = vmatprep.mubr.bf16.mxu0 %v94_v48  ;;  %v5795_v61 = vld [vmem:[#allocation2 + $0x2a8] ss:$24 sps:$4 sm:$0xff]   ;;  %v5801_v0 = vld [vmem:[#allocation2 + $0x2d8] ss:$24 sps:$4 sm:$0xff]   ;;  %v5802_v1 = vld [vmem:[#allocation2 + $0x2d4] ss:$24 sps:$4 sm:$0xff]  }
  0x61   :  { %725 = vmatpush1.bf16.msra.mxu1 %v5741_v22  ;;  %v83_v2 = vld [vmem:[%s7200_s0] sm:$0xff]  ;;  %v85_v3 = vld [vmem:[%s7200_s0 + $0x10] sm:$0xff]  ;;  %vm996_vm2 = vcmask 64512  }
  0x62   :  { %726 = vmatprep.subr.bf16.mxu1 %v5744_v23  ;;  %682 = vmatpush1.bf16.msra.mxu0 %v5746_v24  ;;  %v5804_v4 = vld [vmem:[#allocation2 + $0x2d0] ss:$24 sps:$4 sm:$0xff]   ;;  %v6775_v5 = vpack.c.bf16 %v85_v3, %v83_v2  ;;  %v5807_v6 = vld [vmem:[#allocation2 + $0x14] ss:$24 sps:$4 sm:$0xff]   ;;  %v5810_v8 = vld [vmem:[#allocation2 + $0x44] ss:$24 sps:$4 sm:$0xff]  }
  0x63   :  { %683 = vmatprep.subr.bf16.mxu0 %v5748_v25  ;;  %v5805_v7 = vld [vmem:[#allocation2 + $0x10] ss:$24 sps:$4 sm:$0xff]   ;;  %v5808_v9 = vld [vmem:[#allocation2 + $0x40] ss:$24 sps:$4 sm:$0xff]   ;;  %v5813_v10 = vld [vmem:[#allocation2 + $0x74] ss:$24 sps:$4 sm:$0xff]  }
  0x64   :  { %v5811_v11 = vld [vmem:[#allocation2 + $0x70] ss:$24 sps:$4 sm:$0xff]   ;;  %v5816_v12 = vld [vmem:[#allocation2 + $0xa4] ss:$24 sps:$4 sm:$0xff]   ;;  %v5814_v13 = vld [vmem:[#allocation2 + $0xa0] ss:$24 sps:$4 sm:$0xff]  }
  0x65   :  { %727 = vmatpush1.bf16.msra.mxu1 %v5747_v26  ;;  %v5819_v14 = vld [vmem:[#allocation2 + $0xd4] ss:$24 sps:$4 sm:$0xff]   ;;  %v5817_v15 = vld [vmem:[#allocation2 + $0xd0] ss:$24 sps:$4 sm:$0xff]   ;;  %v5822_v16 = vld [vmem:[#allocation2 + $0x104] ss:$24 sps:$4 sm:$0xff]  }
  0x66   :  { %728 = vmatprep.subr.bf16.mxu1 %v5750_v27  ;;  %684 = vmatpush1.bf16.msra.mxu0 %v5752_v28  ;;  %v5820_v17 = vld [vmem:[#allocation2 + $0x100] ss:$24 sps:$4 sm:$0xff]   ;;  %v5825_v18 = vld [vmem:[#allocation2 + $0x134] ss:$24 sps:$4 sm:$0xff]   ;;  %v5823_v19 = vld [vmem:[#allocation2 + $0x130] ss:$24 sps:$4 sm:$0xff]  }
  0x67   :  { %685 = vmatprep.subr.bf16.mxu0 %v5754_v29  ;;  %v5828_v20 = vld [vmem:[#allocation2 + $0x164] ss:$24 sps:$4 sm:$0xff]   ;;  %v5826_v21 = vld [vmem:[#allocation2 + $0x160] ss:$24 sps:$4 sm:$0xff]   ;;  %v5831_v22 = vld [vmem:[#allocation2 + $0x194] ss:$24 sps:$4 sm:$0xff]  }
  0x68   :  { %v5829_v23 = vld [vmem:[#allocation2 + $0x190] ss:$24 sps:$4 sm:$0xff]   ;;  %v5834_v24 = vld [vmem:[#allocation2 + $0x1c4] ss:$24 sps:$4 sm:$0xff]   ;;  %v5832_v25 = vld [vmem:[#allocation2 + $0x1c0] ss:$24 sps:$4 sm:$0xff]  }
  0x69   :  { %729 = vmatpush1.bf16.msra.mxu1 %v5753_v30  ;;  %v5837_v26 = vld [vmem:[#allocation2 + $0x1f4] ss:$24 sps:$4 sm:$0xff]   ;;  %v5835_v27 = vld [vmem:[#allocation2 + $0x1f0] ss:$24 sps:$4 sm:$0xff]   ;;  %v5840_v28 = vld [vmem:[#allocation2 + $0x224] ss:$24 sps:$4 sm:$0xff]  }
  0x6a   :  { %730 = vmatprep.subr.bf16.mxu1 %v5756_v31  ;;  %686 = vmatpush1.bf16.msra.mxu0 %v5758_v32  ;;  %v5838_v29 = vld [vmem:[#allocation2 + $0x220] ss:$24 sps:$4 sm:$0xff]   ;;  %v5843_v30 = vld [vmem:[#allocation2 + $0x254] ss:$24 sps:$4 sm:$0xff]   ;;  %v5841_v31 = vld [vmem:[#allocation2 + $0x250] ss:$24 sps:$4 sm:$0xff]  }
  0x6b   :  { %687 = vmatprep.subr.bf16.mxu0 %v5760_v33  ;;  %v5846_v32 = vld [vmem:[#allocation2 + $0x284] ss:$24 sps:$4 sm:$0xff]   ;;  %v5844_v33 = vld [vmem:[#allocation2 + $0x280] ss:$24 sps:$4 sm:$0xff]  }
  0x6d   :  { %731 = vmatpush1.bf16.msra.mxu1 %v5759_v34  ;;  %v5849_v34 = vld [vmem:[#allocation2 + $0x2b4] ss:$24 sps:$4 sm:$0xff]  }
  0x6e   :  { %732 = vmatprep.subr.bf16.mxu1 %v5762_v35  ;;  %688 = vmatpush1.bf16.msra.mxu0 %v5764_v36  ;;  %v5847_v35 = vld [vmem:[#allocation2 + $0x2b0] ss:$24 sps:$4 sm:$0xff]   ;;  %v5852_v36 = vld [vmem:[#allocation2 + $0x2e4] ss:$24 sps:$4 sm:$0xff]  }
  0x6f   :  { %689 = vmatprep.subr.bf16.mxu0 %v5766_v37  ;;  %v5850_v37 = vld [vmem:[#allocation2 + $0x2e0] ss:$24 sps:$4 sm:$0xff]  }
  0x71   :  { %733 = vmatpush1.bf16.msra.mxu1 %v5765_v38  ;;  %v6663_v38 = vmov 0.0  }
  0x72   :  { %734 = vmatprep.subr.bf16.mxu1 %v5768_v39  ;;  %690 = vmatpush1.bf16.msra.mxu0 %v5770_v40 }
  0x73   :  { %691 = vmatprep.subr.bf16.mxu0 %v5772_v41 }
  0x75   :  { %735 = vmatpush1.bf16.msra.mxu1 %v5771_v42 }
  0x76   :  { %736 = vmatprep.subr.bf16.mxu1 %v5774_v43  ;;  %692 = vmatpush1.bf16.msra.mxu0 %v5776_v44 }
  0x77   :  { %693 = vmatprep.subr.bf16.mxu0 %v5778_v47 }
  0x79   :  { %737 = vmatpush1.bf16.msra.mxu1 %v5777_v49 }
  0x7a   :  { %738 = vmatprep.subr.bf16.mxu1 %v5780_v50  ;;  %694 = vmatpush1.bf16.msra.mxu0 %v5782_v51 }
  0x7b   :  { %695 = vmatprep.subr.bf16.mxu0 %v5784_v52 }
  0x7d   :  { %739 = vmatpush1.bf16.msra.mxu1 %v5783_v53 }
  0x7e   :  { %740 = vmatprep.subr.bf16.mxu1 %v5786_v54  ;;  %696 = vmatpush1.bf16.msra.mxu0 %v5788_v55 }
  0x7f   :  { %697 = vmatprep.subr.bf16.mxu0 %v5790_v56 }
  0x81   :  { %741 = vmatpush1.bf16.msra.mxu1 %v5789_v57 }
  0x82   :  { %742 = vmatprep.subr.bf16.mxu1 %v5792_v58  ;;  %698 = vmatpush1.bf16.msra.mxu0 %v5794_v59 }
  0x83   :  { %699 = vmatprep.subr.bf16.mxu0 %v5796_v60 }
  0x85   :  { %743 = vmatpush1.bf16.msra.mxu1 %v5795_v61  ;;  %v5122_v61 = vld [vmem:[%s7201_s1] ss:$0 sm:$0xff] }
  0x86   :  { %744 = vmatprep.subr.bf16.mxu1 %v5798_v62  ;;  %700 = vmatpush1.bf16.msra.mxu0 %v5800_v63 }
  0x87   :  { %701 = vmatprep.subr.bf16.mxu0 %v5802_v1 }
  0x89   :  { %745 = vmatpush1.bf16.msra.mxu1 %v5801_v0 }
  0x8a   :  { %702 = vmatpush1.bf16.msra.mxu0 %v5804_v4  ;;  %5608 = vmatprep.subr.bf16.mxu1 %v6663_v38  ;;  %v5123_v4 = vld [vmem:[%s7201_s1 + $0x1] ss:$0 sm:$0xff] }
  0x8b   :  { %757 = vmatprep.subr.bf16.mxu0 %v5807_v6 }
  0x8c   :  { %747 = vmatmul.mubr.bf16.vlgmr.msra.gmra.mrb[0].mxu1 %v6775_v5 }
  0x8d   :  { %704 = vmatmul.mubr.bf16.vlgmr.msra.gmra.mrb[0].mxu0 %v6775_v5  ;;  %5610 = vmatprep.mubr.msk.bf16.mxu1 %vm6664_vm0, %v6663_v38 }
  0x8e   :  { %758 = vmatpush1.bf16.msra.mxu0 %v5805_v7  ;;  %789 = vmatprep.mubr.bf16.mxu0 %v94_v48 }
  0x8f   :  { %759 = vmatprep.subr.bf16.mxu0 %v5810_v8 }
  0x92   :  { %760 = vmatpush1.bf16.msra.mxu0 %v5808_v9 }
  0x93   :  { %761 = vmatprep.subr.bf16.mxu0 %v5813_v10 }
  0x96   :  { %762 = vmatpush1.bf16.msra.mxu0 %v5811_v11  ;;  %v5124_v11 = vld [vmem:[%s7201_s1 + $0x2] ss:$0 sm:$0xff] }
  0x97   :  { %763 = vmatprep.subr.bf16.mxu0 %v5816_v12 }
  0x9a   :  { %764 = vmatpush1.bf16.msra.mxu0 %v5814_v13 }
  0x9b   :  { %765 = vmatprep.subr.bf16.mxu0 %v5819_v14 }
  0x9e   :  { %766 = vmatpush1.bf16.msra.mxu0 %v5817_v15 }
  0x9f   :  { %767 = vmatprep.subr.bf16.mxu0 %v5822_v16 }
  0xa2   :  { %768 = vmatpush1.bf16.msra.mxu0 %v5820_v17 }
  0xa3   :  { %769 = vmatprep.subr.bf16.mxu0 %v5825_v18  ;;  %v5125_v18 = vld [vmem:[%s7201_s1 + $0x3] ss:$0 sm:$0xff] }
  0xa6   :  { %770 = vmatpush1.bf16.msra.mxu0 %v5823_v19 }
  0xa7   :  { %771 = vmatprep.subr.bf16.mxu0 %v5828_v20 }
  0xaa   :  { %772 = vmatpush1.bf16.msra.mxu0 %v5826_v21 }
  0xab   :  { %773 = vmatprep.subr.bf16.mxu0 %v5831_v22 }
  0xae   :  { %774 = vmatpush1.bf16.msra.mxu0 %v5829_v23 }
  0xaf   :  { %775 = vmatprep.subr.bf16.mxu0 %v5834_v24 }
  0xb2   :  { %776 = vmatpush1.bf16.msra.mxu0 %v5832_v25 }
  0xb3   :  { %777 = vmatprep.subr.bf16.mxu0 %v5837_v26 }
  0xb6   :  { %778 = vmatpush1.bf16.msra.mxu0 %v5835_v27 }
  0xb7   :  { %779 = vmatprep.subr.bf16.mxu0 %v5840_v28 }
  0xba   :  { %780 = vmatpush1.bf16.msra.mxu0 %v5838_v29 }
  0xbb   :  { %781 = vmatprep.subr.bf16.mxu0 %v5843_v30 }
  0xbe   :  { %782 = vmatpush1.bf16.msra.mxu0 %v5841_v31 }
  0xbf   :  { %783 = vmatprep.subr.bf16.mxu0 %v5846_v32 }
  0xc2   :  { %784 = vmatpush1.bf16.msra.mxu0 %v5844_v33 }
  0xc3   :  { %785 = vmatprep.subr.bf16.mxu0 %v5849_v34 }
  0xc6   :  { %786 = vmatpush1.bf16.msra.mxu0 %v5847_v35 }
  0xc7   :  { %787 = vmatprep.subr.bf16.mxu0 %v5852_v36 }
  0xca   :  { %788 = vmatpush1.bf16.msra.mxu0 %v5850_v37 }
  0xcb   :  { %5584 = vmatprep.subr.bf16.mxu0 %v6663_v38 }
  0xcd   :  { %790 = vmatmul.mubr.bf16.vlgmr.msra.gmra.mrb[4].mxu0 %v6775_v5 }
  0xce   :  { %5586 = vmatprep.mubr.msk.bf16.mxu0 %vm6664_vm0, %v6663_v38 }
 0x15f   :  { %v748_v39 = vpop.f32.mrb[0].mxu1 }
 0x160   :  { %v804_v40 = vpack.c.bf16 %v748_v39, %v748_v39  ;;  %v750_v41 = vpop.f32.mrb[1].mxu1  ;;  %v705_v43 = vpop.f32.mrb[0].mxu0 }
 0x161   :  { %v752_v42 = vpop.f32.mrb[2].mxu1  ;;  %v707_v45 = vpop.f32.mrb[1].mxu0  ;;  %v800_v48 = vpack.c.bf16 %v705_v43, %v705_v43  ;;  %v805_v49 = vpack.c.bf16 %v750_v41, %v750_v41 }
 0x162   :  { %v754_v44 = vpop.f32.mrb[3].mxu1  ;;  %5585 = vmatpush3.bf16.xpose.msra.mxu0 %v804_v40  ;;  %v709_v46 = vpop.f32.mrb[2].mxu0  ;;  %v801_v50 = vpack.c.bf16 %v707_v45, %v707_v45  ;;  %v806_v51 = vpack.c.bf16 %v752_v42, %v752_v42 }
 0x163   :  { %5590 = vmatprep.subr.bf16.mxu0 %v6663_v38  ;;  %v711_v47 = vpop.f32.mrb[3].mxu0  ;;  %v802_v52 = vpack.c.bf16 %v709_v46, %v709_v46  ;;  %v807_v53 = vpack.c.bf16 %v754_v44, %v754_v44  ;;  %v5853_v46 = vld [vmem:[#allocation5] ss:$8 sps:$4 sm:$0xff]  }
 0x164   :  { %v803_v54 = vpack.c.bf16 %v711_v47, %v711_v47  ;;  %v5855_v47 = vld [vmem:[#allocation5 + $0x4] ss:$8 sps:$4 sm:$0xff]  }
 0x169   :  { %5587 = vmatmul.mubr.bf16.vlgmr.msra.gmra.mrb[8].mxu0 %v800_v48  ;;  %v5858_v48 = vld [vmem:[#allocation5 + $0x14] ss:$8 sps:$4 sm:$0xff]  }
 0x16a   :  { %5591 = vmatpush3.bf16.xpose.msra.mxu0 %v805_v49  ;;  %5592 = vmatprep.mubr.msk.bf16.mxu0 %vm6664_vm0, %v6663_v38  ;;  %v5856_v49 = vld [vmem:[#allocation5 + $0x10] ss:$8 sps:$4 sm:$0xff]  }
 0x16b   :  { %5596 = vmatprep.subr.bf16.mxu0 %v6663_v38 }
 0x171   :  { %5593 = vmatmul.mubr.bf16.vlgmr.msra.gmra.mrb[12].mxu0 %v801_v50  ;;  %v5861_v50 = vld [vmem:[#allocation5 + $0x24] ss:$8 sps:$4 sm:$0xff]  }
 0x172   :  { %5597 = vmatpush3.bf16.xpose.msra.mxu0 %v806_v51  ;;  %5598 = vmatprep.mubr.msk.bf16.mxu0 %vm6664_vm0, %v6663_v38  ;;  %v5859_v51 = vld [vmem:[#allocation5 + $0x20] ss:$8 sps:$4 sm:$0xff]  }
 0x173   :  { %5602 = vmatprep.subr.bf16.mxu0 %v6663_v38 }
 0x179   :  { %5599 = vmatmul.mubr.bf16.vlgmr.msra.gmra.mrb[16].mxu0 %v802_v52  ;;  %v5864_v52 = vld [vmem:[#allocation5 + $0x34] ss:$8 sps:$4 sm:$0xff]  }
 0x17a   :  { %5603 = vmatpush3.bf16.xpose.msra.mxu0 %v807_v53  ;;  %5604 = vmatprep.mubr.msk.bf16.mxu0 %vm6664_vm0, %v6663_v38  ;;  %v5862_v53 = vld [vmem:[#allocation5 + $0x30] ss:$8 sps:$4 sm:$0xff]  }
 0x17b   :  { %1432 = vmatprep.subr.bf16.mxu0 %v5855_v47 }
 0x181   :  { %5605 = vmatmul.mubr.bf16.vlgmr.msra.gmra.mrb[20].mxu0 %v803_v54  ;;  %v5867_v54 = vld [vmem:[#allocation5 + $0x44] ss:$8 sps:$4 sm:$0xff]  }
 0x182   :  { %1433 = vmatpush1.bf16.msra.mxu0 %v5853_v46 }
 0x183   :  { %1434 = vmatprep.subr.bf16.mxu0 %v5858_v48 }
 0x186   :  { %1435 = vmatpush1.bf16.msra.mxu0 %v5856_v49 }
 0x187   :  { %1436 = vmatprep.subr.bf16.mxu0 %v5861_v50 }
 0x18a   :  { %1437 = vmatpush1.bf16.msra.mxu0 %v5859_v51 }
 0x18b   :  { %1438 = vmatprep.subr.bf16.mxu0 %v5864_v52 }
 0x18e   :  { %1439 = vmatpush1.bf16.msra.mxu0 %v5862_v53 }
 0x18f   :  { %1440 = vmatprep.subr.bf16.mxu0 %v5867_v54 }
 0x1a0   :  { %v791_v55 = vpop.f32.mrb[4].mxu0 }
 0x1a1   :  { %v808_v56 = vpack.c.bf16 %v791_v55, %v791_v55  ;;  %v6795_v57 = vpop.f32.mrb[5].mxu0  ;;  %v5865_v55 = vld [vmem:[#allocation5 + $0x40] ss:$8 sps:$4 sm:$0xff]  }
 0x1a2   :  { %v6797_v58 = vpop.f32.mrb[6].mxu0  ;;  %1441 = vmatpush1.bf16.msra.mxu0 %v5865_v55  ;;  %v1264_v55 = vlaneseq }
 0x1a3   :  { %v1050_v59 = vsel %vm1048_vm1, %v808_v56, 0  ;;  %v6800_v60 = vpop.f32.mrb[7].mxu0  ;;  %v5870_v56 = vld [vmem:[#allocation5 + $0x54] ss:$8 sps:$4 sm:$0xff]  }
 0x1a4   :  { %5609 = vmatpush3.bf16.msra.mxu1 %v1050_v59  ;;  %v5868_v59 = vld [vmem:[#allocation5 + $0x50] ss:$8 sps:$4 sm:$0xff]   ;;  %1442 = vmatprep.subr.bf16.mxu0 %v5870_v56  ;;  %v6856_v56 = vshrl.u32 %v1264_v55, 7 }
 0x1a5   :  { %5614 = vmatprep.subr.bf16.mxu1 %v6663_v38  ;;  %v5955_v55 = vld [vmem:[#allocation7 + $0x120] ss:$16 sps:$4 sm:$0xff]  }
 0x1a6   :  { %1443 = vmatpush1.bf16.msra.mxu0 %v5868_v59  ;;  %v6859_v59 = vsub.s32 0, %v6856_v56 }
 0x23c   :  { %v870_v62 = vpop.f32.mrb[8].mxu0 }
 0x23d   :  { %v871_v63 = vadd.f32 %v5122_v61, %v870_v62  ;;  %v5588_v0 = vpop.f32.mrb[9].mxu0  ;;  %v5873_v61 = vld [vmem:[#allocation5 + $0x64] ss:$8 sps:$4 sm:$0xff]   ;;  %v5871_v62 = vld [vmem:[#allocation5 + $0x60] ss:$8 sps:$4 sm:$0xff]  }
 0x23e   :  { %v873_v1 = vpop.f32.mrb[10].mxu0  ;;  %1444 = vmatprep.subr.bf16.mxu0 %v5873_v61  ;;  %v5874_v0 = vld [vmem:[#allocation5 + $0x70] ss:$8 sps:$4 sm:$0xff]   ;;  %v6864_v61 = vld [vmem:[%s7206_s6] sm:$0x3f] }
 0x23f   :  { %v5589_v2 = vpop.f32.mrb[11].mxu0  ;;  %v997_v3 = vsel %vm996_vm2, %v871_v63, -inf  ;;  %1445 = vmatpush1.bf16.msra.mxu0 %v5871_v62  ;;  %v5879_v1 = vld [vmem:[#allocation5 + $0x84] ss:$8 sps:$4 sm:$0xff]  }
 0x240   :  { %998 = vmax.xlane.f32.xlu0 %v997_v3  ;;  %v5877_v2 = vld [vmem:[#allocation5 + $0x80] ss:$8 sps:$4 sm:$0xff]  }
 0x241   :  { %v6869_v62 = vld [vmem:[%s7206_s6 + $0x8] sm:$0x3f] }
 0x244   :  { %v910_v5 = vpop.f32.mrb[12].mxu0 }
 0x245   :  { %v911_v6 = vadd.f32 %v5123_v4, %v910_v5  ;;  %v5594_v7 = vpop.f32.mrb[13].mxu0 }
 0x246   :  { %v913_v8 = vpop.f32.mrb[14].mxu0 }
 0x247   :  { %v5595_v9 = vpop.f32.mrb[15].mxu0  ;;  %v1000_v10 = vsel %vm996_vm2, %v911_v6, -inf }
 0x248   :  { %1001 = vmax.xlane.f32.xlu0 %v1000_v10 }
 0x24c   :  { %v950_v12 = vpop.f32.mrb[16].mxu0 }
 0x24d   :  { %v951_v13 = vadd.f32 %v5124_v11, %v950_v12  ;;  %v5600_v14 = vpop.f32.mrb[17].mxu0  ;;  %v810_v12 = vpack.c.bf16 %v6797_v58, %v6797_v58 }
 0x24e   :  { %v953_v15 = vpop.f32.mrb[18].mxu0 }
 0x24f   :  { %v5601_v16 = vpop.f32.mrb[19].mxu0  ;;  %v1003_v17 = vsel %vm996_vm2, %v951_v13, -inf  ;;  %v1142_v14 = vsel %vm1048_vm1, %v810_v12, 0 }
 0x250   :  { %1004 = vmax.xlane.f32.xlu1 %v1003_v17  ;;  %v811_v17 = vpack.c.bf16 %v6800_v60, %v6800_v60  ;;  %v5883_v60 = vld [vmem:[#allocation5 + $0xa0] ss:$8 sps:$4 sm:$0xff]  }
 0x254   :  { %v990_v19 = vpop.f32.mrb[20].mxu0 }
 0x255   :  { %v991_v20 = vadd.f32 %v5125_v18, %v990_v19  ;;  %v5606_v21 = vpop.f32.mrb[21].mxu0  ;;  %v1188_v19 = vsel %vm1048_vm1, %v811_v17, 0 }
 0x256   :  { %v993_v22 = vpop.f32.mrb[22].mxu0 }
 0x257   :  { %v5607_v23 = vpop.f32.mrb[23].mxu0  ;;  %v1006_v24 = vsel %vm996_vm2, %v991_v20, -inf }
 0x258   :  { %1007 = vmax.xlane.f32.xlu1 %v1006_v24  ;;  %v5882_v23 = vld [vmem:[#allocation5 + $0x94] ss:$8 sps:$4 sm:$0xff]   ;;  %v5880_v24 = vld [vmem:[#allocation5 + $0x90] ss:$8 sps:$4 sm:$0xff]  }
 0x2cd   :  { %v999_v25 = vpop.xlane.xlu0 %998 }
 0x2ce   :  { %v1009_v26 = vsub.f32 %v871_v63, %v999_v25  ;;  %v5876_v63 = vld [vmem:[#allocation5 + $0x74] ss:$8 sps:$4 sm:$0xff]   ;;  %v5885_v25 = vld [vmem:[#allocation5 + $0xa4] ss:$8 sps:$4 sm:$0xff]  }
 0x2cf   :  { %1446 = vmatprep.subr.bf16.mxu0 %v5876_v63  ;;  %v1267_v63 = vrot.slane %v6864_v61, %v6859_v59 }
 0x2d0   :  { %v1013_v27 = vmul.f32 1.442695, %v1009_v26  ;;  %1447 = vmatpush1.bf16.msra.mxu0 %v5874_v0  ;;  %v5888_v26 = vld [vmem:[#allocation5 + $0xb4] ss:$8 sps:$4 sm:$0xff]   ;;  %v1271_v0 = vrot.slane %v6869_v62, %v6859_v59 }
 0x2d1   :  { %1448 = vmatprep.subr.bf16.mxu0 %v5879_v1 }
 0x2d2   :  { %6477 = vpow2.f32 %v1013_v27  ;;  %v5886_v27 = vld [vmem:[#allocation5 + $0xb0] ss:$8 sps:$4 sm:$0xff]  }
 0x2d4   :  { %1449 = vmatpush1.bf16.msra.mxu0 %v5877_v2 }
 0x2d5   :  { %v1002_v28 = vpop.xlane.xlu0 %1001  ;;  %1450 = vmatprep.subr.bf16.mxu0 %v5882_v23  ;;  %v5907_v23 = vld [vmem:[#allocation7 + $0x20] ss:$16 sps:$4 sm:$0xff]  }
 0x2d6   :  { %v1010_v29 = vsub.f32 %v911_v6, %v1002_v28  ;;  %v809_v6 = vpack.c.bf16 %v6795_v57, %v6795_v57  ;;  %v5889_v28 = vld [vmem:[#allocation5 + $0xc0] ss:$8 sps:$4 sm:$0xff]  }
 0x2d8   :  { %v1015_v30 = vmul.f32 1.442695, %v1010_v29  ;;  %v1096_v9 = vsel %vm1048_vm1, %v809_v6, 0  ;;  %1451 = vmatpush1.bf16.msra.mxu0 %v5880_v24  ;;  %v5891_v29 = vld [vmem:[#allocation5 + $0xc4] ss:$8 sps:$4 sm:$0xff]  }
 0x2d9   :  { %1452 = vmatprep.subr.bf16.mxu0 %v5885_v25  ;;  %v6525_v6 = vld [vmem:[%s7200_s0] sm:$0xff]  ;;  %v5910_v24 = vld [vmem:[#allocation7 + $0x28] ss:$16 sps:$4 sm:$0xff]   ;;  %v5918_v25 = vld [vmem:[#allocation7 + $0x4c] ss:$16 sps:$4 sm:$0xff]  }
 0x2da   :  { %6479 = vpow2.f32 %v1015_v30  ;;  %v5894_v30 = vld [vmem:[#allocation5 + $0xd4] ss:$8 sps:$4 sm:$0xff]  }
 0x2dc   :  { %v6478_v31 = vpop.eup %6477  ;;  %1453 = vmatpush1.bf16.msra.mxu0 %v5883_v60  ;;  %v5915_v60 = vld [vmem:[#allocation7 + $0x44] ss:$16 sps:$4 sm:$0xff]  }
 0x2dd   :  { %v1005_v32 = vpop.xlane.xlu1 %1004  ;;  %v1021_v33 = vsel %vm996_vm2, %v6478_v31, 0.0  ;;  %1454 = vmatprep.subr.bf16.mxu0 %v5888_v26  ;;  %v5913_v26 = vld [vmem:[#allocation7 + $0x40] ss:$16 sps:$4 sm:$0xff]  }
 0x2de   :  { %v1011_v34 = vsub.f32 %v951_v13, %v1005_v32  ;;  %1022 = vadd.xlane.f32.xlu0 %v1021_v33  ;;  %v5895_v32 = vld [vmem:[#allocation5 + $0xe0] ss:$8 sps:$4 sm:$0xff]   ;;  %v5897_v33 = vld [vmem:[#allocation5 + $0xe4] ss:$8 sps:$4 sm:$0xff]  }
 0x2e0   :  { %v1017_v35 = vmul.f32 1.442695, %v1011_v34  ;;  %1455 = vmatpush1.bf16.msra.mxu0 %v5886_v27  ;;  %v5900_v34 = vld [vmem:[#allocation5 + $0xf4] ss:$8 sps:$4 sm:$0xff]   ;;  %v5916_v27 = vld [vmem:[#allocation7 + $0x48] ss:$16 sps:$4 sm:$0xff]  }
 0x2e1   :  { %1456 = vmatprep.subr.bf16.mxu0 %v5891_v29  ;;  %v5924_v29 = vld [vmem:[#allocation7 + $0x6c] ss:$16 sps:$4 sm:$0xff]  }
 0x2e2   :  { %6481 = vpow2.f32 %v1017_v35  ;;  %v5898_v35 = vld [vmem:[#allocation5 + $0xf0] ss:$8 sps:$4 sm:$0xff]  }
 0x2e4   :  { %v6820_v36 = vpop.eup %6479  ;;  %1457 = vmatpush1.bf16.msra.mxu0 %v5889_v28  ;;  %v5921_v28 = vld [vmem:[#allocation7 + $0x64] ss:$16 sps:$4 sm:$0xff]  }
 0x2e5   :  { %v1008_v37 = vpop.xlane.xlu1 %1007  ;;  %v1024_v39 = vsel %vm996_vm2, %v6820_v36, 0.0  ;;  %1458 = vmatprep.subr.bf16.mxu0 %v5894_v30  ;;  %v5919_v30 = vld [vmem:[#allocation7 + $0x60] ss:$16 sps:$4 sm:$0xff]  }
 0x2e6   :  { %v1012_v40 = vsub.f32 %v991_v20, %v1008_v37  ;;  %1025 = vadd.xlane.f32.xlu1 %v1024_v39 }
 0x2e8   :  { %v1019_v41 = vmul.f32 1.442695, %v1012_v40 }
 0x2ea   :  { %6483 = vpow2.f32 %v1019_v41 }
 0x2ec   :  { %v6824_v42 = vpop.eup %6481 }
 0x2ed   :  { %v1027_v43 = vsel %vm996_vm2, %v6824_v42, 0.0 }
 0x2ee   :  { %1028 = vadd.xlane.f32.xlu0 %v1027_v43 }
 0x2f4   :  { %v6828_v44 = vpop.eup %6483 }
 0x2f5   :  { %v1030_v45 = vsel %vm996_vm2, %v6828_v44, 0.0 }
 0x2f6   :  { %1031 = vadd.xlane.f32.xlu1 %v1030_v45 }
 0x36b   :  { %v1023_v3 = vpop.xlane.xlu0 %1022 }
 0x36c   :  { %6485 = vrcp.f32 %v1023_v3 }
 0x373   :  { %v1026_v4 = vpop.xlane.xlu1 %1025 }
 0x374   :  { %6487 = vrcp.f32 %v1026_v4 }
 0x376   :  { %v6486_v5 = vpop.eup %6485 }
 0x377   :  { %v1037_v7 = vmul.f32 %v6486_v5, %v6478_v31  ;;  %v5892_v31 = vld [vmem:[#allocation5 + $0xd0] ss:$8 sps:$4 sm:$0xff]  }
 0x378   :  { %1459 = vmatpush1.bf16.msra.mxu0 %v5892_v31  ;;  %v5922_v31 = vld [vmem:[#allocation7 + $0x68] ss:$16 sps:$4 sm:$0xff]  }
 0x379   :  { %v1041_v8 = vpack.c.bf16 %v1037_v7, %v1037_v7  ;;  %1460 = vmatprep.subr.bf16.mxu0 %v5897_v33  ;;  %v5930_v33 = vld [vmem:[#allocation7 + $0x8c] ss:$16 sps:$4 sm:$0xff]  }
 0x37b   :  { %5611 = vmatmul.mubr.msk.bf16.vlgmr.msra.gmra.mrb[4].mxu1 %vm996_vm2, %v1041_v8  ;;  %v1029_v10 = vpop.xlane.xlu0 %1028 }
 0x37c   :  { %5615 = vmatpush3.bf16.msra.mxu1 %v1096_v9  ;;  %6489 = vrcp.f32 %v1029_v10  ;;  %5616 = vmatprep.mubr.msk.bf16.mxu1 %vm6664_vm0, %v6663_v38  ;;  %v6526_v10 = vld [vmem:[%s7200_s0 + $0x8] sm:$0xff] }
 0x37d   :  { %5620 = vmatprep.subr.bf16.mxu1 %v6663_v38  ;;  %1461 = vmatpush1.bf16.msra.mxu0 %v5895_v32  ;;  %v5927_v32 = vld [vmem:[#allocation7 + $0x84] ss:$16 sps:$4 sm:$0xff]  }
 0x37e   :  { %v6488_v11 = vpop.eup %6487  ;;  %1462 = vmatprep.subr.bf16.mxu0 %v5900_v34  ;;  %v5925_v34 = vld [vmem:[#allocation7 + $0x80] ss:$16 sps:$4 sm:$0xff]  }
 0x37f   :  { %v1038_v57 = vmul.f32 %v6488_v11, %v6820_v36 }
 0x381   :  { %v1042_v13 = vpack.c.bf16 %v1038_v57, %v1038_v57  ;;  %1463 = vmatpush1.bf16.msra.mxu0 %v5898_v35  ;;  %v6527_v57 = vld [vmem:[%s7200_s0 + $0x10] sm:$0xff]  ;;  %v5928_v35 = vld [vmem:[#allocation7 + $0x88] ss:$16 sps:$4 sm:$0xff]  }
 0x383   :  { %5617 = vmatmul.mubr.msk.bf16.vlgmr.msra.gmra.mrb[8].mxu1 %vm996_vm2, %v1042_v13  ;;  %v1032_v15 = vpop.xlane.xlu1 %1031 }
 0x384   :  { %5621 = vmatpush3.bf16.msra.mxu1 %v1142_v14  ;;  %6491 = vrcp.f32 %v1032_v15  ;;  %5622 = vmatprep.mubr.msk.bf16.mxu1 %vm6664_vm0, %v6663_v38  ;;  %v6528_v14 = vld [vmem:[%s7200_s0 + $0x18] sm:$0xff] }
 0x385   :  { %5626 = vmatprep.subr.bf16.mxu1 %v6663_v38 }
 0x386   :  { %v6490_v16 = vpop.eup %6489 }
 0x387   :  { %v1039_v58 = vmul.f32 %v6490_v16, %v6824_v42 }
 0x389   :  { %v1043_v18 = vpack.c.bf16 %v1039_v58, %v1039_v58  ;;  %v5901_v58 = vld [vmem:[#allocation7] ss:$16 sps:$4 sm:$0xff]  }
 0x38b   :  { %5623 = vmatmul.mubr.msk.bf16.vlgmr.msra.gmra.mrb[12].mxu1 %vm996_vm2, %v1043_v18  ;;  %v5903_v18 = vld [vmem:[#allocation7 + $0x4] ss:$16 sps:$4 sm:$0xff]  }
 0x38c   :  { %5627 = vmatpush3.bf16.msra.mxu1 %v1188_v19  ;;  %5628 = vmatprep.mubr.msk.bf16.mxu1 %vm6664_vm0, %v6663_v38  ;;  %v5904_v19 = vld [vmem:[#allocation7 + $0x8] ss:$16 sps:$4 sm:$0xff]  }
 0x38d   :  { %1922 = vmatprep.subr.bf16.mxu1 %v5903_v18  ;;  %v5967_v18 = vld [vmem:[#allocation7 + $0x160] ss:$16 sps:$4 sm:$0xff]  }
 0x38e   :  { %v6492_v20 = vpop.eup %6491 }
 0x38f   :  { %v1040_v21 = vmul.f32 %v6492_v20, %v6828_v44  ;;  %v5906_v20 = vld [vmem:[#allocation7 + $0xc] ss:$16 sps:$4 sm:$0xff]  }
 0x390   :  { %1965 = vmatprep.subr.bf16.mxu0 %v5906_v20  ;;  %v5975_v20 = vld [vmem:[#allocation7 + $0x184] ss:$16 sps:$4 sm:$0xff]  }
 0x391   :  { %v1044_v22 = vpack.c.bf16 %v1040_v21, %v1040_v21  ;;  %v5909_v21 = vld [vmem:[#allocation7 + $0x24] ss:$16 sps:$4 sm:$0xff]  }
 0x393   :  { %5629 = vmatmul.mubr.msk.bf16.vlgmr.msra.gmra.mrb[16].mxu1 %vm996_vm2, %v1044_v22  ;;  %v5912_v22 = vld [vmem:[#allocation7 + $0x2c] ss:$16 sps:$4 sm:$0xff]  }
 0x394   :  { %1923 = vmatpush1.bf16.msra.mxu1 %v5901_v58  ;;  %v5972_v58 = vld [vmem:[#allocation7 + $0x16c] ss:$16 sps:$4 sm:$0xff]  }
 0x395   :  { %1924 = vmatprep.subr.bf16.mxu1 %v5909_v21  ;;  %v5978_v21 = vld [vmem:[#allocation7 + $0x18c] ss:$16 sps:$4 sm:$0xff]  }
 0x398   :  { %1925 = vmatpush1.bf16.msra.mxu1 %v5907_v23  ;;  %v5976_v23 = vld [vmem:[#allocation7 + $0x188] ss:$16 sps:$4 sm:$0xff]  }
 0x399   :  { %1926 = vmatprep.subr.bf16.mxu1 %v5915_v60  ;;  %v5984_v60 = vld [vmem:[#allocation7 + $0x1ac] ss:$16 sps:$4 sm:$0xff]  }
 0x39c   :  { %1927 = vmatpush1.bf16.msra.mxu1 %v5913_v26  ;;  %v5982_v26 = vld [vmem:[#allocation7 + $0x1a8] ss:$16 sps:$4 sm:$0xff]  }
 0x39d   :  { %1928 = vmatprep.subr.bf16.mxu1 %v5921_v28  ;;  %v5987_v28 = vld [vmem:[#allocation7 + $0x1c4] ss:$16 sps:$4 sm:$0xff]  }
 0x3a0   :  { %1929 = vmatpush1.bf16.msra.mxu1 %v5919_v30  ;;  %v5990_v30 = vld [vmem:[#allocation7 + $0x1cc] ss:$16 sps:$4 sm:$0xff]  }
 0x3a1   :  { %1930 = vmatprep.subr.bf16.mxu1 %v5927_v32  ;;  %v5996_v32 = vld [vmem:[#allocation7 + $0x1ec] ss:$16 sps:$4 sm:$0xff]  }
 0x3a4   :  { %1931 = vmatpush1.bf16.msra.mxu1 %v5925_v34  ;;  %v5994_v34 = vld [vmem:[#allocation7 + $0x1e8] ss:$16 sps:$4 sm:$0xff]  }
 0x44e   :  { %v1086_v36 = vpop.f32.mrb[4].mxu1 }
 0x44f   :  { %v5612_v37 = vpop.f32.mrb[5].mxu1 }
 0x450   :  { %v1089_v39 = vpop.f32.mrb[6].mxu1  ;;  %v5936_v37 = vld [vmem:[#allocation7 + $0xac] ss:$16 sps:$4 sm:$0xff]  }
 0x451   :  { %v5613_v40 = vpop.f32.mrb[7].mxu1  ;;  %v5931_v39 = vld [vmem:[#allocation7 + $0xa0] ss:$16 sps:$4 sm:$0xff]  }
 0x452   :  { %v5934_v40 = vld [vmem:[#allocation7 + $0xa8] ss:$16 sps:$4 sm:$0xff]  }
 0x456   :  { %v1132_v41 = vpop.f32.mrb[8].mxu1 }
 0x457   :  { %v5618_v42 = vpop.f32.mrb[9].mxu1 }
 0x458   :  { %v1135_v43 = vpop.f32.mrb[10].mxu1  ;;  %v5942_v42 = vld [vmem:[#allocation7 + $0xcc] ss:$16 sps:$4 sm:$0xff]  }
 0x459   :  { %v5619_v44 = vpop.f32.mrb[11].mxu1  ;;  %v5937_v43 = vld [vmem:[#allocation7 + $0xc0] ss:$16 sps:$4 sm:$0xff]  }
 0x45a   :  { %v5940_v44 = vld [vmem:[#allocation7 + $0xc8] ss:$16 sps:$4 sm:$0xff]  }
 0x45e   :  { %v1178_v45 = vpop.f32.mrb[12].mxu1 }
 0x45f   :  { %v1230_v46 = vpack.c.bf16 %v1178_v45, %v1086_v36  ;;  %v5624_v47 = vpop.f32.mrb[13].mxu1  ;;  %v5933_v36 = vld [vmem:[#allocation7 + $0xa4] ss:$16 sps:$4 sm:$0xff]  }
 0x460   :  { %v1181_v48 = vpop.f32.mrb[14].mxu1  ;;  %1932 = vmatprep.subr.bf16.mxu1 %v5933_v36  ;;  %v5945_v45 = vld [vmem:[#allocation7 + $0xe4] ss:$16 sps:$4 sm:$0xff]   ;;  %v5943_v47 = vld [vmem:[#allocation7 + $0xe0] ss:$16 sps:$4 sm:$0xff]  }
 0x461   :  { %v5625_v49 = vpop.f32.mrb[15].mxu1  ;;  %1933 = vmatpush1.bf16.msra.mxu1 %v5931_v39  ;;  %v5946_v48 = vld [vmem:[#allocation7 + $0xe8] ss:$16 sps:$4 sm:$0xff]  }
 0x462   :  { %v5951_v49 = vld [vmem:[#allocation7 + $0x104] ss:$16 sps:$4 sm:$0xff]  }
 0x466   :  { %v1224_v50 = vpop.f32.mrb[16].mxu1 }
 0x467   :  { %v1231_v51 = vpack.c.bf16 %v1224_v50, %v1132_v41  ;;  %v5630_v52 = vpop.f32.mrb[17].mxu1  ;;  %v5939_v41 = vld [vmem:[#allocation7 + $0xc4] ss:$16 sps:$4 sm:$0xff]   ;;  %v5954_v50 = vld [vmem:[#allocation7 + $0x10c] ss:$16 sps:$4 sm:$0xff]  }
 0x468   :  { %v1227_v53 = vpop.f32.mrb[18].mxu1  ;;  %1934 = vmatprep.subr.bf16.mxu1 %v5939_v41  ;;  %v5952_v52 = vld [vmem:[#allocation7 + $0x108] ss:$16 sps:$4 sm:$0xff]  }
 0x469   :  { %v5631_v54 = vpop.f32.mrb[19].mxu1  ;;  %1464 = vmatprep.mubr.bf16.mxu0 %v1231_v51  ;;  %1935 = vmatpush1.bf16.msra.mxu1 %v5937_v43  ;;  %v5949_v51 = vld [vmem:[#allocation7 + $0x100] ss:$16 sps:$4 sm:$0xff]   ;;  %v5957_v53 = vld [vmem:[#allocation7 + $0x124] ss:$16 sps:$4 sm:$0xff]   ;;  %v6920_v43 = vsub.s32 1, %v6856_v56 }
 0x46a   :  { %1465 = vmatmul.mubr.bf16.vlgmr.msra.gmra.mrb[24].mxu0 %v1230_v46  ;;  %v5948_v46 = vld [vmem:[#allocation7 + $0xec] ss:$16 sps:$4 sm:$0xff]   ;;  %1936 = vmatprep.subr.bf16.mxu1 %v5945_v45 }
 0x46b   :  { %1966 = vmatpush1.bf16.msra.mxu0 %v5904_v19  ;;  %v5960_v54 = vld [vmem:[#allocation7 + $0x12c] ss:$16 sps:$4 sm:$0xff]   ;;  %v5970_v19 = vld [vmem:[#allocation7 + $0x168] ss:$16 sps:$4 sm:$0xff]   ;;  %v1519_v45 = vrot.slane %v6869_v62, %v6920_v43 }
 0x46c   :  { %1967 = vmatprep.subr.bf16.mxu0 %v5912_v22  ;;  %v5973_v22 = vld [vmem:[#allocation7 + $0x180] ss:$16 sps:$4 sm:$0xff]  }
 0x46d   :  { %1937 = vmatpush1.bf16.msra.mxu1 %v5943_v47 }
 0x46e   :  { %1938 = vmatprep.subr.bf16.mxu1 %v5951_v49 }
 0x46f   :  { %1968 = vmatpush1.bf16.msra.mxu0 %v5910_v24  ;;  %v5981_v24 = vld [vmem:[#allocation7 + $0x1a4] ss:$16 sps:$4 sm:$0xff]  }
 0x470   :  { %1969 = vmatprep.subr.bf16.mxu0 %v5918_v25  ;;  %v5979_v25 = vld [vmem:[#allocation7 + $0x1a0] ss:$16 sps:$4 sm:$0xff]  }
 0x471   :  { %1939 = vmatpush1.bf16.msra.mxu1 %v5949_v51 }
 0x472   :  { %1940 = vmatprep.subr.bf16.mxu1 %v5957_v53 }
 0x473   :  { %1970 = vmatpush1.bf16.msra.mxu0 %v5916_v27  ;;  %v5985_v27 = vld [vmem:[#allocation7 + $0x1c0] ss:$16 sps:$4 sm:$0xff]  }
 0x474   :  { %1971 = vmatprep.subr.bf16.mxu0 %v5924_v29  ;;  %v5988_v29 = vld [vmem:[#allocation7 + $0x1c8] ss:$16 sps:$4 sm:$0xff]  }
 0x475   :  { %1941 = vmatpush1.bf16.msra.mxu1 %v5955_v55 }
 0x477   :  { %1972 = vmatpush1.bf16.msra.mxu0 %v5922_v31  ;;  %v5993_v31 = vld [vmem:[#allocation7 + $0x1e4] ss:$16 sps:$4 sm:$0xff]  }
 0x478   :  { %1973 = vmatprep.subr.bf16.mxu0 %v5930_v33  ;;  %v5991_v33 = vld [vmem:[#allocation7 + $0x1e0] ss:$16 sps:$4 sm:$0xff]  }
 0x47b   :  { %1974 = vmatpush1.bf16.msra.mxu0 %v5928_v35  ;;  %v5999_v35 = vld [vmem:[#allocation8 + $0x4] ss:$8 sps:$4 sm:$0xff]  }
 0x47c   :  { %1975 = vmatprep.subr.bf16.mxu0 %v5936_v37 }
 0x47f   :  { %1976 = vmatpush1.bf16.msra.mxu0 %v5934_v40 }
 0x480   :  { %1977 = vmatprep.subr.bf16.mxu0 %v5942_v42 }
 0x483   :  { %1978 = vmatpush1.bf16.msra.mxu0 %v5940_v44  ;;  %v6923_v44 = vsub.s32 2, %v6856_v56 }
 0x484   :  { %1979 = vmatprep.subr.bf16.mxu0 %v5948_v46  ;;  %v1515_v46 = vrot.slane %v6864_v61, %v6920_v43 }
 0x485   :  { %v1531_v51 = vrot.slane %v6869_v62, %v6923_v44 }
 0x487   :  { %1980 = vmatpush1.bf16.msra.mxu0 %v5946_v48 }
 0x488   :  { %1981 = vmatprep.subr.bf16.mxu0 %v5954_v50 }
 0x48b   :  { %1982 = vmatpush1.bf16.msra.mxu0 %v5952_v52  ;;  %v1527_v52 = vrot.slane %v6864_v61, %v6923_v44 }
 0x48c   :  { %1983 = vmatprep.subr.bf16.mxu0 %v5960_v54 }
 0x53d   :  { %v1466_v1 = vpop.f32.mrb[24].mxu0 }
 0x53e   :  { %v1467_v2 = vadd.f32 %v1466_v1, %v1267_v63  ;;  %v1468_v3 = vpop.f32.mrb[25].mxu0 }
 0x53f   :  { %v1469_v4 = vadd.f32 %v1468_v3, %v1271_v0  ;;  %v1470_v5 = vpop.f32.mrb[26].mxu0 }
 0x540   :  { %v6878_v7 = vadd.f32 %v6525_v6, %v1467_v2  ;;  %v1471_v8 = vadd.f32 %v1470_v5, %v1267_v63  ;;  %v1472_v9 = vpop.f32.mrb[27].mxu0  ;;  %v5958_v63 = vld [vmem:[#allocation7 + $0x128] ss:$16 sps:$4 sm:$0xff]  }
 0x541   :  { %v6883_v11 = vadd.f32 %v6526_v10, %v1469_v4  ;;  %v1473_v12 = vadd.f32 %v1472_v9, %v1271_v0  ;;  %1984 = vmatpush1.bf16.msra.mxu0 %v5958_v63 }
 0x542   :  { %v6888_v13 = vadd.f32 %v6527_v57, %v1471_v8 }
 0x543   :  { %v6893_v15 = vadd.f32 %v6528_v14, %v1473_v12  ;;  %v1479_v16 = vadd.f32 %v6883_v11, %v6878_v7  ;;  %v5966_v14 = vld [vmem:[#allocation7 + $0x14c] ss:$16 sps:$4 sm:$0xff]  }
 0x544   :  { %1985 = vmatprep.subr.bf16.mxu0 %v5966_v14  ;;  %v6011_v14 = vld [vmem:[#allocation8 + $0x44] ss:$8 sps:$4 sm:$0xff]  }
 0x545   :  { %1480 = vadd.xlane.f32.xlu0 %v1479_v16  ;;  %v1482_v17 = vadd.f32 %v6893_v15, %v6888_v13  ;;  %v5964_v16 = vld [vmem:[#allocation7 + $0x148] ss:$16 sps:$4 sm:$0xff]  }
 0x546   :  { %1986 = vmatpush1.bf16.msra.mxu0 %v5964_v16  ;;  %v6014_v16 = vld [vmem:[#allocation8 + $0x54] ss:$8 sps:$4 sm:$0xff]  }
 0x547   :  { %1483 = vadd.xlane.f32.xlu1 %v1482_v17  ;;  %v5969_v17 = vld [vmem:[#allocation7 + $0x164] ss:$16 sps:$4 sm:$0xff]   ;;  %1987 = vmatprep.subr.bf16.mxu0 %v5972_v58 }
 0x548   :  { %v6017_v58 = vld [vmem:[#allocation8 + $0x64] ss:$8 sps:$4 sm:$0xff]  }
 0x54a   :  { %1988 = vmatpush1.bf16.msra.mxu0 %v5970_v19  ;;  %v6020_v19 = vld [vmem:[#allocation8 + $0x74] ss:$8 sps:$4 sm:$0xff]  }
 0x54b   :  { %1989 = vmatprep.subr.bf16.mxu0 %v5978_v21  ;;  %v6023_v21 = vld [vmem:[#allocation8 + $0x84] ss:$8 sps:$4 sm:$0xff]  }
 0x54e   :  { %1990 = vmatpush1.bf16.msra.mxu0 %v5976_v23  ;;  %v6026_v23 = vld [vmem:[#allocation8 + $0x94] ss:$8 sps:$4 sm:$0xff]  }
 0x54f   :  { %1991 = vmatprep.subr.bf16.mxu0 %v5984_v60  ;;  %v6029_v60 = vld [vmem:[#allocation8 + $0xa4] ss:$8 sps:$4 sm:$0xff]  }
 0x552   :  { %1992 = vmatpush1.bf16.msra.mxu0 %v5982_v26  ;;  %v6032_v26 = vld [vmem:[#allocation8 + $0xb4] ss:$8 sps:$4 sm:$0xff]  }
 0x553   :  { %1993 = vmatprep.subr.bf16.mxu0 %v5990_v30  ;;  %v6038_v30 = vld [vmem:[#allocation8 + $0xd4] ss:$8 sps:$4 sm:$0xff]  }
 0x556   :  { %1994 = vmatpush1.bf16.msra.mxu0 %v5988_v29  ;;  %v6033_v29 = vld [vmem:[#allocation8 + $0xc0] ss:$8 sps:$4 sm:$0xff]  }
 0x557   :  { %1995 = vmatprep.subr.bf16.mxu0 %v5996_v32  ;;  %v6041_v32 = vld [vmem:[#allocation8 + $0xe4] ss:$8 sps:$4 sm:$0xff]  }
 0x55a   :  { %1996 = vmatpush1.bf16.msra.mxu0 %v5994_v34  ;;  %v6044_v34 = vld [vmem:[#allocation8 + $0xf4] ss:$8 sps:$4 sm:$0xff]  }
 0x5d2   :  { %v1481_v0 = vpop.xlane.xlu0 %1480 }
 0x5d3   :  { %v1486_v1 = vmul.f32 0.00390625, %v1481_v0 }
 0x5d4   :  { %v1484_v2 = vpop.xlane.xlu1 %1483 }
 0x5d5   :  { %v6900_v3 = vsub.f32 %v6878_v7, %v1486_v1  ;;  %v6903_v4 = vsub.f32 %v6883_v11, %v1486_v1  ;;  %v1487_v5 = vmul.f32 0.00390625, %v1484_v2 }
 0x5d7   :  { %v6906_v6 = vsub.f32 %v6888_v13, %v1487_v5  ;;  %v6909_v8 = vsub.f32 %v6893_v15, %v1487_v5  ;;  %v1492_v9 = vmul.f32 %v6900_v3, %v6900_v3  ;;  %v1493_v10 = vmul.f32 %v6903_v4, %v6903_v4  ;;  %v5963_v13 = vld [vmem:[#allocation7 + $0x144] ss:$16 sps:$4 sm:$0xff]   ;;  %v5961_v15 = vld [vmem:[#allocation7 + $0x140] ss:$16 sps:$4 sm:$0xff]  }
 0x5d8   :  { %1942 = vmatprep.subr.bf16.mxu1 %v5963_v13  ;;  %v6006_v13 = vld [vmem:[#allocation8 + $0x30] ss:$8 sps:$4 sm:$0xff]  }
 0x5d9   :  { %v1496_v12 = vadd.f32 %v1493_v10, %v1492_v9  ;;  %v1494_v7 = vmul.f32 %v6906_v6, %v6906_v6  ;;  %v1495_v11 = vmul.f32 %v6909_v8, %v6909_v8  ;;  %1943 = vmatpush1.bf16.msra.mxu1 %v5961_v15  ;;  %v5997_v10 = vld [vmem:[#allocation8] ss:$8 sps:$4 sm:$0xff]  }
 0x5da   :  { %1944 = vmatprep.subr.bf16.mxu1 %v5969_v17  ;;  %v6009_v15 = vld [vmem:[#allocation8 + $0x40] ss:$8 sps:$4 sm:$0xff]   ;;  %v6012_v17 = vld [vmem:[#allocation8 + $0x50] ss:$8 sps:$4 sm:$0xff]  }
 0x5db   :  { %1497 = vadd.xlane.f32.xlu0 %v1496_v12  ;;  %v1499_v57 = vadd.f32 %v1495_v11, %v1494_v7  ;;  %v6000_v12 = vld [vmem:[#allocation8 + $0x10] ss:$8 sps:$4 sm:$0xff]   ;;  %v6005_v7 = vld [vmem:[#allocation8 + $0x24] ss:$8 sps:$4 sm:$0xff]   ;;  %v6003_v11 = vld [vmem:[#allocation8 + $0x20] ss:$8 sps:$4 sm:$0xff]  }
 0x5dd   :  { %1500 = vadd.xlane.f32.xlu1 %v1499_v57  ;;  %1945 = vmatpush1.bf16.msra.mxu1 %v5967_v18  ;;  %v6008_v57 = vld [vmem:[#allocation8 + $0x34] ss:$8 sps:$4 sm:$0xff]   ;;  %v6015_v18 = vld [vmem:[#allocation8 + $0x60] ss:$8 sps:$4 sm:$0xff]  }
 0x5de   :  { %1946 = vmatprep.subr.bf16.mxu1 %v5975_v20  ;;  %v6018_v20 = vld [vmem:[#allocation8 + $0x70] ss:$8 sps:$4 sm:$0xff]  }
 0x5e1   :  { %1947 = vmatpush1.bf16.msra.mxu1 %v5973_v22  ;;  %v6021_v22 = vld [vmem:[#allocation8 + $0x80] ss:$8 sps:$4 sm:$0xff]  }
 0x5e2   :  { %1948 = vmatprep.subr.bf16.mxu1 %v5981_v24  ;;  %v6024_v24 = vld [vmem:[#allocation8 + $0x90] ss:$8 sps:$4 sm:$0xff]  }
 0x5e5   :  { %1949 = vmatpush1.bf16.msra.mxu1 %v5979_v25  ;;  %v6027_v25 = vld [vmem:[#allocation8 + $0xa0] ss:$8 sps:$4 sm:$0xff]  }
 0x5e6   :  { %1950 = vmatprep.subr.bf16.mxu1 %v5987_v28  ;;  %v6035_v28 = vld [vmem:[#allocation8 + $0xc4] ss:$8 sps:$4 sm:$0xff]  }
 0x5e9   :  { %1951 = vmatpush1.bf16.msra.mxu1 %v5985_v27  ;;  %v6030_v27 = vld [vmem:[#allocation8 + $0xb0] ss:$8 sps:$4 sm:$0xff]  }
 0x5ea   :  { %1952 = vmatprep.subr.bf16.mxu1 %v5993_v31  ;;  %v6036_v31 = vld [vmem:[#allocation8 + $0xd0] ss:$8 sps:$4 sm:$0xff]  }
 0x5ed   :  { %1953 = vmatpush1.bf16.msra.mxu1 %v5991_v33  ;;  %v6039_v33 = vld [vmem:[#allocation8 + $0xe0] ss:$8 sps:$4 sm:$0xff]  }
 0x5ee   :  { %2412 = vmatprep.subr.bf16.mxu1 %v5999_v35  ;;  %v6042_v35 = vld [vmem:[#allocation8 + $0xf0] ss:$8 sps:$4 sm:$0xff]  }
 0x668   :  { %v1498_v36 = vpop.xlane.xlu0 %1497 }
 0x669   :  { %v1502_v37 = vmul.f32 0.00390625, %v1498_v36  ;;  %v6047_v36 = vld [vmem:[#allocation8 + $0x104] ss:$8 sps:$4 sm:$0xff]  }
 0x66a   :  { %v1501_v39 = vpop.xlane.xlu1 %1500 }
 0x66b   :  { %v1504_v40 = vadd.f32 1e-05, %v1502_v37  ;;  %v1503_v41 = vmul.f32 0.00390625, %v1501_v39 }
 0x66d   :  { %6493 = vrsqrt.f32 %v1504_v40  ;;  %v1505_v42 = vadd.f32 1e-05, %v1503_v41 }
 0x66f   :  { %6495 = vrsqrt.f32 %v1505_v42 }
 0x677   :  { %v6494_v47 = vpop.eup %6493 }
 0x678   :  { %v1508_v48 = vmul.f32 %v6494_v47, %v6900_v3  ;;  %v1509_v49 = vmul.f32 %v6494_v47, %v6903_v4 }
 0x679   :  { %v6496_v50 = vpop.eup %6495 }
 0x67a   :  { %v1510_v53 = vmul.f32 %v6496_v50, %v6906_v6  ;;  %v1511_v54 = vmul.f32 %v6496_v50, %v6909_v8  ;;  %v1521_v55 = vmul.f32 %v1519_v45, %v1509_v49  ;;  %v1520_v63 = vmul.f32 %v1515_v46, %v1508_v48  ;;  %v6002_v8 = vld [vmem:[#allocation8 + $0x14] ss:$8 sps:$4 sm:$0xff]  }
 0x67c   :  { %v1523_v0 = vmul.f32 %v1519_v45, %v1511_v54  ;;  %v1522_v1 = vmul.f32 %v1515_v46, %v1510_v53  ;;  %v6937_v2 = vadd.f32 %v1531_v51, %v1521_v55  ;;  %v6941_v4 = vadd.f32 %v1527_v52, %v1520_v63 }
 0x67e   :  { %v6939_v3 = vadd.f32 %v1531_v51, %v1523_v0  ;;  %v6943_v5 = vadd.f32 %v1527_v52, %v1522_v1 }
 0x680   :  { %v1537_v9 = vpack.c.bf16 %v6939_v3, %v6937_v2  ;;  %v1536_v6 = vpack.c.bf16 %v6943_v5, %v6941_v4 }
 0x682   :  { %1954 = vmatprep.mubr.bf16.mxu1 %v1537_v9  ;;  %1997 = vmatprep.mubr.bf16.mxu0 %v1537_v9 }
 0x683   :  { %1955 = vmatmul.mubr.bf16.vlgmr.msra.gmra.mrb[20].mxu1 %v1536_v6  ;;  %1998 = vmatmul.mubr.bf16.vlgmr.msra.gmra.mrb[28].mxu0 %v1536_v6  ;;  %v6045_v6 = vld [vmem:[#allocation8 + $0x100] ss:$8 sps:$4 sm:$0xff]  }
 0x684   :  { %2413 = vmatpush1.bf16.msra.mxu1 %v5997_v10  ;;  %v6050_v10 = vld [vmem:[#allocation8 + $0x114] ss:$8 sps:$4 sm:$0xff]  }
 0x685   :  { %2414 = vmatprep.subr.bf16.mxu1 %v6002_v8  ;;  %v6048_v8 = vld [vmem:[#allocation8 + $0x110] ss:$8 sps:$4 sm:$0xff]  }
 0x688   :  { %2415 = vmatpush1.bf16.msra.mxu1 %v6000_v12  ;;  %v6053_v12 = vld [vmem:[#allocation8 + $0x124] ss:$8 sps:$4 sm:$0xff]  }
 0x689   :  { %2416 = vmatprep.subr.bf16.mxu1 %v6005_v7  ;;  %v6051_v7 = vld [vmem:[#allocation8 + $0x120] ss:$8 sps:$4 sm:$0xff]  }
 0x68c   :  { %2417 = vmatpush1.bf16.msra.mxu1 %v6003_v11  ;;  %v6056_v11 = vld [vmem:[#allocation8 + $0x134] ss:$8 sps:$4 sm:$0xff]  }
 0x68d   :  { %2418 = vmatprep.subr.bf16.mxu1 %v6008_v57  ;;  %v6054_v57 = vld [vmem:[#allocation8 + $0x130] ss:$8 sps:$4 sm:$0xff]  }
 0x690   :  { %2419 = vmatpush1.bf16.msra.mxu1 %v6006_v13  ;;  %v6059_v13 = vld [vmem:[#allocation8 + $0x144] ss:$8 sps:$4 sm:$0xff]  }
 0x691   :  { %2420 = vmatprep.subr.bf16.mxu1 %v6011_v14  ;;  %v6057_v14 = vld [vmem:[#allocation8 + $0x140] ss:$8 sps:$4 sm:$0xff]  }
 0x694   :  { %2421 = vmatpush1.bf16.msra.mxu1 %v6009_v15  ;;  %v6062_v15 = vld [vmem:[#allocation8 + $0x154] ss:$8 sps:$4 sm:$0xff]  }
 0x695   :  { %2422 = vmatprep.subr.bf16.mxu1 %v6014_v16  ;;  %v6060_v16 = vld [vmem:[#allocation8 + $0x150] ss:$8 sps:$4 sm:$0xff]  }
 0x698   :  { %2423 = vmatpush1.bf16.msra.mxu1 %v6012_v17  ;;  %v6065_v17 = vld [vmem:[#allocation8 + $0x164] ss:$8 sps:$4 sm:$0xff]  }
 0x699   :  { %2424 = vmatprep.subr.bf16.mxu1 %v6017_v58  ;;  %v6063_v58 = vld [vmem:[#allocation8 + $0x160] ss:$8 sps:$4 sm:$0xff]  }
 0x69c   :  { %2425 = vmatpush1.bf16.msra.mxu1 %v6015_v18  ;;  %v6068_v18 = vld [vmem:[#allocation8 + $0x174] ss:$8 sps:$4 sm:$0xff]  }
 0x69d   :  { %2426 = vmatprep.subr.bf16.mxu1 %v6020_v19  ;;  %v6066_v19 = vld [vmem:[#allocation8 + $0x170] ss:$8 sps:$4 sm:$0xff]  }
 0x6a0   :  { %2427 = vmatpush1.bf16.msra.mxu1 %v6018_v20  ;;  %v6071_v20 = vld [vmem:[#allocation8 + $0x184] ss:$8 sps:$4 sm:$0xff]  }
 0x6a1   :  { %2428 = vmatprep.subr.bf16.mxu1 %v6023_v21  ;;  %v6069_v21 = vld [vmem:[#allocation8 + $0x180] ss:$8 sps:$4 sm:$0xff]  }
 0x6a4   :  { %2429 = vmatpush1.bf16.msra.mxu1 %v6021_v22  ;;  %v6074_v22 = vld [vmem:[#allocation8 + $0x194] ss:$8 sps:$4 sm:$0xff]  }
 0x6a5   :  { %2430 = vmatprep.subr.bf16.mxu1 %v6026_v23  ;;  %v6072_v23 = vld [vmem:[#allocation8 + $0x190] ss:$8 sps:$4 sm:$0xff]  }
 0x6a8   :  { %2431 = vmatpush1.bf16.msra.mxu1 %v6024_v24  ;;  %v6077_v24 = vld [vmem:[#allocation8 + $0x1a4] ss:$8 sps:$4 sm:$0xff]  }
 0x6a9   :  { %2432 = vmatprep.subr.bf16.mxu1 %v6029_v60  ;;  %v6075_v60 = vld [vmem:[#allocation8 + $0x1a0] ss:$8 sps:$4 sm:$0xff]  }
 0x6ac   :  { %2433 = vmatpush1.bf16.msra.mxu1 %v6027_v25  ;;  %v6080_v25 = vld [vmem:[#allocation8 + $0x1b4] ss:$8 sps:$4 sm:$0xff]  }
 0x6ad   :  { %2434 = vmatprep.subr.bf16.mxu1 %v6032_v26  ;;  %v6078_v26 = vld [vmem:[#allocation8 + $0x1b0] ss:$8 sps:$4 sm:$0xff]  }
 0x6b0   :  { %2435 = vmatpush1.bf16.msra.mxu1 %v6030_v27  ;;  %v6083_v27 = vld [vmem:[#allocation8 + $0x1c4] ss:$8 sps:$4 sm:$0xff]  }
 0x6b1   :  { %2436 = vmatprep.subr.bf16.mxu1 %v6035_v28  ;;  %v6081_v28 = vld [vmem:[#allocation8 + $0x1c0] ss:$8 sps:$4 sm:$0xff]  }
 0x6b4   :  { %2437 = vmatpush1.bf16.msra.mxu1 %v6033_v29  ;;  %v6086_v29 = vld [vmem:[#allocation8 + $0x1d4] ss:$8 sps:$4 sm:$0xff]  }
 0x6b5   :  { %2438 = vmatprep.subr.bf16.mxu1 %v6038_v30  ;;  %v6084_v30 = vld [vmem:[#allocation8 + $0x1d0] ss:$8 sps:$4 sm:$0xff]  }
 0x6b8   :  { %2439 = vmatpush1.bf16.msra.mxu1 %v6036_v31  ;;  %v6089_v31 = vld [vmem:[#allocation8 + $0x1e4] ss:$8 sps:$4 sm:$0xff]  }
 0x6b9   :  { %2440 = vmatprep.subr.bf16.mxu1 %v6041_v32  ;;  %v6087_v32 = vld [vmem:[#allocation8 + $0x1e0] ss:$8 sps:$4 sm:$0xff]  }
 0x6bc   :  { %2441 = vmatpush1.bf16.msra.mxu1 %v6039_v33  ;;  %v6092_v33 = vld [vmem:[#allocation8 + $0x1f4] ss:$8 sps:$4 sm:$0xff]  }
 0x6bd   :  { %2442 = vmatprep.subr.bf16.mxu1 %v6044_v34  ;;  %v6090_v34 = vld [vmem:[#allocation8 + $0x1f0] ss:$8 sps:$4 sm:$0xff]  }
 0x6c0   :  { %2443 = vmatpush1.bf16.msra.mxu1 %v6042_v35  ;;  %v6953_v35 = vsub.s32 3, %v6856_v56 }
 0x6c1   :  { %2455 = vmatprep.subr.bf16.mxu1 %v6047_v36 }
 0x6c2   :  { %v2087_v36 = vrot.slane %v6864_v61, %v6953_v35 }
 0x756   :  { %v1956_v37 = vpop.f32.mrb[20].mxu1  ;;  %v1999_v39 = vpop.f32.mrb[28].mxu0 }
 0x757   :  { %v1958_v40 = vpop.f32.mrb[21].mxu1  ;;  %v2001_v41 = vpop.f32.mrb[29].mxu0  ;;  %v2008_v46 = vmax.f32 %v1956_v37, 0.0  ;;  %v2010_v47 = vmax.f32 %v1999_v39, 0.0  ;;  %v2091_v37 = vrot.slane %v6869_v62, %v6953_v35 }
 0x758   :  { %v1960_v42 = vpop.f32.mrb[22].mxu1  ;;  %v2003_v45 = vpop.f32.mrb[30].mxu0  ;;  %v2009_v52 = vmax.f32 %v1958_v40, 0.0  ;;  %v2011_v53 = vmax.f32 %v2001_v41, 0.0 }
 0x759   :  { %v2012_v48 = vmax.f32 %v1960_v42, 0.0  ;;  %v2014_v49 = vmax.f32 %v2003_v45, 0.0  ;;  %v1962_v50 = vpop.f32.mrb[23].mxu1  ;;  %v2005_v51 = vpop.f32.mrb[31].mxu0 }
 0x75a   :  { %v2013_v54 = vmax.f32 %v1962_v50, 0.0  ;;  %v2015_v55 = vmax.f32 %v2005_v51, 0.0 }
 0x75b   :  { %v2016_v63 = vpack.c.bf16 %v2012_v48, %v2008_v46  ;;  %v6949_v0 = vpack.c.bf16 %v2014_v49, %v2010_v47 }
 0x75c   :  { %v2017_v1 = vpack.c.bf16 %v2013_v54, %v2009_v52  ;;  %v2019_v9 = vpack.c.bf16 %v2015_v55, %v2011_v53  ;;  %v6093_v52 = vld [vmem:[#allocation2 + $0x300] ss:$24 sps:$4 sm:$0xff]   ;;  %v6095_v53 = vld [vmem:[#allocation2 + $0x304] ss:$24 sps:$4 sm:$0xff]   ;;  %v6096_v54 = vld [vmem:[#allocation2 + $0x310] ss:$24 sps:$4 sm:$0xff]  }
 0x75d   :  { %v6101_v55 = vld [vmem:[#allocation2 + $0x334] ss:$24 sps:$4 sm:$0xff]   ;;  %3140 = vmatprep.subr.bf16.mxu0 %v6095_v53  ;;  %v6159_v53 = vld [vmem:[#allocation2 + $0x510] ss:$24 sps:$4 sm:$0xff]  }
 0x75e   :  { %2444 = vmatprep.mubr.bf16.mxu1 %v2017_v1  ;;  %3141 = vmatpush1.bf16.msra.mxu0 %v6093_v52  ;;  %v6110_v1 = vld [vmem:[#allocation2 + $0x374] ss:$24 sps:$4 sm:$0xff]  }
 0x75f   :  { %2445 = vmatmul.mubr.bf16.vlgmr.msra.gmra.mrb[24].mxu1 %v2016_v63  ;;  %v6104_v63 = vld [vmem:[#allocation2 + $0x344] ss:$24 sps:$4 sm:$0xff]   ;;  %3142 = vmatprep.subr.bf16.mxu0 %v6101_v55  ;;  %v6161_v52 = vld [vmem:[#allocation2 + $0x514] ss:$24 sps:$4 sm:$0xff]  }
 0x760   :  { %2456 = vmatpush1.bf16.msra.mxu1 %v6045_v6  ;;  %2487 = vmatprep.mubr.bf16.mxu1 %v2019_v9  ;;  %v6105_v9 = vld [vmem:[#allocation2 + $0x360] ss:$24 sps:$4 sm:$0xff]   ;;  %v6108_v6 = vld [vmem:[#allocation2 + $0x370] ss:$24 sps:$4 sm:$0xff]   ;;  %v6167_v55 = vld [vmem:[#allocation2 + $0x544] ss:$24 sps:$4 sm:$0xff]  }
 0x761   :  { %2457 = vmatprep.subr.bf16.mxu1 %v6050_v10  ;;  %v6113_v10 = vld [vmem:[#allocation2 + $0x394] ss:$24 sps:$4 sm:$0xff]  }
 0x764   :  { %2458 = vmatpush1.bf16.msra.mxu1 %v6048_v8  ;;  %v6116_v8 = vld [vmem:[#allocation2 + $0x3a4] ss:$24 sps:$4 sm:$0xff]  }
 0x765   :  { %2459 = vmatprep.subr.bf16.mxu1 %v6053_v12  ;;  %v6111_v12 = vld [vmem:[#allocation2 + $0x390] ss:$24 sps:$4 sm:$0xff]  }
 0x768   :  { %2460 = vmatpush1.bf16.msra.mxu1 %v6051_v7  ;;  %v6114_v7 = vld [vmem:[#allocation2 + $0x3a0] ss:$24 sps:$4 sm:$0xff]  }
 0x769   :  { %2461 = vmatprep.subr.bf16.mxu1 %v6056_v11  ;;  %v6119_v11 = vld [vmem:[#allocation2 + $0x3c4] ss:$24 sps:$4 sm:$0xff]  }
 0x76c   :  { %2462 = vmatpush1.bf16.msra.mxu1 %v6054_v57  ;;  %v6122_v57 = vld [vmem:[#allocation2 + $0x3d4] ss:$24 sps:$4 sm:$0xff]  }
 0x76d   :  { %2463 = vmatprep.subr.bf16.mxu1 %v6059_v13  ;;  %v6117_v13 = vld [vmem:[#allocation2 + $0x3c0] ss:$24 sps:$4 sm:$0xff]  }
 0x770   :  { %2464 = vmatpush1.bf16.msra.mxu1 %v6057_v14  ;;  %v6120_v14 = vld [vmem:[#allocation2 + $0x3d0] ss:$24 sps:$4 sm:$0xff]  }
 0x771   :  { %2465 = vmatprep.subr.bf16.mxu1 %v6062_v15  ;;  %v6125_v15 = vld [vmem:[#allocation2 + $0x3f4] ss:$24 sps:$4 sm:$0xff]  }
 0x774   :  { %2466 = vmatpush1.bf16.msra.mxu1 %v6060_v16  ;;  %v6128_v16 = vld [vmem:[#allocation2 + $0x404] ss:$24 sps:$4 sm:$0xff]  }
 0x775   :  { %2467 = vmatprep.subr.bf16.mxu1 %v6065_v17  ;;  %v6123_v17 = vld [vmem:[#allocation2 + $0x3f0] ss:$24 sps:$4 sm:$0xff]  }
 0x778   :  { %2468 = vmatpush1.bf16.msra.mxu1 %v6063_v58  ;;  %v6126_v58 = vld [vmem:[#allocation2 + $0x400] ss:$24 sps:$4 sm:$0xff]  }
 0x779   :  { %2469 = vmatprep.subr.bf16.mxu1 %v6068_v18  ;;  %v6131_v18 = vld [vmem:[#allocation2 + $0x424] ss:$24 sps:$4 sm:$0xff]  }
 0x77c   :  { %2470 = vmatpush1.bf16.msra.mxu1 %v6066_v19  ;;  %v6134_v19 = vld [vmem:[#allocation2 + $0x434] ss:$24 sps:$4 sm:$0xff]  }
 0x77d   :  { %2471 = vmatprep.subr.bf16.mxu1 %v6071_v20  ;;  %v6129_v20 = vld [vmem:[#allocation2 + $0x420] ss:$24 sps:$4 sm:$0xff]  }
 0x780   :  { %2472 = vmatpush1.bf16.msra.mxu1 %v6069_v21  ;;  %v6132_v21 = vld [vmem:[#allocation2 + $0x430] ss:$24 sps:$4 sm:$0xff]  }
 0x781   :  { %2473 = vmatprep.subr.bf16.mxu1 %v6074_v22  ;;  %v6137_v22 = vld [vmem:[#allocation2 + $0x454] ss:$24 sps:$4 sm:$0xff]  }
 0x784   :  { %2474 = vmatpush1.bf16.msra.mxu1 %v6072_v23  ;;  %v6140_v23 = vld [vmem:[#allocation2 + $0x464] ss:$24 sps:$4 sm:$0xff]  }
 0x785   :  { %2475 = vmatprep.subr.bf16.mxu1 %v6077_v24  ;;  %v6135_v24 = vld [vmem:[#allocation2 + $0x450] ss:$24 sps:$4 sm:$0xff]  }
 0x788   :  { %2476 = vmatpush1.bf16.msra.mxu1 %v6075_v60  ;;  %v6138_v60 = vld [vmem:[#allocation2 + $0x460] ss:$24 sps:$4 sm:$0xff]  }
 0x789   :  { %2477 = vmatprep.subr.bf16.mxu1 %v6080_v25  ;;  %v6143_v25 = vld [vmem:[#allocation2 + $0x484] ss:$24 sps:$4 sm:$0xff]  }
 0x78c   :  { %2478 = vmatpush1.bf16.msra.mxu1 %v6078_v26  ;;  %v6146_v26 = vld [vmem:[#allocation2 + $0x494] ss:$24 sps:$4 sm:$0xff]  }
 0x78d   :  { %2479 = vmatprep.subr.bf16.mxu1 %v6083_v27  ;;  %v6141_v27 = vld [vmem:[#allocation2 + $0x480] ss:$24 sps:$4 sm:$0xff]  }
 0x790   :  { %2480 = vmatpush1.bf16.msra.mxu1 %v6081_v28  ;;  %v6144_v28 = vld [vmem:[#allocation2 + $0x490] ss:$24 sps:$4 sm:$0xff]  }
 0x791   :  { %2481 = vmatprep.subr.bf16.mxu1 %v6086_v29  ;;  %v6149_v29 = vld [vmem:[#allocation2 + $0x4b4] ss:$24 sps:$4 sm:$0xff]  }
 0x794   :  { %2482 = vmatpush1.bf16.msra.mxu1 %v6084_v30  ;;  %v6152_v30 = vld [vmem:[#allocation2 + $0x4c4] ss:$24 sps:$4 sm:$0xff]  }
 0x795   :  { %2483 = vmatprep.subr.bf16.mxu1 %v6089_v31  ;;  %v6147_v31 = vld [vmem:[#allocation2 + $0x4b0] ss:$24 sps:$4 sm:$0xff]  }
 0x798   :  { %2484 = vmatpush1.bf16.msra.mxu1 %v6087_v32  ;;  %v6150_v32 = vld [vmem:[#allocation2 + $0x4c0] ss:$24 sps:$4 sm:$0xff]  }
 0x799   :  { %2485 = vmatprep.subr.bf16.mxu1 %v6092_v33 }
 0x79c   :  { %2486 = vmatpush1.bf16.msra.mxu1 %v6090_v34 }
 0x79f   :  { %2488 = vmatmul.mubr.bf16.vlgmr.msra.gmra.mrb[24].mxu1 %v6949_v0  ;;  %v6107_v0 = vld [vmem:[#allocation2 + $0x364] ss:$24 sps:$4 sm:$0xff]  }
 0x872   :  { %v2489_v39 = vpop.f32.mrb[24].mxu1 }
 0x873   :  { %v5680_v40 = vadd.f32 %v2489_v39, %v2087_v36  ;;  %v2491_v41 = vpop.f32.mrb[25].mxu1 }
 0x874   :  { %v5681_v42 = vadd.f32 %v2491_v41, %v2091_v37  ;;  %v2493_v45 = vpop.f32.mrb[26].mxu1 }
 0x875   :  { %v6960_v46 = vadd.f32 %v5680_v40, %v6941_v4  ;;  %v5682_v47 = vadd.f32 %v2493_v45, %v2087_v36  ;;  %v2495_v48 = vpop.f32.mrb[27].mxu1 }
 0x876   :  { %v6963_v49 = vadd.f32 %v5681_v42, %v6937_v2  ;;  %v5683_v50 = vadd.f32 %v2495_v48, %v2091_v37  ;;  %v6098_v2 = vld [vmem:[#allocation2 + $0x314] ss:$24 sps:$4 sm:$0xff]  }
 0x877   :  { %v6966_v51 = vadd.f32 %v5682_v47, %v6943_v5  ;;  %3226 = vmatprep.subr.bf16.mxu1 %v6098_v2  ;;  %v6099_v5 = vld [vmem:[#allocation2 + $0x330] ss:$24 sps:$4 sm:$0xff]   ;;  %v6162_v2 = vld [vmem:[#allocation2 + $0x520] ss:$24 sps:$4 sm:$0xff]  }
 0x878   :  { %v6969_v61 = vadd.f32 %v5683_v50, %v6939_v3  ;;  %v2502_v62 = vadd.f32 %v6963_v49, %v6960_v46  ;;  %3227 = vmatpush1.bf16.msra.mxu1 %v6096_v54  ;;  %v6102_v3 = vld [vmem:[#allocation2 + $0x340] ss:$24 sps:$4 sm:$0xff]   ;;  %3143 = vmatpush1.bf16.msra.mxu0 %v6099_v5  ;;  %v6164_v54 = vld [vmem:[#allocation2 + $0x524] ss:$24 sps:$4 sm:$0xff]   ;;  %v6170_v5 = vld [vmem:[#allocation2 + $0x554] ss:$24 sps:$4 sm:$0xff]  }
 0x879   :  { %3228 = vmatprep.subr.bf16.mxu1 %v6104_v63  ;;  %3144 = vmatprep.subr.bf16.mxu0 %v6107_v0  ;;  %v6165_v63 = vld [vmem:[#allocation2 + $0x540] ss:$24 sps:$4 sm:$0xff]   ;;  %v6173_v0 = vld [vmem:[#allocation2 + $0x574] ss:$24 sps:$4 sm:$0xff]  }
 0x87a   :  { %2503 = vadd.xlane.f32.xlu0 %v2502_v62  ;;  %v2505_v4 = vadd.f32 %v6969_v61, %v6966_v51  ;;  %v6153_v62 = vld [vmem:[#allocation2 + $0x4e0] ss:$24 sps:$4 sm:$0xff]  }
 0x87c   :  { %2506 = vadd.xlane.f32.xlu1 %v2505_v4  ;;  %3229 = vmatpush1.bf16.msra.mxu1 %v6102_v3  ;;  %v6156_v4 = vld [vmem:[#allocation2 + $0x4f0] ss:$24 sps:$4 sm:$0xff]  }
 0x87d   :  { %3230 = vmatprep.subr.bf16.mxu1 %v6110_v1  ;;  %3145 = vmatpush1.bf16.msra.mxu0 %v6105_v9  ;;  %v6168_v3 = vld [vmem:[#allocation2 + $0x550] ss:$24 sps:$4 sm:$0xff]   ;;  %v6176_v9 = vld [vmem:[#allocation2 + $0x584] ss:$24 sps:$4 sm:$0xff]  }
 0x87e   :  { %3146 = vmatprep.subr.bf16.mxu0 %v6113_v10  ;;  %v6171_v1 = vld [vmem:[#allocation2 + $0x570] ss:$24 sps:$4 sm:$0xff]   ;;  %v6179_v10 = vld [vmem:[#allocation2 + $0x5a4] ss:$24 sps:$4 sm:$0xff]  }
 0x880   :  { %3231 = vmatpush1.bf16.msra.mxu1 %v6108_v6  ;;  %v6174_v6 = vld [vmem:[#allocation2 + $0x580] ss:$24 sps:$4 sm:$0xff]  }
 0x881   :  { %3232 = vmatprep.subr.bf16.mxu1 %v6116_v8  ;;  %3147 = vmatpush1.bf16.msra.mxu0 %v6111_v12  ;;  %v6177_v8 = vld [vmem:[#allocation2 + $0x5a0] ss:$24 sps:$4 sm:$0xff]   ;;  %v6182_v12 = vld [vmem:[#allocation2 + $0x5b4] ss:$24 sps:$4 sm:$0xff]  }
 0x882   :  { %3148 = vmatprep.subr.bf16.mxu0 %v6119_v11  ;;  %v6185_v11 = vld [vmem:[#allocation2 + $0x5d4] ss:$24 sps:$4 sm:$0xff]  }
 0x884   :  { %3233 = vmatpush1.bf16.msra.mxu1 %v6114_v7  ;;  %v6180_v7 = vld [vmem:[#allocation2 + $0x5b0] ss:$24 sps:$4 sm:$0xff]  }
 0x885   :  { %3234 = vmatprep.subr.bf16.mxu1 %v6122_v57  ;;  %3149 = vmatpush1.bf16.msra.mxu0 %v6117_v13  ;;  %v6183_v57 = vld [vmem:[#allocation2 + $0x5d0] ss:$24 sps:$4 sm:$0xff]   ;;  %v6188_v13 = vld [vmem:[#allocation2 + $0x5e4] ss:$24 sps:$4 sm:$0xff]  }
 0x886   :  { %3150 = vmatprep.subr.bf16.mxu0 %v6125_v15  ;;  %v6191_v15 = vld [vmem:[#allocation2 + $0x30c] ss:$24 sps:$4 sm:$0xff]  }
 0x888   :  { %3235 = vmatpush1.bf16.msra.mxu1 %v6120_v14  ;;  %v6186_v14 = vld [vmem:[#allocation2 + $0x5e0] ss:$24 sps:$4 sm:$0xff]  }
 0x889   :  { %3236 = vmatprep.subr.bf16.mxu1 %v6128_v16  ;;  %3151 = vmatpush1.bf16.msra.mxu0 %v6123_v17 }
 0x88a   :  { %3152 = vmatprep.subr.bf16.mxu0 %v6131_v18 }
 0x88c   :  { %3237 = vmatpush1.bf16.msra.mxu1 %v6126_v58 }
 0x88d   :  { %3238 = vmatprep.subr.bf16.mxu1 %v6134_v19  ;;  %3153 = vmatpush1.bf16.msra.mxu0 %v6129_v20 }
 0x88e   :  { %3154 = vmatprep.subr.bf16.mxu0 %v6137_v22  ;;  %v7000_v22 = vsub.s32 5, %v6856_v56 }
 0x890   :  { %3239 = vmatpush1.bf16.msra.mxu1 %v6132_v21  ;;  %v6997_v21 = vsub.s32 4, %v6856_v56 }
 0x891   :  { %3240 = vmatprep.subr.bf16.mxu1 %v6140_v23  ;;  %3155 = vmatpush1.bf16.msra.mxu0 %v6135_v24  ;;  %v6529_v23 = vld [vmem:[%s7206_s6 + $0x8] sm:$0x3f] }
 0x892   :  { %3156 = vmatprep.subr.bf16.mxu0 %v6143_v25  ;;  %v2541_v24 = vrot.slane %v6529_v23, %v6997_v21  ;;  %v2553_v56 = vrot.slane %v6529_v23, %v7000_v22 }
 0x894   :  { %3241 = vmatpush1.bf16.msra.mxu1 %v6138_v60  ;;  %v6530_v60 = vld [vmem:[%s7206_s6] sm:$0x3f] }
 0x895   :  { %3242 = vmatprep.subr.bf16.mxu1 %v6146_v26  ;;  %3157 = vmatpush1.bf16.msra.mxu0 %v6141_v27  ;;  %v2537_v25 = vrot.slane %v6530_v60, %v6997_v21 }
 0x896   :  { %3158 = vmatprep.subr.bf16.mxu0 %v6149_v29 }
 0x898   :  { %3243 = vmatpush1.bf16.msra.mxu1 %v6144_v28 }
 0x899   :  { %3244 = vmatprep.subr.bf16.mxu1 %v6152_v30  ;;  %3159 = vmatpush1.bf16.msra.mxu0 %v6147_v31  ;;  %v2549_v30 = vrot.slane %v6530_v60, %v7000_v22 }
 0x89c   :  { %3245 = vmatpush1.bf16.msra.mxu1 %v6150_v32 }
 0x907   :  { %v2504_v33 = vpop.xlane.xlu0 %2503 }
 0x908   :  { %v2508_v34 = vmul.f32 0.00390625, %v2504_v33 }
 0x909   :  { %v2507_v36 = vpop.xlane.xlu1 %2506 }
 0x90a   :  { %v6976_v37 = vsub.f32 %v6960_v46, %v2508_v34  ;;  %v6979_v39 = vsub.f32 %v6963_v49, %v2508_v34  ;;  %v2509_v40 = vmul.f32 0.00390625, %v2507_v36 }
 0x90c   :  { %v6982_v41 = vsub.f32 %v6966_v51, %v2509_v40  ;;  %v6985_v42 = vsub.f32 %v6969_v61, %v2509_v40  ;;  %v2514_v45 = vmul.f32 %v6976_v37, %v6976_v37  ;;  %v2515_v47 = vmul.f32 %v6979_v39, %v6979_v39  ;;  %v6155_v51 = vld [vmem:[#allocation2 + $0x4e4] ss:$24 sps:$4 sm:$0xff]   ;;  %v6158_v61 = vld [vmem:[#allocation2 + $0x4f4] ss:$24 sps:$4 sm:$0xff]  }
 0x90d   :  { %3160 = vmatprep.subr.bf16.mxu0 %v6155_v51  ;;  %3246 = vmatprep.subr.bf16.mxu1 %v6158_v61  ;;  %v6195_v51 = vld [vmem:[#allocation2 + $0x368] ss:$24 sps:$4 sm:$0xff]   ;;  %v6198_v61 = vld [vmem:[#allocation2 + $0x398] ss:$24 sps:$4 sm:$0xff]  }
 0x90e   :  { %v2518_v48 = vadd.f32 %v2515_v47, %v2514_v45  ;;  %v2516_v46 = vmul.f32 %v6982_v41, %v6982_v41  ;;  %v2517_v49 = vmul.f32 %v6985_v42, %v6985_v42  ;;  %3161 = vmatpush1.bf16.msra.mxu0 %v6153_v62  ;;  %3247 = vmatpush1.bf16.msra.mxu1 %v6156_v4  ;;  %v6200_v62 = vld [vmem:[#allocation2 + $0x39c] ss:$24 sps:$4 sm:$0xff]   ;;  %v6203_v4 = vld [vmem:[#allocation2 + $0x3cc] ss:$24 sps:$4 sm:$0xff]  }
 0x90f   :  { %3162 = vmatprep.subr.bf16.mxu0 %v6161_v52  ;;  %3248 = vmatprep.subr.bf16.mxu1 %v6164_v54  ;;  %v6201_v52 = vld [vmem:[#allocation2 + $0x3c8] ss:$24 sps:$4 sm:$0xff]   ;;  %v6204_v54 = vld [vmem:[#allocation2 + $0x3f8] ss:$24 sps:$4 sm:$0xff]  }
 0x910   :  { %2519 = vadd.xlane.f32.xlu0 %v2518_v48  ;;  %v2521_v50 = vadd.f32 %v2517_v49, %v2516_v46  ;;  %v6189_v46 = vld [vmem:[#allocation2 + $0x308] ss:$24 sps:$4 sm:$0xff]   ;;  %v6192_v49 = vld [vmem:[#allocation2 + $0x338] ss:$24 sps:$4 sm:$0xff]  }
 0x912   :  { %2522 = vadd.xlane.f32.xlu1 %v2521_v50  ;;  %3163 = vmatpush1.bf16.msra.mxu0 %v6159_v53  ;;  %v6197_v50 = vld [vmem:[#allocation2 + $0x36c] ss:$24 sps:$4 sm:$0xff]   ;;  %v6206_v53 = vld [vmem:[#allocation2 + $0x3fc] ss:$24 sps:$4 sm:$0xff]  }
 0x913   :  { %3249 = vmatpush1.bf16.msra.mxu1 %v6162_v2  ;;  %3164 = vmatprep.subr.bf16.mxu0 %v6167_v55  ;;  %v6209_v2 = vld [vmem:[#allocation2 + $0x42c] ss:$24 sps:$4 sm:$0xff]   ;;  %v6207_v55 = vld [vmem:[#allocation2 + $0x428] ss:$24 sps:$4 sm:$0xff]  }
 0x914   :  { %3250 = vmatprep.subr.bf16.mxu1 %v6170_v5  ;;  %v6210_v5 = vld [vmem:[#allocation2 + $0x458] ss:$24 sps:$4 sm:$0xff]  }
 0x916   :  { %3165 = vmatpush1.bf16.msra.mxu0 %v6165_v63  ;;  %v6212_v63 = vld [vmem:[#allocation2 + $0x45c] ss:$24 sps:$4 sm:$0xff]  }
 0x917   :  { %3251 = vmatpush1.bf16.msra.mxu1 %v6168_v3  ;;  %3166 = vmatprep.subr.bf16.mxu0 %v6173_v0  ;;  %v6215_v3 = vld [vmem:[#allocation2 + $0x48c] ss:$24 sps:$4 sm:$0xff]   ;;  %v6213_v0 = vld [vmem:[#allocation2 + $0x488] ss:$24 sps:$4 sm:$0xff]  }
 0x918   :  { %3252 = vmatprep.subr.bf16.mxu1 %v6176_v9  ;;  %v6216_v9 = vld [vmem:[#allocation2 + $0x4b8] ss:$24 sps:$4 sm:$0xff]  }
 0x91a   :  { %3167 = vmatpush1.bf16.msra.mxu0 %v6171_v1  ;;  %v6218_v1 = vld [vmem:[#allocation2 + $0x4bc] ss:$24 sps:$4 sm:$0xff]  }
 0x91b   :  { %3253 = vmatpush1.bf16.msra.mxu1 %v6174_v6  ;;  %3168 = vmatprep.subr.bf16.mxu0 %v6179_v10  ;;  %v6221_v6 = vld [vmem:[#allocation2 + $0x4ec] ss:$24 sps:$4 sm:$0xff]   ;;  %v6219_v10 = vld [vmem:[#allocation2 + $0x4e8] ss:$24 sps:$4 sm:$0xff]  }
 0x91c   :  { %3254 = vmatprep.subr.bf16.mxu1 %v6182_v12  ;;  %v6222_v12 = vld [vmem:[#allocation2 + $0x518] ss:$24 sps:$4 sm:$0xff]  }
 0x91e   :  { %3169 = vmatpush1.bf16.msra.mxu0 %v6177_v8  ;;  %v6224_v8 = vld [vmem:[#allocation2 + $0x51c] ss:$24 sps:$4 sm:$0xff]  }
 0x91f   :  { %3255 = vmatpush1.bf16.msra.mxu1 %v6180_v7  ;;  %3170 = vmatprep.subr.bf16.mxu0 %v6185_v11  ;;  %v6227_v7 = vld [vmem:[#allocation2 + $0x54c] ss:$24 sps:$4 sm:$0xff]   ;;  %v6225_v11 = vld [vmem:[#allocation2 + $0x548] ss:$24 sps:$4 sm:$0xff]  }
 0x920   :  { %3256 = vmatprep.subr.bf16.mxu1 %v6188_v13  ;;  %v6228_v13 = vld [vmem:[#allocation2 + $0x578] ss:$24 sps:$4 sm:$0xff]  }
 0x922   :  { %3171 = vmatpush1.bf16.msra.mxu0 %v6183_v57  ;;  %v6230_v57 = vld [vmem:[#allocation2 + $0x57c] ss:$24 sps:$4 sm:$0xff]  }
 0x923   :  { %3257 = vmatpush1.bf16.msra.mxu1 %v6186_v14  ;;  %3183 = vmatprep.subr.bf16.mxu0 %v6191_v15  ;;  %v6233_v14 = vld [vmem:[#allocation2 + $0x5ac] ss:$24 sps:$4 sm:$0xff]   ;;  %v6231_v15 = vld [vmem:[#allocation2 + $0x5a8] ss:$24 sps:$4 sm:$0xff]  }
 0x924   :  { %5638 = vmatprep.subr.bf16.mxu1 %v6663_v38 }
 0x99d   :  { %v2520_v16 = vpop.xlane.xlu0 %2519 }
 0x99e   :  { %v2524_v17 = vmul.f32 0.00390625, %v2520_v16  ;;  %v6236_v16 = vld [vmem:[#allocation2 + $0x5dc] ss:$24 sps:$4 sm:$0xff]  }
 0x99f   :  { %v2523_v58 = vpop.xlane.xlu1 %2522 }
 0x9a0   :  { %v2526_v18 = vadd.f32 1e-05, %v2524_v17  ;;  %v2525_v19 = vmul.f32 0.00390625, %v2523_v58  ;;  %v6234_v17 = vld [vmem:[#allocation2 + $0x5d8] ss:$24 sps:$4 sm:$0xff]  }
 0x9a2   :  { %6497 = vrsqrt.f32 %v2526_v18  ;;  %v2527_v20 = vadd.f32 1e-05, %v2525_v19 }
 0x9a4   :  { %6499 = vrsqrt.f32 %v2527_v20 }
 0x9ac   :  { %v6498_v26 = vpop.eup %6497 }
 0x9ad   :  { %v2530_v27 = vmul.f32 %v6498_v26, %v6976_v37  ;;  %v2531_v28 = vmul.f32 %v6498_v26, %v6979_v39 }
 0x9ae   :  { %v6500_v29 = vpop.eup %6499 }
 0x9af   :  { %v2532_v31 = vmul.f32 %v6500_v29, %v6982_v41  ;;  %v2533_v32 = vmul.f32 %v6500_v29, %v6985_v42  ;;  %v2543_v33 = vmul.f32 %v2541_v24, %v2531_v28  ;;  %v2542_v34 = vmul.f32 %v2537_v25, %v2530_v27  ;;  %v6194_v42 = vld [vmem:[#allocation2 + $0x33c] ss:$24 sps:$4 sm:$0xff]  }
 0x9b1   :  { %v2545_v36 = vmul.f32 %v2541_v24, %v2533_v32  ;;  %v2544_v40 = vmul.f32 %v2537_v25, %v2532_v31  ;;  %v7016_v45 = vadd.f32 %v2553_v56, %v2543_v33  ;;  %v7020_v37 = vadd.f32 %v2549_v30, %v2542_v34 }
 0x9b3   :  { %v7018_v47 = vadd.f32 %v2553_v56, %v2545_v36  ;;  %v7022_v39 = vadd.f32 %v2549_v30, %v2544_v40 }
 0x9b5   :  { %v2562_v48 = vpack.c.bf16 %v7018_v47, %v7016_v45  ;;  %v7028_v41 = vpack.c.bf16 %v7022_v39, %v7020_v37 }
 0x9b7   :  { %3172 = vmatprep.mubr.bf16.mxu0 %v2562_v48  ;;  %3258 = vmatprep.mubr.bf16.mxu1 %v2562_v48 }
 0x9b8   :  { %3173 = vmatmul.mubr.bf16.vlgmr.msra.gmra.mrb[32].mxu0 %v7028_v41  ;;  %3259 = vmatmul.mubr.bf16.vlgmr.msra.gmra.mrb[28].mxu1 %v7028_v41 }
 0x9b9   :  { %3184 = vmatpush1.bf16.msra.mxu0 %v6189_v46  ;;  %3215 = vmatprep.mubr.bf16.mxu0 %v2562_v48 }
 0x9ba   :  { %3185 = vmatprep.subr.bf16.mxu0 %v6194_v42  ;;  %5640 = vmatprep.mubr.msk.bf16.mxu1 %vm6664_vm0, %v6663_v38 }
 0x9bd   :  { %3186 = vmatpush1.bf16.msra.mxu0 %v6192_v49 }
 0x9be   :  { %3187 = vmatprep.subr.bf16.mxu0 %v6197_v50  ;;  %v6531_v50 = vld [vmem:[%s7201_s1] ss:$0 sm:$0xff] }
 0x9c1   :  { %3188 = vmatpush1.bf16.msra.mxu0 %v6195_v51 }
 0x9c2   :  { %3189 = vmatprep.subr.bf16.mxu0 %v6200_v62 }
 0x9c5   :  { %3190 = vmatpush1.bf16.msra.mxu0 %v6198_v61 }
 0x9c6   :  { %3191 = vmatprep.subr.bf16.mxu0 %v6203_v4  ;;  %v6532_v4 = vld [vmem:[%s7201_s1 + $0x1] ss:$0 sm:$0xff] }
 0x9c9   :  { %3192 = vmatpush1.bf16.msra.mxu0 %v6201_v52 }
 0x9ca   :  { %3193 = vmatprep.subr.bf16.mxu0 %v6206_v53 }
 0x9cd   :  { %3194 = vmatpush1.bf16.msra.mxu0 %v6204_v54 }
 0x9ce   :  { %3195 = vmatprep.subr.bf16.mxu0 %v6209_v2 }
 0x9d1   :  { %3196 = vmatpush1.bf16.msra.mxu0 %v6207_v55 }
 0x9d2   :  { %3197 = vmatprep.subr.bf16.mxu0 %v6212_v63 }
 0x9d5   :  { %3198 = vmatpush1.bf16.msra.mxu0 %v6210_v5 }
 0x9d6   :  { %3199 = vmatprep.subr.bf16.mxu0 %v6215_v3 }
 0x9d9   :  { %3200 = vmatpush1.bf16.msra.mxu0 %v6213_v0 }
 0x9da   :  { %3201 = vmatprep.subr.bf16.mxu0 %v6218_v1  ;;  %v6533_v1 = vld [vmem:[%s7201_s1 + $0x2] ss:$0 sm:$0xff] }
 0x9dd   :  { %3202 = vmatpush1.bf16.msra.mxu0 %v6216_v9 }
 0x9de   :  { %3203 = vmatprep.subr.bf16.mxu0 %v6221_v6 }
 0x9e1   :  { %3204 = vmatpush1.bf16.msra.mxu0 %v6219_v10 }
 0x9e2   :  { %3205 = vmatprep.subr.bf16.mxu0 %v6224_v8  ;;  %v6534_v8 = vld [vmem:[%s7201_s1 + $0x3] ss:$0 sm:$0xff] }
 0x9e5   :  { %3206 = vmatpush1.bf16.msra.mxu0 %v6222_v12 }
 0x9e6   :  { %3207 = vmatprep.subr.bf16.mxu0 %v6227_v7 }
 0x9e9   :  { %3208 = vmatpush1.bf16.msra.mxu0 %v6225_v11 }
 0x9ea   :  { %3209 = vmatprep.subr.bf16.mxu0 %v6230_v57 }
 0x9ed   :  { %3210 = vmatpush1.bf16.msra.mxu0 %v6228_v13 }
 0x9ee   :  { %3211 = vmatprep.subr.bf16.mxu0 %v6233_v14 }
 0x9f1   :  { %3212 = vmatpush1.bf16.msra.mxu0 %v6231_v15 }
 0x9f2   :  { %3213 = vmatprep.subr.bf16.mxu0 %v6236_v16 }
 0x9f5   :  { %3214 = vmatpush1.bf16.msra.mxu0 %v6234_v17 }
 0x9f6   :  { %5632 = vmatprep.subr.bf16.mxu0 %v6663_v38 }
 0x9f8   :  { %3216 = vmatmul.mubr.bf16.vlgmr.msra.gmra.mrb[36].mxu0 %v7028_v41 }
 0x9f9   :  { %5634 = vmatprep.mubr.msk.bf16.mxu0 %vm6664_vm0, %v6663_v38 }
 0xa8b   :  { %v3174_v58 = vpop.f32.mrb[32].mxu0  ;;  %v3260_v18 = vpop.f32.mrb[28].mxu1 }
 0xa8c   :  { %v3176_v19 = vpop.f32.mrb[33].mxu0  ;;  %v3262_v20 = vpop.f32.mrb[29].mxu1  ;;  %v3269_v31 = vpack.c.bf16 %v3174_v58, %v3174_v58  ;;  %v3277_v36 = vpack.c.bf16 %v3260_v18, %v3260_v18 }
 0xa8d   :  { %v3178_v23 = vpop.f32.mrb[34].mxu0  ;;  %v7038_v24 = vpop.f32.mrb[30].mxu1  ;;  %v3270_v32 = vpack.c.bf16 %v3176_v19, %v3176_v19  ;;  %v3278_v40 = vpack.c.bf16 %v3262_v20, %v3262_v20 }
 0xa8e   :  { %v3180_v60 = vpop.f32.mrb[35].mxu0  ;;  %v7040_v25 = vpop.f32.mrb[31].mxu1  ;;  %v3271_v48 = vpack.c.bf16 %v3178_v23, %v3178_v23  ;;  %v3493_v41 = vsel %vm1048_vm1, %v3277_v36, 0 }
 0xa8f   :  { %v3272_v46 = vpack.c.bf16 %v3180_v60, %v3180_v60  ;;  %v3539_v42 = vsel %vm1048_vm1, %v3278_v40, 0 }
 0xacb   :  { %v3217_v26 = vpop.f32.mrb[36].mxu0 }
 0xacc   :  { %v3273_v27 = vpack.c.bf16 %v3217_v26, %v3217_v26  ;;  %v3219_v28 = vpop.f32.mrb[37].mxu0 }
 0xacd   :  { %v3274_v29 = vpack.c.bf16 %v3219_v28, %v3219_v28  ;;  %v3221_v56 = vpop.f32.mrb[38].mxu0 }
 0xace   :  { %v3223_v30 = vpop.f32.mrb[39].mxu0  ;;  %5633 = vmatpush3.bf16.xpose.msra.mxu0 %v3273_v27  ;;  %v3275_v33 = vpack.c.bf16 %v3221_v56, %v3221_v56 }
 0xacf   :  { %5639 = vmatpush3.bf16.xpose.msra.mxu1 %v3274_v29  ;;  %5644 = vmatprep.subr.bf16.mxu0 %v6663_v38  ;;  %v3276_v34 = vpack.c.bf16 %v3223_v30, %v3223_v30 }
 0xad0   :  { %5650 = vmatprep.subr.bf16.mxu1 %v6663_v38 }
 0xad5   :  { %5635 = vmatmul.mubr.bf16.vlgmr.msra.gmra.mrb[40].mxu0 %v3269_v31 }
 0xad6   :  { %5641 = vmatmul.mubr.bf16.vlgmr.msra.gmra.mrb[32].mxu1 %v3270_v32  ;;  %5645 = vmatpush3.bf16.xpose.msra.mxu0 %v3275_v33 }
 0xad7   :  { %5651 = vmatpush3.bf16.xpose.msra.mxu1 %v3276_v34  ;;  %5646 = vmatprep.mubr.msk.bf16.mxu0 %vm6664_vm0, %v6663_v38 }
 0xad8   :  { %5652 = vmatprep.mubr.msk.bf16.mxu1 %vm6664_vm0, %v6663_v38  ;;  %5656 = vmatprep.subr.bf16.mxu0 %v6663_v38 }
 0xad9   :  { %5662 = vmatprep.subr.bf16.mxu1 %v6663_v38 }
 0xadd   :  { %5647 = vmatmul.mubr.bf16.vlgmr.msra.gmra.mrb[44].mxu0 %v3271_v48 }
 0xade   :  { %5653 = vmatmul.mubr.bf16.vlgmr.msra.gmra.mrb[36].mxu1 %v3272_v46  ;;  %5657 = vmatpush3.bf16.msra.mxu0 %v3493_v41 }
 0xadf   :  { %5663 = vmatpush3.bf16.msra.mxu1 %v3539_v42  ;;  %5658 = vmatprep.mubr.msk.bf16.mxu0 %vm6664_vm0, %v6663_v38 }
 0xae0   :  { %5668 = vmatprep.subr.bf16.mxu0 %v6663_v38  ;;  %5664 = vmatprep.mubr.msk.bf16.mxu1 %vm6664_vm0, %v6663_v38 }
 0xae1   :  { %5674 = vmatprep.subr.bf16.mxu1 %v6663_v38 }
 0xba8   :  { %v3315_v49 = vpop.f32.mrb[40].mxu0 }
 0xba9   :  { %v3316_v51 = vadd.f32 %v6531_v50, %v3315_v49  ;;  %v5636_v62 = vpop.f32.mrb[41].mxu0  ;;  %v3355_v61 = vpop.f32.mrb[32].mxu1 }
 0xbaa   :  { %v3356_v52 = vadd.f32 %v6532_v4, %v3355_v61  ;;  %v3318_v53 = vpop.f32.mrb[42].mxu0  ;;  %v5642_v54 = vpop.f32.mrb[33].mxu1  ;;  %v3279_v62 = vpack.c.bf16 %v7038_v24, %v7038_v24  ;;  %v3280_v4 = vpack.c.bf16 %v7040_v25, %v7040_v25 }
 0xbab   :  { %v5637_v2 = vpop.f32.mrb[43].mxu0  ;;  %v3358_v55 = vpop.f32.mrb[34].mxu1  ;;  %v3441_v63 = vsel %vm996_vm2, %v3316_v51, -inf }
 0xbac   :  { %v5643_v5 = vpop.f32.mrb[35].mxu1  ;;  %3442 = vmax.xlane.f32.xlu1 %v3441_v63  ;;  %v3444_v3 = vsel %vm996_vm2, %v3356_v52, -inf  ;;  %v6239_v2 = vld [vmem:[#allocation5 + $0x104] ss:$8 sps:$4 sm:$0xff]   ;;  %v3585_v55 = vsel %vm1048_vm1, %v3279_v62, 0  ;;  %v3631_v63 = vsel %vm1048_vm1, %v3280_v4, 0 }
 0xbad   :  { %3445 = vmax.xlane.f32.xlu0 %v3444_v3 }
 0xbb0   :  { %v3395_v0 = vpop.f32.mrb[44].mxu0 }
 0xbb1   :  { %v3396_v9 = vadd.f32 %v6533_v1, %v3395_v0  ;;  %v5648_v6 = vpop.f32.mrb[45].mxu0  ;;  %v3435_v10 = vpop.f32.mrb[36].mxu1  ;;  %v6237_v0 = vld [vmem:[#allocation5 + $0x100] ss:$8 sps:$4 sm:$0xff]  }
 0xbb2   :  { %v3436_v12 = vadd.f32 %v6534_v8, %v3435_v10  ;;  %v3398_v7 = vpop.f32.mrb[46].mxu0  ;;  %v5654_v11 = vpop.f32.mrb[37].mxu1  ;;  %v6240_v10 = vld [vmem:[#allocation5 + $0x110] ss:$8 sps:$4 sm:$0xff]   ;;  %v6245_v8 = vld [vmem:[#allocation5 + $0x124] ss:$8 sps:$4 sm:$0xff]  }
 0xbb3   :  { %v5649_v57 = vpop.f32.mrb[47].mxu0  ;;  %v3438_v13 = vpop.f32.mrb[38].mxu1  ;;  %v3447_v14 = vsel %vm996_vm2, %v3396_v9, -inf  ;;  %v6246_v7 = vld [vmem:[#allocation5 + $0x130] ss:$8 sps:$4 sm:$0xff]  }
 0xbb4   :  { %3448 = vmax.xlane.f32.xlu1 %v3447_v14  ;;  %v5655_v15 = vpop.f32.mrb[39].mxu1  ;;  %v3450_v16 = vsel %vm996_vm2, %v3436_v12, -inf  ;;  %v6251_v11 = vld [vmem:[#allocation5 + $0x144] ss:$8 sps:$4 sm:$0xff]   ;;  %v6249_v57 = vld [vmem:[#allocation5 + $0x140] ss:$8 sps:$4 sm:$0xff]  }
 0xbb5   :  { %3451 = vmax.xlane.f32.xlu0 %v3450_v16  ;;  %v6254_v13 = vld [vmem:[#allocation5 + $0x154] ss:$8 sps:$4 sm:$0xff]   ;;  %v6252_v14 = vld [vmem:[#allocation5 + $0x150] ss:$8 sps:$4 sm:$0xff]   ;;  %v6257_v15 = vld [vmem:[#allocation5 + $0x164] ss:$8 sps:$4 sm:$0xff]  }
 0xbb6   :  { %v6255_v16 = vld [vmem:[#allocation5 + $0x160] ss:$8 sps:$4 sm:$0xff]  }
 0xc39   :  { %v3443_v17 = vpop.xlane.xlu1 %3442 }
 0xc3a   :  { %v3453_v58 = vsub.f32 %v3316_v51, %v3443_v17  ;;  %v3446_v18 = vpop.xlane.xlu0 %3445  ;;  %v6260_v17 = vld [vmem:[#allocation5 + $0x174] ss:$8 sps:$4 sm:$0xff]  }
 0xc3b   :  { %v3454_v19 = vsub.f32 %v3356_v52, %v3446_v18  ;;  %v6263_v18 = vld [vmem:[#allocation5 + $0x184] ss:$8 sps:$4 sm:$0xff]  }
 0xc3c   :  { %v3457_v20 = vmul.f32 1.442695, %v3453_v58  ;;  %v6258_v58 = vld [vmem:[#allocation5 + $0x170] ss:$8 sps:$4 sm:$0xff]  }
 0xc3d   :  { %v3459_v23 = vmul.f32 1.442695, %v3454_v19  ;;  %v6261_v19 = vld [vmem:[#allocation5 + $0x180] ss:$8 sps:$4 sm:$0xff]  }
 0xc3e   :  { %6501 = vpow2.f32 %v3457_v20  ;;  %v6266_v20 = vld [vmem:[#allocation5 + $0x194] ss:$8 sps:$4 sm:$0xff]  }
 0xc3f   :  { %6503 = vpow2.f32 %v3459_v23  ;;  %v6264_v23 = vld [vmem:[#allocation5 + $0x190] ss:$8 sps:$4 sm:$0xff]  }
 0xc41   :  { %v3449_v60 = vpop.xlane.xlu1 %3448 }
 0xc42   :  { %v3455_v26 = vsub.f32 %v3396_v9, %v3449_v60  ;;  %v3452_v27 = vpop.xlane.xlu0 %3451  ;;  %v6242_v9 = vld [vmem:[#allocation5 + $0x114] ss:$8 sps:$4 sm:$0xff]   ;;  %v6269_v60 = vld [vmem:[#allocation5 + $0x1a4] ss:$8 sps:$4 sm:$0xff]  }
 0xc43   :  { %v3456_v28 = vsub.f32 %v3436_v12, %v3452_v27  ;;  %v6243_v12 = vld [vmem:[#allocation5 + $0x120] ss:$8 sps:$4 sm:$0xff]   ;;  %v6272_v27 = vld [vmem:[#allocation5 + $0x1b4] ss:$8 sps:$4 sm:$0xff]  }
 0xc44   :  { %v3461_v29 = vmul.f32 1.442695, %v3455_v26  ;;  %v6267_v26 = vld [vmem:[#allocation5 + $0x1a0] ss:$8 sps:$4 sm:$0xff]  }
 0xc45   :  { %v3463_v56 = vmul.f32 1.442695, %v3456_v28  ;;  %v6270_v28 = vld [vmem:[#allocation5 + $0x1b0] ss:$8 sps:$4 sm:$0xff]  }
 0xc46   :  { %6505 = vpow2.f32 %v3461_v29  ;;  %v6275_v29 = vld [vmem:[#allocation5 + $0x1c4] ss:$8 sps:$4 sm:$0xff]  }
 0xc47   :  { %6507 = vpow2.f32 %v3463_v56  ;;  %v6273_v56 = vld [vmem:[#allocation5 + $0x1c0] ss:$8 sps:$4 sm:$0xff]  }
 0xc48   :  { %v6502_v30 = vpop.eup %6501 }
 0xc49   :  { %v6504_v31 = vpop.eup %6503  ;;  %v3465_v32 = vsel %vm996_vm2, %v6502_v30, 0.0 }
 0xc4a   :  { %3466 = vadd.xlane.f32.xlu1 %v3465_v32  ;;  %v3468_v33 = vsel %vm996_vm2, %v6504_v31, 0.0  ;;  %v6279_v32 = vld [vmem:[#allocation5 + $0x1e0] ss:$8 sps:$4 sm:$0xff]  }
 0xc4b   :  { %3469 = vadd.xlane.f32.xlu0 %v3468_v33  ;;  %v6281_v33 = vld [vmem:[#allocation5 + $0x1e4] ss:$8 sps:$4 sm:$0xff]  }
 0xc50   :  { %v6506_v34 = vpop.eup %6505 }
 0xc51   :  { %v6508_v36 = vpop.eup %6507  ;;  %v3471_v40 = vsel %vm996_vm2, %v6506_v34, 0.0 }
 0xc52   :  { %3472 = vadd.xlane.f32.xlu1 %v3471_v40  ;;  %v3474_v48 = vsel %vm996_vm2, %v6508_v36, 0.0 }
 0xc53   :  { %3475 = vadd.xlane.f32.xlu0 %v3474_v48 }
 0xcd7   :  { %v3467_v46 = vpop.xlane.xlu1 %3466 }
 0xcd8   :  { %6509 = vrcp.f32 %v3467_v46  ;;  %v3470_v41 = vpop.xlane.xlu0 %3469 }
 0xcd9   :  { %6511 = vrcp.f32 %v3470_v41 }
 0xcdf   :  { %v3473_v42 = vpop.xlane.xlu1 %3472 }
 0xce0   :  { %6513 = vrcp.f32 %v3473_v42  ;;  %v3476_v49 = vpop.xlane.xlu0 %3475 }
 0xce1   :  { %6515 = vrcp.f32 %v3476_v49 }
 0xce2   :  { %v6510_v50 = vpop.eup %6509 }
 0xce3   :  { %v6512_v51 = vpop.eup %6511  ;;  %v3481_v61 = vmul.f32 %v6510_v50, %v6502_v30  ;;  %v6278_v30 = vld [vmem:[#allocation5 + $0x1d4] ss:$8 sps:$4 sm:$0xff]  }
 0xce4   :  { %v3482_v52 = vmul.f32 %v6512_v51, %v6504_v31  ;;  %v6276_v31 = vld [vmem:[#allocation5 + $0x1d0] ss:$8 sps:$4 sm:$0xff]  }
 0xce5   :  { %v3485_v53 = vpack.c.bf16 %v3481_v61, %v3481_v61 }
 0xce6   :  { %v3486_v54 = vpack.c.bf16 %v3482_v52, %v3482_v52 }
 0xce7   :  { %5659 = vmatmul.mubr.msk.bf16.vlgmr.msra.gmra.mrb[48].mxu0 %vm996_vm2, %v3485_v53 }
 0xce8   :  { %5669 = vmatpush3.bf16.msra.mxu0 %v3585_v55  ;;  %5665 = vmatmul.mubr.msk.bf16.vlgmr.msra.gmra.mrb[40].mxu1 %vm996_vm2, %v3486_v54 }
 0xce9   :  { %5675 = vmatpush3.bf16.msra.mxu1 %v3631_v63  ;;  %5670 = vmatprep.mubr.msk.bf16.mxu0 %vm6664_vm0, %v6663_v38 }
 0xcea   :  { %v6514_v24 = vpop.eup %6513  ;;  %5676 = vmatprep.mubr.msk.bf16.mxu1 %vm6664_vm0, %v6663_v38  ;;  %3876 = vmatprep.subr.bf16.mxu0 %v6239_v2  ;;  %v6248_v38 = vld [vmem:[#allocation5 + $0x134] ss:$8 sps:$4 sm:$0xff]  }
 0xceb   :  { %v6516_v25 = vpop.eup %6515  ;;  %v3483_v5 = vmul.f32 %v6514_v24, %v6506_v34  ;;  %v6284_v34 = vld [vmem:[#allocation5 + $0x1f4] ss:$8 sps:$4 sm:$0xff]  }
 0xcec   :  { %v3484_v3 = vmul.f32 %v6516_v25, %v6508_v36  ;;  %v6282_v36 = vld [vmem:[#allocation5 + $0x1f0] ss:$8 sps:$4 sm:$0xff]  }
 0xced   :  { %v3487_v1 = vpack.c.bf16 %v3483_v5, %v3483_v5  ;;  %v7095_v25 = vld [vmem:[%s7206_s6 + $0x10] sm:$0x3f]  ;;  %v7100_v5 = vld [vmem:[%s7206_s6 + $0x18] sm:$0x3f]  ;;  %s6665_s6 = smov [#allocation10]  }
 0xcee   :  { %v3488_v6 = vpack.c.bf16 %v3484_v3, %v3484_v3  ;;  %v3711_v3 = vrot.slane %v7095_v25, %v6859_v59  ;;  %s5012_s24 = sshll.u32 %s6665_s6, 4  ;;  %s5013_s24 = int_to_ptr.vmem [resolvable:$true] %s5012_s24 }
 0xcef   :  { %5671 = vmatmul.mubr.msk.bf16.vlgmr.msra.gmra.mrb[52].mxu0 %vm996_vm2, %v3487_v1  ;;  %s6623_s3 = scalar_lea.vmem %s5013_s24, 512  ;;  %p6628_p5 = scmp.lt.s32.totalorder %s5013_s24, %s5013_s24 }
 0xcf0   :  { %5677 = vmatmul.mubr.msk.bf16.vlgmr.msra.gmra.mrb[44].mxu1 %vm996_vm2, %v3488_v6  ;;  %3877 = vmatpush1.bf16.msra.mxu0 %v6237_v0  ;;  %v3715_v0 = vrot.slane %v7100_v5, %v6859_v59  ;;  %p6624_p4 = scmp.ne.s32.totalorder %s5013_s24, %s6623_s3  ;;  %p6629_p6 = scmp.lt.s32.totalorder %s6623_s3, %s6623_s3 }
 0xcf1   :  { %3878 = vmatprep.subr.bf16.mxu0 %v6242_v9 }
 0xcf2   :  { %p6630_p7 = por %p6629_p6, %p6628_p5 }
 0xcf4   :  { %3879 = vmatpush1.bf16.msra.mxu0 %v6240_v10  ;;  %p6631_p8 = pnand %p6630_p7, %p6624_p4 }
 0xcf5   :  { %3880 = vmatprep.subr.bf16.mxu0 %v6245_v8 }
 0xcf8   :  { %3881 = vmatpush1.bf16.msra.mxu0 %v6243_v12 }
 0xcf9   :  { %3882 = vmatprep.subr.bf16.mxu0 %v6248_v38 }
 0xcfc   :  { %3883 = vmatpush1.bf16.msra.mxu0 %v6246_v7 }
 0xcfd   :  { %3884 = vmatprep.subr.bf16.mxu0 %v6251_v11 }
 0xd00   :  { %3885 = vmatpush1.bf16.msra.mxu0 %v6249_v57 }
 0xd01   :  { %3886 = vmatprep.subr.bf16.mxu0 %v6254_v13 }
 0xd04   :  { %3887 = vmatpush1.bf16.msra.mxu0 %v6252_v14 }
 0xd05   :  { %3888 = vmatprep.subr.bf16.mxu0 %v6257_v15  ;;  %v6285_v15 = vld [vmem:[#allocation7 + $0x200] ss:$16 sps:$4 sm:$0xff]  }
 0xd08   :  { %3889 = vmatpush1.bf16.msra.mxu0 %v6255_v16  ;;  %v6287_v16 = vld [vmem:[#allocation7 + $0x204] ss:$16 sps:$4 sm:$0xff]  }
 0xd09   :  { %3890 = vmatprep.subr.bf16.mxu0 %v6260_v17  ;;  %v6288_v17 = vld [vmem:[#allocation7 + $0x208] ss:$16 sps:$4 sm:$0xff]   ;;  %4366 = vmatprep.subr.bf16.mxu1 %v6287_v16  ;;  %v6353_v16 = vld [vmem:[#allocation7 + $0x364] ss:$16 sps:$4 sm:$0xff]  }
 0xd0a   :  { %4367 = vmatpush1.bf16.msra.mxu1 %v6285_v15  ;;  %v6348_v15 = vld [vmem:[#allocation7 + $0x348] ss:$16 sps:$4 sm:$0xff]  }
 0xd0c   :  { %3891 = vmatpush1.bf16.msra.mxu0 %v6258_v58  ;;  %v6293_v58 = vld [vmem:[#allocation7 + $0x224] ss:$16 sps:$4 sm:$0xff]  }
 0xd0d   :  { %3892 = vmatprep.subr.bf16.mxu0 %v6263_v18  ;;  %v6296_v18 = vld [vmem:[#allocation7 + $0x22c] ss:$16 sps:$4 sm:$0xff]   ;;  %4368 = vmatprep.subr.bf16.mxu1 %v6293_v58  ;;  %v6354_v58 = vld [vmem:[#allocation7 + $0x368] ss:$16 sps:$4 sm:$0xff]  }
 0xd10   :  { %3893 = vmatpush1.bf16.msra.mxu0 %v6261_v19  ;;  %v6299_v19 = vld [vmem:[#allocation7 + $0x244] ss:$16 sps:$4 sm:$0xff]  }
 0xd11   :  { %3894 = vmatprep.subr.bf16.mxu0 %v6266_v20  ;;  %v6302_v20 = vld [vmem:[#allocation7 + $0x24c] ss:$16 sps:$4 sm:$0xff]  }
 0xd14   :  { %3895 = vmatpush1.bf16.msra.mxu0 %v6264_v23  ;;  %v6297_v23 = vld [vmem:[#allocation7 + $0x240] ss:$16 sps:$4 sm:$0xff]  }
 0xd15   :  { %3896 = vmatprep.subr.bf16.mxu0 %v6269_v60  ;;  %v6300_v60 = vld [vmem:[#allocation7 + $0x248] ss:$16 sps:$4 sm:$0xff]  }
 0xd18   :  { %3897 = vmatpush1.bf16.msra.mxu0 %v6267_v26  ;;  %v6305_v26 = vld [vmem:[#allocation7 + $0x264] ss:$16 sps:$4 sm:$0xff]  }
 0xd19   :  { %3898 = vmatprep.subr.bf16.mxu0 %v6272_v27  ;;  %v6308_v27 = vld [vmem:[#allocation7 + $0x26c] ss:$16 sps:$4 sm:$0xff]  }
 0xd1c   :  { %3899 = vmatpush1.bf16.msra.mxu0 %v6270_v28  ;;  %v6303_v28 = vld [vmem:[#allocation7 + $0x260] ss:$16 sps:$4 sm:$0xff]  }
 0xd1d   :  { %3900 = vmatprep.subr.bf16.mxu0 %v6275_v29  ;;  %v6306_v29 = vld [vmem:[#allocation7 + $0x268] ss:$16 sps:$4 sm:$0xff]  }
 0xd20   :  { %3901 = vmatpush1.bf16.msra.mxu0 %v6273_v56  ;;  %v6311_v56 = vld [vmem:[#allocation7 + $0x284] ss:$16 sps:$4 sm:$0xff]  }
 0xd21   :  { %3902 = vmatprep.subr.bf16.mxu0 %v6278_v30  ;;  %v6314_v30 = vld [vmem:[#allocation7 + $0x28c] ss:$16 sps:$4 sm:$0xff]  }
 0xd24   :  { %3903 = vmatpush1.bf16.msra.mxu0 %v6276_v31  ;;  %v6309_v31 = vld [vmem:[#allocation7 + $0x280] ss:$16 sps:$4 sm:$0xff]  }
 0xd25   :  { %3904 = vmatprep.subr.bf16.mxu0 %v6281_v33  ;;  %v6317_v33 = vld [vmem:[#allocation7 + $0x2a4] ss:$16 sps:$4 sm:$0xff]  }
 0xd28   :  { %3905 = vmatpush1.bf16.msra.mxu0 %v6279_v32  ;;  %v6312_v32 = vld [vmem:[#allocation7 + $0x288] ss:$16 sps:$4 sm:$0xff]  }
 0xd29   :  { %3906 = vmatprep.subr.bf16.mxu0 %v6284_v34  ;;  %v6320_v34 = vld [vmem:[#allocation7 + $0x2ac] ss:$16 sps:$4 sm:$0xff]  }
 0xd2c   :  { %3907 = vmatpush1.bf16.msra.mxu0 %v6282_v36  ;;  %v6315_v36 = vld [vmem:[#allocation7 + $0x2a0] ss:$16 sps:$4 sm:$0xff]  }
 0xdba   :  { %v3529_v40 = vpop.f32.mrb[48].mxu0 }
 0xdbb   :  { %v5660_v48 = vpop.f32.mrb[49].mxu0  ;;  %v3575_v46 = vpop.f32.mrb[40].mxu1 }
 0xdbc   :  { %v3532_v41 = vpop.f32.mrb[50].mxu0  ;;  %v5666_v42 = vpop.f32.mrb[41].mxu1  ;;  %v6323_v48 = vld [vmem:[#allocation7 + $0x2c4] ss:$16 sps:$4 sm:$0xff]  }
 0xdbd   :  { %v5661_v49 = vpop.f32.mrb[51].mxu0  ;;  %v3578_v50 = vpop.f32.mrb[42].mxu1  ;;  %v6321_v41 = vld [vmem:[#allocation7 + $0x2c0] ss:$16 sps:$4 sm:$0xff]   ;;  %v6324_v42 = vld [vmem:[#allocation7 + $0x2c8] ss:$16 sps:$4 sm:$0xff]  }
 0xdbe   :  { %v5667_v51 = vpop.f32.mrb[43].mxu1  ;;  %v6329_v49 = vld [vmem:[#allocation7 + $0x2e4] ss:$16 sps:$4 sm:$0xff]   ;;  %v6332_v50 = vld [vmem:[#allocation7 + $0x2ec] ss:$16 sps:$4 sm:$0xff]  }
 0xdbf   :  { %v6327_v51 = vld [vmem:[#allocation7 + $0x2e0] ss:$16 sps:$4 sm:$0xff]  }
 0xdc2   :  { %v3621_v62 = vpop.f32.mrb[52].mxu0 }
 0xdc3   :  { %v3673_v61 = vpack.c.bf16 %v3621_v62, %v3529_v40  ;;  %v5672_v4 = vpop.f32.mrb[53].mxu0  ;;  %v3667_v52 = vpop.f32.mrb[44].mxu1  ;;  %v6318_v40 = vld [vmem:[#allocation7 + $0x2a8] ss:$16 sps:$4 sm:$0xff]  }
 0xdc4   :  { %v3674_v53 = vpack.c.bf16 %v3667_v52, %v3575_v46  ;;  %v3624_v54 = vpop.f32.mrb[54].mxu0  ;;  %v5678_v2 = vpop.f32.mrb[45].mxu1  ;;  %v6326_v46 = vld [vmem:[#allocation7 + $0x2cc] ss:$16 sps:$4 sm:$0xff]   ;;  %v6330_v62 = vld [vmem:[#allocation7 + $0x2e8] ss:$16 sps:$4 sm:$0xff]  }
 0xdc5   :  { %v5673_v55 = vpop.f32.mrb[55].mxu0  ;;  %v3670_v63 = vpop.f32.mrb[46].mxu1  ;;  %v6338_v4 = vld [vmem:[#allocation7 + $0x30c] ss:$16 sps:$4 sm:$0xff]   ;;  %v6333_v52 = vld [vmem:[#allocation7 + $0x300] ss:$16 sps:$4 sm:$0xff]  }
 0xdc6   :  { %v5679_v24 = vpop.f32.mrb[47].mxu1  ;;  %3908 = vmatprep.mubr.bf16.mxu0 %v3674_v53  ;;  %v6336_v53 = vld [vmem:[#allocation7 + $0x308] ss:$16 sps:$4 sm:$0xff]   ;;  %v6341_v54 = vld [vmem:[#allocation7 + $0x324] ss:$16 sps:$4 sm:$0xff]  }
 0xdc7   :  { %3909 = vmatmul.mubr.bf16.vlgmr.msra.gmra.mrb[56].mxu0 %v3673_v61  ;;  %v6335_v61 = vld [vmem:[#allocation7 + $0x304] ss:$16 sps:$4 sm:$0xff]   ;;  %v6344_v2 = vld [vmem:[#allocation7 + $0x32c] ss:$16 sps:$4 sm:$0xff]   ;;  %v6339_v55 = vld [vmem:[#allocation7 + $0x320] ss:$16 sps:$4 sm:$0xff]  }
 0xdc8   :  { %v6342_v63 = vld [vmem:[#allocation7 + $0x328] ss:$16 sps:$4 sm:$0xff]  }
 0xe9a   :  { %v3910_v1 = vpop.f32.mrb[56].mxu0 }
 0xe9b   :  { %v3911_v9 = vadd.f32 %v3910_v1, %v3711_v3  ;;  %v3912_v6 = vpop.f32.mrb[57].mxu0 }
 0xe9c   :  { %v3913_v10 = vadd.f32 %v3912_v6, %v3715_v0  ;;  %v3914_v8 = vpop.f32.mrb[58].mxu0 }
 0xe9d   :  { %v7107_v12 = vadd.f32 %v3911_v9, %v7020_v37  ;;  %v3915_v38 = vadd.f32 %v3914_v8, %v3711_v3  ;;  %v3916_v7 = vpop.f32.mrb[59].mxu0 }
 0xe9e   :  { %v7110_v11 = vadd.f32 %v3913_v10, %v7016_v45  ;;  %v3917_v57 = vadd.f32 %v3916_v7, %v3715_v0  ;;  %v6290_v45 = vld [vmem:[#allocation7 + $0x20c] ss:$16 sps:$4 sm:$0xff]  }
 0xe9f   :  { %v7113_v13 = vadd.f32 %v3915_v38, %v7022_v39  ;;  %4409 = vmatprep.subr.bf16.mxu0 %v6290_v45  ;;  %v6291_v39 = vld [vmem:[#allocation7 + $0x220] ss:$16 sps:$4 sm:$0xff]  }
 0xea0   :  { %v7116_v14 = vadd.f32 %v3917_v57, %v7018_v47  ;;  %v3923_v59 = vadd.f32 %v7110_v11, %v7107_v12  ;;  %4410 = vmatpush1.bf16.msra.mxu0 %v6288_v17  ;;  %v6294_v47 = vld [vmem:[#allocation7 + $0x228] ss:$16 sps:$4 sm:$0xff]   ;;  %4369 = vmatpush1.bf16.msra.mxu1 %v6291_v39  ;;  %v6356_v17 = vld [vmem:[#allocation7 + $0x36c] ss:$16 sps:$4 sm:$0xff]   ;;  %v6351_v45 = vld [vmem:[#allocation7 + $0x360] ss:$16 sps:$4 sm:$0xff]  }
 0xea1   :  { %4411 = vmatprep.subr.bf16.mxu0 %v6296_v18  ;;  %4370 = vmatprep.subr.bf16.mxu1 %v6299_v19  ;;  %v6359_v18 = vld [vmem:[#allocation7 + $0x384] ss:$16 sps:$4 sm:$0xff]   ;;  %v6362_v39 = vld [vmem:[#allocation7 + $0x38c] ss:$16 sps:$4 sm:$0xff]   ;;  %v6360_v19 = vld [vmem:[#allocation7 + $0x388] ss:$16 sps:$4 sm:$0xff]  }
 0xea2   :  { %3924 = vadd.xlane.f32.xlu0 %v3923_v59  ;;  %v3926_v37 = vadd.f32 %v7116_v14, %v7113_v13 }
 0xea4   :  { %3927 = vadd.xlane.f32.xlu1 %v3926_v37  ;;  %4412 = vmatpush1.bf16.msra.mxu0 %v6294_v47  ;;  %v6350_v37 = vld [vmem:[#allocation7 + $0x34c] ss:$16 sps:$4 sm:$0xff]   ;;  %v6357_v47 = vld [vmem:[#allocation7 + $0x380] ss:$16 sps:$4 sm:$0xff]  }
 0xea5   :  { %4413 = vmatprep.subr.bf16.mxu0 %v6302_v20  ;;  %4371 = vmatpush1.bf16.msra.mxu1 %v6297_v23  ;;  %v6365_v20 = vld [vmem:[#allocation7 + $0x3a4] ss:$16 sps:$4 sm:$0xff]   ;;  %v6368_v23 = vld [vmem:[#allocation7 + $0x3ac] ss:$16 sps:$4 sm:$0xff]  }
 0xea6   :  { %4372 = vmatprep.subr.bf16.mxu1 %v6305_v26  ;;  %v6366_v26 = vld [vmem:[#allocation7 + $0x3a8] ss:$16 sps:$4 sm:$0xff]  }
 0xea8   :  { %4414 = vmatpush1.bf16.msra.mxu0 %v6300_v60  ;;  %v6363_v60 = vld [vmem:[#allocation7 + $0x3a0] ss:$16 sps:$4 sm:$0xff]  }
 0xea9   :  { %4415 = vmatprep.subr.bf16.mxu0 %v6308_v27  ;;  %4373 = vmatpush1.bf16.msra.mxu1 %v6303_v28  ;;  %v6369_v27 = vld [vmem:[#allocation7 + $0x3c0] ss:$16 sps:$4 sm:$0xff]   ;;  %v6371_v28 = vld [vmem:[#allocation7 + $0x3c4] ss:$16 sps:$4 sm:$0xff]  }
 0xeaa   :  { %4374 = vmatprep.subr.bf16.mxu1 %v6311_v56  ;;  %v6374_v56 = vld [vmem:[#allocation7 + $0x3cc] ss:$16 sps:$4 sm:$0xff]  }
 0xeac   :  { %4416 = vmatpush1.bf16.msra.mxu0 %v6306_v29  ;;  %v6372_v29 = vld [vmem:[#allocation7 + $0x3c8] ss:$16 sps:$4 sm:$0xff]  }
 0xead   :  { %4417 = vmatprep.subr.bf16.mxu0 %v6314_v30  ;;  %4375 = vmatpush1.bf16.msra.mxu1 %v6309_v31  ;;  %v6377_v30 = vld [vmem:[#allocation7 + $0x3e4] ss:$16 sps:$4 sm:$0xff]   ;;  %v6380_v31 = vld [vmem:[#allocation7 + $0x3ec] ss:$16 sps:$4 sm:$0xff]  }
 0xeae   :  { %4376 = vmatprep.subr.bf16.mxu1 %v6317_v33  ;;  %v6378_v33 = vld [vmem:[#allocation7 + $0x3e8] ss:$16 sps:$4 sm:$0xff]  }
 0xeb0   :  { %4418 = vmatpush1.bf16.msra.mxu0 %v6312_v32  ;;  %v6375_v32 = vld [vmem:[#allocation7 + $0x3e0] ss:$16 sps:$4 sm:$0xff]  }
 0xeb1   :  { %4419 = vmatprep.subr.bf16.mxu0 %v6320_v34  ;;  %4377 = vmatpush1.bf16.msra.mxu1 %v6315_v36  ;;  %v6383_v34 = vld [vmem:[#allocation8 + $0x204] ss:$8 sps:$4 sm:$0xff]  }
 0xeb2   :  { %4378 = vmatprep.subr.bf16.mxu1 %v6323_v48 }
 0xeb4   :  { %4420 = vmatpush1.bf16.msra.mxu0 %v6318_v40 }
 0xeb5   :  { %4421 = vmatprep.subr.bf16.mxu0 %v6326_v46  ;;  %4379 = vmatpush1.bf16.msra.mxu1 %v6321_v41 }
 0xeb6   :  { %4380 = vmatprep.subr.bf16.mxu1 %v6329_v49  ;;  %v3962_v49 = vrot.slane %v7100_v5, %v6920_v43 }
 0xeb8   :  { %4422 = vmatpush1.bf16.msra.mxu0 %v6324_v42 }
 0xeb9   :  { %4423 = vmatprep.subr.bf16.mxu0 %v6332_v50  ;;  %4381 = vmatpush1.bf16.msra.mxu1 %v6327_v51  ;;  %v3958_v50 = vrot.slane %v7095_v25, %v6920_v43 }
 0xeba   :  { %4382 = vmatprep.subr.bf16.mxu1 %v6335_v61 }
 0xebc   :  { %4424 = vmatpush1.bf16.msra.mxu0 %v6330_v62 }
 0xebd   :  { %4425 = vmatprep.subr.bf16.mxu0 %v6338_v4  ;;  %4383 = vmatpush1.bf16.msra.mxu1 %v6333_v52  ;;  %v3974_v52 = vrot.slane %v7100_v5, %v6923_v44 }
 0xebe   :  { %4384 = vmatprep.subr.bf16.mxu1 %v6341_v54 }
 0xec0   :  { %4426 = vmatpush1.bf16.msra.mxu0 %v6336_v53  ;;  %v3970_v53 = vrot.slane %v7095_v25, %v6923_v44 }
 0xec1   :  { %4427 = vmatprep.subr.bf16.mxu0 %v6344_v2  ;;  %4385 = vmatpush1.bf16.msra.mxu1 %v6339_v55 }
 0xec4   :  { %4428 = vmatpush1.bf16.msra.mxu0 %v6342_v63 }
 0xec5   :  { %4429 = vmatprep.subr.bf16.mxu0 %v6350_v37  ;;  %v6398_v37 = vld [vmem:[#allocation8 + $0x254] ss:$8 sps:$4 sm:$0xff]  }
 0xec8   :  { %4430 = vmatpush1.bf16.msra.mxu0 %v6348_v15  ;;  %v6401_v15 = vld [vmem:[#allocation8 + $0x264] ss:$8 sps:$4 sm:$0xff]  }
 0xec9   :  { %4431 = vmatprep.subr.bf16.mxu0 %v6356_v17  ;;  %v6404_v17 = vld [vmem:[#allocation8 + $0x274] ss:$8 sps:$4 sm:$0xff]  }
 0xecc   :  { %4432 = vmatpush1.bf16.msra.mxu0 %v6354_v58  ;;  %v6407_v58 = vld [vmem:[#allocation8 + $0x284] ss:$8 sps:$4 sm:$0xff]  }
 0xecd   :  { %4433 = vmatprep.subr.bf16.mxu0 %v6362_v39  ;;  %v6410_v39 = vld [vmem:[#allocation8 + $0x294] ss:$8 sps:$4 sm:$0xff]  }
 0xed0   :  { %4434 = vmatpush1.bf16.msra.mxu0 %v6360_v19  ;;  %v6413_v19 = vld [vmem:[#allocation8 + $0x2a4] ss:$8 sps:$4 sm:$0xff]  }
 0xed1   :  { %4435 = vmatprep.subr.bf16.mxu0 %v6368_v23  ;;  %v6416_v23 = vld [vmem:[#allocation8 + $0x2b4] ss:$8 sps:$4 sm:$0xff]  }
 0xed4   :  { %4436 = vmatpush1.bf16.msra.mxu0 %v6366_v26  ;;  %v6419_v26 = vld [vmem:[#allocation8 + $0x2c4] ss:$8 sps:$4 sm:$0xff]  }
 0xed5   :  { %4437 = vmatprep.subr.bf16.mxu0 %v6374_v56  ;;  %v6425_v56 = vld [vmem:[#allocation8 + $0x2e4] ss:$8 sps:$4 sm:$0xff]  }
 0xed8   :  { %4438 = vmatpush1.bf16.msra.mxu0 %v6372_v29  ;;  %v6420_v29 = vld [vmem:[#allocation8 + $0x2d0] ss:$8 sps:$4 sm:$0xff]  }
 0xed9   :  { %4439 = vmatprep.subr.bf16.mxu0 %v6380_v31  ;;  %v6428_v31 = vld [vmem:[#allocation8 + $0x2f4] ss:$8 sps:$4 sm:$0xff]  }
 0xedc   :  { %4440 = vmatpush1.bf16.msra.mxu0 %v6378_v33  ;;  %v6431_v33 = vld [vmem:[#allocation8 + $0x304] ss:$8 sps:$4 sm:$0xff]  }
 0xf2f   :  { %v3925_v24 = vpop.xlane.xlu0 %3924 }
 0xf30   :  { %v3929_v3 = vmul.f32 0.00390625, %v3925_v24 }
 0xf31   :  { %v3928_v0 = vpop.xlane.xlu1 %3927 }
 0xf32   :  { %v7123_v1 = vsub.f32 %v7107_v12, %v3929_v3  ;;  %v7126_v9 = vsub.f32 %v7110_v11, %v3929_v3  ;;  %v3930_v6 = vmul.f32 0.00390625, %v3928_v0 }
 0xf34   :  { %v7129_v10 = vsub.f32 %v7113_v13, %v3930_v6  ;;  %v7132_v8 = vsub.f32 %v7116_v14, %v3930_v6  ;;  %v3935_v38 = vmul.f32 %v7123_v1, %v7123_v1  ;;  %v3936_v7 = vmul.f32 %v7126_v9, %v7126_v9  ;;  %v6347_v13 = vld [vmem:[#allocation7 + $0x344] ss:$16 sps:$4 sm:$0xff]   ;;  %v6345_v14 = vld [vmem:[#allocation7 + $0x340] ss:$16 sps:$4 sm:$0xff]  }
 0xf35   :  { %4386 = vmatprep.subr.bf16.mxu1 %v6347_v13  ;;  %v6393_v13 = vld [vmem:[#allocation8 + $0x240] ss:$8 sps:$4 sm:$0xff]  }
 0xf36   :  { %v3939_v57 = vadd.f32 %v3936_v7, %v3935_v38  ;;  %v3937_v12 = vmul.f32 %v7129_v10, %v7129_v10  ;;  %v3938_v11 = vmul.f32 %v7132_v8, %v7132_v8  ;;  %4387 = vmatpush1.bf16.msra.mxu1 %v6345_v14  ;;  %v6384_v38 = vld [vmem:[#allocation8 + $0x210] ss:$8 sps:$4 sm:$0xff]   ;;  %v6389_v7 = vld [vmem:[#allocation8 + $0x224] ss:$8 sps:$4 sm:$0xff]  }
 0xf37   :  { %4388 = vmatprep.subr.bf16.mxu1 %v6353_v16  ;;  %v6396_v14 = vld [vmem:[#allocation8 + $0x250] ss:$8 sps:$4 sm:$0xff]   ;;  %v6399_v16 = vld [vmem:[#allocation8 + $0x260] ss:$8 sps:$4 sm:$0xff]  }
 0xf38   :  { %3940 = vadd.xlane.f32.xlu0 %v3939_v57  ;;  %v3942_v59 = vadd.f32 %v3938_v11, %v3937_v12  ;;  %v6387_v57 = vld [vmem:[#allocation8 + $0x220] ss:$8 sps:$4 sm:$0xff]   ;;  %v6392_v12 = vld [vmem:[#allocation8 + $0x234] ss:$8 sps:$4 sm:$0xff]   ;;  %v6390_v11 = vld [vmem:[#allocation8 + $0x230] ss:$8 sps:$4 sm:$0xff]  }
 0xf3a   :  { %3943 = vadd.xlane.f32.xlu1 %v3942_v59  ;;  %4389 = vmatpush1.bf16.msra.mxu1 %v6351_v45  ;;  %v6395_v59 = vld [vmem:[#allocation8 + $0x244] ss:$8 sps:$4 sm:$0xff]   ;;  %v6402_v45 = vld [vmem:[#allocation8 + $0x270] ss:$8 sps:$4 sm:$0xff]  }
 0xf3b   :  { %4390 = vmatprep.subr.bf16.mxu1 %v6359_v18  ;;  %v6405_v18 = vld [vmem:[#allocation8 + $0x280] ss:$8 sps:$4 sm:$0xff]  }
 0xf3e   :  { %4391 = vmatpush1.bf16.msra.mxu1 %v6357_v47  ;;  %v6408_v47 = vld [vmem:[#allocation8 + $0x290] ss:$8 sps:$4 sm:$0xff]  }
 0xf3f   :  { %4392 = vmatprep.subr.bf16.mxu1 %v6365_v20  ;;  %v6411_v20 = vld [vmem:[#allocation8 + $0x2a0] ss:$8 sps:$4 sm:$0xff]  }
 0xf42   :  { %4393 = vmatpush1.bf16.msra.mxu1 %v6363_v60  ;;  %v6414_v60 = vld [vmem:[#allocation8 + $0x2b0] ss:$8 sps:$4 sm:$0xff]  }
 0xf43   :  { %4394 = vmatprep.subr.bf16.mxu1 %v6371_v28  ;;  %v6422_v28 = vld [vmem:[#allocation8 + $0x2d4] ss:$8 sps:$4 sm:$0xff]  }
 0xf46   :  { %4395 = vmatpush1.bf16.msra.mxu1 %v6369_v27  ;;  %v6417_v27 = vld [vmem:[#allocation8 + $0x2c0] ss:$8 sps:$4 sm:$0xff]  }
 0xf47   :  { %4396 = vmatprep.subr.bf16.mxu1 %v6377_v30  ;;  %v6423_v30 = vld [vmem:[#allocation8 + $0x2e0] ss:$8 sps:$4 sm:$0xff]  }
 0xf4a   :  { %4397 = vmatpush1.bf16.msra.mxu1 %v6375_v32  ;;  %v6426_v32 = vld [vmem:[#allocation8 + $0x2f0] ss:$8 sps:$4 sm:$0xff]  }
 0xf4b   :  { %4857 = vmatprep.subr.bf16.mxu1 %v6383_v34 }
 0xfc5   :  { %v3941_v36 = vpop.xlane.xlu0 %3940 }
 0xfc6   :  { %v3945_v40 = vmul.f32 0.00390625, %v3941_v36 }
 0xfc7   :  { %v3944_v48 = vpop.xlane.xlu1 %3943 }
 0xfc8   :  { %v3947_v46 = vadd.f32 1e-05, %v3945_v40  ;;  %v3946_v41 = vmul.f32 0.00390625, %v3944_v48 }
 0xfca   :  { %6517 = vrsqrt.f32 %v3947_v46  ;;  %v3948_v42 = vadd.f32 1e-05, %v3946_v41 }
 0xfcc   :  { %6519 = vrsqrt.f32 %v3948_v42 }
 0xfd4   :  { %v6518_v51 = vpop.eup %6517 }
 0xfd5   :  { %v3951_v62 = vmul.f32 %v6518_v51, %v7123_v1  ;;  %v3952_v61 = vmul.f32 %v6518_v51, %v7126_v9 }
 0xfd6   :  { %v6520_v4 = vpop.eup %6519 }
 0xfd7   :  { %v3953_v54 = vmul.f32 %v6520_v4, %v7129_v10  ;;  %v3954_v2 = vmul.f32 %v6520_v4, %v7132_v8  ;;  %v3964_v55 = vmul.f32 %v3962_v49, %v3952_v61  ;;  %v3963_v63 = vmul.f32 %v3958_v50, %v3951_v62  ;;  %v6381_v10 = vld [vmem:[#allocation8 + $0x200] ss:$8 sps:$4 sm:$0xff]   ;;  %v6386_v8 = vld [vmem:[#allocation8 + $0x214] ss:$8 sps:$4 sm:$0xff]  }
 0xfd9   :  { %v3966_v24 = vmul.f32 %v3962_v49, %v3954_v2  ;;  %v3965_v43 = vmul.f32 %v3958_v50, %v3953_v54  ;;  %v7154_v3 = vadd.f32 %v3974_v52, %v3964_v55  ;;  %v7158_v1 = vadd.f32 %v3970_v53, %v3963_v63 }
 0xfdb   :  { %v7156_v0 = vadd.f32 %v3974_v52, %v3966_v24  ;;  %v7160_v9 = vadd.f32 %v3970_v53, %v3965_v43  ;;  %v6429_v43 = vld [vmem:[#allocation8 + $0x300] ss:$8 sps:$4 sm:$0xff]  }
 0xfdd   :  { %v3980_v6 = vpack.c.bf16 %v7156_v0, %v7154_v3  ;;  %v3979_v44 = vpack.c.bf16 %v7160_v9, %v7158_v1 }
 0xfdf   :  { %4398 = vmatprep.mubr.bf16.mxu1 %v3980_v6  ;;  %4441 = vmatprep.mubr.bf16.mxu0 %v3980_v6  ;;  %v6434_v6 = vld [vmem:[#allocation8 + $0x314] ss:$8 sps:$4 sm:$0xff]  }
 0xfe0   :  { %4399 = vmatmul.mubr.bf16.vlgmr.msra.gmra.mrb[48].mxu1 %v3979_v44  ;;  %4442 = vmatmul.mubr.bf16.vlgmr.msra.gmra.mrb[60].mxu0 %v3979_v44  ;;  %v6432_v44 = vld [vmem:[#allocation8 + $0x310] ss:$8 sps:$4 sm:$0xff]  }
 0xfe1   :  { %4858 = vmatpush1.bf16.msra.mxu1 %v6381_v10  ;;  %v6437_v10 = vld [vmem:[#allocation8 + $0x324] ss:$8 sps:$4 sm:$0xff]  }
 0xfe2   :  { %4859 = vmatprep.subr.bf16.mxu1 %v6386_v8  ;;  %v6435_v8 = vld [vmem:[#allocation8 + $0x320] ss:$8 sps:$4 sm:$0xff]  }
 0xfe5   :  { %4860 = vmatpush1.bf16.msra.mxu1 %v6384_v38  ;;  %v6440_v38 = vld [vmem:[#allocation8 + $0x334] ss:$8 sps:$4 sm:$0xff]  }
 0xfe6   :  { %4861 = vmatprep.subr.bf16.mxu1 %v6389_v7  ;;  %v6438_v7 = vld [vmem:[#allocation8 + $0x330] ss:$8 sps:$4 sm:$0xff]  }
 0xfe9   :  { %4862 = vmatpush1.bf16.msra.mxu1 %v6387_v57  ;;  %v6443_v57 = vld [vmem:[#allocation8 + $0x344] ss:$8 sps:$4 sm:$0xff]  }
 0xfea   :  { %4863 = vmatprep.subr.bf16.mxu1 %v6392_v12  ;;  %v6441_v12 = vld [vmem:[#allocation8 + $0x340] ss:$8 sps:$4 sm:$0xff]  }
 0xfed   :  { %4864 = vmatpush1.bf16.msra.mxu1 %v6390_v11  ;;  %v6446_v11 = vld [vmem:[#allocation8 + $0x354] ss:$8 sps:$4 sm:$0xff]  }
 0xfee   :  { %4865 = vmatprep.subr.bf16.mxu1 %v6395_v59  ;;  %v6444_v59 = vld [vmem:[#allocation8 + $0x350] ss:$8 sps:$4 sm:$0xff]  }
 0xff1   :  { %4866 = vmatpush1.bf16.msra.mxu1 %v6393_v13  ;;  %v6449_v13 = vld [vmem:[#allocation8 + $0x364] ss:$8 sps:$4 sm:$0xff]  }
 0xff2   :  { %4867 = vmatprep.subr.bf16.mxu1 %v6398_v37  ;;  %v6447_v37 = vld [vmem:[#allocation8 + $0x360] ss:$8 sps:$4 sm:$0xff]  }
 0xff5   :  { %4868 = vmatpush1.bf16.msra.mxu1 %v6396_v14  ;;  %v6452_v14 = vld [vmem:[#allocation8 + $0x374] ss:$8 sps:$4 sm:$0xff]  }
 0xff6   :  { %4869 = vmatprep.subr.bf16.mxu1 %v6401_v15  ;;  %v6450_v15 = vld [vmem:[#allocation8 + $0x370] ss:$8 sps:$4 sm:$0xff]  }
 0xff9   :  { %4870 = vmatpush1.bf16.msra.mxu1 %v6399_v16  ;;  %v6455_v16 = vld [vmem:[#allocation8 + $0x384] ss:$8 sps:$4 sm:$0xff]  }
 0xffa   :  { %4871 = vmatprep.subr.bf16.mxu1 %v6404_v17  ;;  %v6453_v17 = vld [vmem:[#allocation8 + $0x380] ss:$8 sps:$4 sm:$0xff]  }
 0xffd   :  { %4872 = vmatpush1.bf16.msra.mxu1 %v6402_v45  ;;  %v6458_v45 = vld [vmem:[#allocation8 + $0x394] ss:$8 sps:$4 sm:$0xff]  }
 0xffe   :  { %4873 = vmatprep.subr.bf16.mxu1 %v6407_v58  ;;  %v6456_v58 = vld [vmem:[#allocation8 + $0x390] ss:$8 sps:$4 sm:$0xff]  }
0x1001   :  { %4874 = vmatpush1.bf16.msra.mxu1 %v6405_v18  ;;  %v6461_v18 = vld [vmem:[#allocation8 + $0x3a4] ss:$8 sps:$4 sm:$0xff]  }
0x1002   :  { %4875 = vmatprep.subr.bf16.mxu1 %v6410_v39  ;;  %v6459_v39 = vld [vmem:[#allocation8 + $0x3a0] ss:$8 sps:$4 sm:$0xff]  }
0x1005   :  { %4876 = vmatpush1.bf16.msra.mxu1 %v6408_v47  ;;  %v6464_v47 = vld [vmem:[#allocation8 + $0x3b4] ss:$8 sps:$4 sm:$0xff]  }
0x1006   :  { %4877 = vmatprep.subr.bf16.mxu1 %v6413_v19  ;;  %v6462_v19 = vld [vmem:[#allocation8 + $0x3b0] ss:$8 sps:$4 sm:$0xff]  }
0x1009   :  { %4878 = vmatpush1.bf16.msra.mxu1 %v6411_v20  ;;  %v6467_v20 = vld [vmem:[#allocation8 + $0x3c4] ss:$8 sps:$4 sm:$0xff]  }
0x100a   :  { %4879 = vmatprep.subr.bf16.mxu1 %v6416_v23  ;;  %v6465_v23 = vld [vmem:[#allocation8 + $0x3c0] ss:$8 sps:$4 sm:$0xff]  }
0x100d   :  { %4880 = vmatpush1.bf16.msra.mxu1 %v6414_v60  ;;  %v6470_v60 = vld [vmem:[#allocation8 + $0x3d4] ss:$8 sps:$4 sm:$0xff]  }
0x100e   :  { %4881 = vmatprep.subr.bf16.mxu1 %v6419_v26  ;;  %v6468_v26 = vld [vmem:[#allocation8 + $0x3d0] ss:$8 sps:$4 sm:$0xff]  }
0x1011   :  { %4882 = vmatpush1.bf16.msra.mxu1 %v6417_v27  ;;  %v6473_v27 = vld [vmem:[#allocation8 + $0x3e4] ss:$8 sps:$4 sm:$0xff]  }
0x1012   :  { %4883 = vmatprep.subr.bf16.mxu1 %v6422_v28  ;;  %v6471_v28 = vld [vmem:[#allocation8 + $0x3e0] ss:$8 sps:$4 sm:$0xff]  }
0x1015   :  { %4884 = vmatpush1.bf16.msra.mxu1 %v6420_v29  ;;  %v6476_v29 = vld [vmem:[#allocation8 + $0x3f4] ss:$8 sps:$4 sm:$0xff]  }
0x1016   :  { %4885 = vmatprep.subr.bf16.mxu1 %v6425_v56  ;;  %v6474_v56 = vld [vmem:[#allocation8 + $0x3f0] ss:$8 sps:$4 sm:$0xff]  }
0x1019   :  { %4886 = vmatpush1.bf16.msra.mxu1 %v6423_v30  ;;  %v4532_v30 = vrot.slane %v7095_v25, %v6953_v35 }
0x101a   :  { %4887 = vmatprep.subr.bf16.mxu1 %v6428_v31  ;;  %v4536_v31 = vrot.slane %v7100_v5, %v6953_v35 }
0x101d   :  { %4888 = vmatpush1.bf16.msra.mxu1 %v6426_v32 }
0x101e   :  { %4900 = vmatprep.subr.bf16.mxu1 %v6431_v33 }
0x10b3   :  { %v4400_v34 = vpop.f32.mrb[48].mxu1  ;;  %v4443_v36 = vpop.f32.mrb[60].mxu0 }
0x10b4   :  { %v4402_v40 = vpop.f32.mrb[49].mxu1  ;;  %v4445_v48 = vpop.f32.mrb[61].mxu0  ;;  %v4452_v42 = vmax.f32 %v4400_v34, 0.0  ;;  %v4454_v49 = vmax.f32 %v4443_v36, 0.0 }
0x10b5   :  { %v4404_v46 = vpop.f32.mrb[50].mxu1  ;;  %v4447_v41 = vpop.f32.mrb[62].mxu0  ;;  %v4453_v4 = vmax.f32 %v4402_v40, 0.0  ;;  %v4455_v52 = vmax.f32 %v4445_v48, 0.0 }
0x10b6   :  { %v4456_v50 = vmax.f32 %v4404_v46, 0.0  ;;  %v4458_v51 = vmax.f32 %v4447_v41, 0.0  ;;  %v4406_v62 = vpop.f32.mrb[51].mxu1  ;;  %v4449_v61 = vpop.f32.mrb[63].mxu0 }
0x10b7   :  { %v4457_v53 = vmax.f32 %v4406_v62, 0.0  ;;  %v4459_v54 = vmax.f32 %v4449_v61, 0.0 }
0x10b8   :  { %v4460_v2 = vpack.c.bf16 %v4456_v50, %v4452_v42  ;;  %v7166_v55 = vpack.c.bf16 %v4458_v51, %v4454_v49 }
0x10b9   :  { %v4461_v63 = vpack.c.bf16 %v4457_v53, %v4453_v4  ;;  %v4463_v24 = vpack.c.bf16 %v4459_v54, %v4455_v52 }
0x10bb   :  { %4889 = vmatprep.mubr.bf16.mxu1 %v4461_v63 }
0x10bc   :  { %4890 = vmatmul.mubr.bf16.vlgmr.msra.gmra.mrb[52].mxu1 %v4460_v2 }
0x10bd   :  { %4901 = vmatpush1.bf16.msra.mxu1 %v6429_v43  ;;  %4932 = vmatprep.mubr.bf16.mxu1 %v4463_v24 }
0x10be   :  { %4902 = vmatprep.subr.bf16.mxu1 %v6434_v6 }
0x10c1   :  { %4903 = vmatpush1.bf16.msra.mxu1 %v6432_v44 }
0x10c2   :  { %4904 = vmatprep.subr.bf16.mxu1 %v6437_v10 }
0x10c5   :  { %4905 = vmatpush1.bf16.msra.mxu1 %v6435_v8 }
0x10c6   :  { %4906 = vmatprep.subr.bf16.mxu1 %v6440_v38 }
0x10c9   :  { %4907 = vmatpush1.bf16.msra.mxu1 %v6438_v7 }
0x10ca   :  { %4908 = vmatprep.subr.bf16.mxu1 %v6443_v57  ;;  %v4982_v57 = vrot.slane %v7095_v25, %v6997_v21 }
0x10cd   :  { %4909 = vmatpush1.bf16.msra.mxu1 %v6441_v12  ;;  %v4986_v12 = vrot.slane %v7100_v5, %v6997_v21 }
0x10ce   :  { %4910 = vmatprep.subr.bf16.mxu1 %v6446_v11 }
0x10d1   :  { %4911 = vmatpush1.bf16.msra.mxu1 %v6444_v59 }
0x10d2   :  { %4912 = vmatprep.subr.bf16.mxu1 %v6449_v13 }
0x10d5   :  { %4913 = vmatpush1.bf16.msra.mxu1 %v6447_v37  ;;  %v4994_v37 = vrot.slane %v7095_v25, %v7000_v22 }
0x10d6   :  { %4914 = vmatprep.subr.bf16.mxu1 %v6452_v14  ;;  %v4998_v14 = vrot.slane %v7100_v5, %v7000_v22 }
0x10d9   :  { %4915 = vmatpush1.bf16.msra.mxu1 %v6450_v15 }
0x10da   :  { %4916 = vmatprep.subr.bf16.mxu1 %v6455_v16 }
0x10dd   :  { %4917 = vmatpush1.bf16.msra.mxu1 %v6453_v17 }
0x10de   :  { %4918 = vmatprep.subr.bf16.mxu1 %v6458_v45 }
0x10e1   :  { %4919 = vmatpush1.bf16.msra.mxu1 %v6456_v58 }
0x10e2   :  { %4920 = vmatprep.subr.bf16.mxu1 %v6461_v18 }
0x10e5   :  { %4921 = vmatpush1.bf16.msra.mxu1 %v6459_v39 }
0x10e6   :  { %4922 = vmatprep.subr.bf16.mxu1 %v6464_v47 }
0x10e9   :  { %4923 = vmatpush1.bf16.msra.mxu1 %v6462_v19 }
0x10ea   :  { %4924 = vmatprep.subr.bf16.mxu1 %v6467_v20 }
0x10ed   :  { %4925 = vmatpush1.bf16.msra.mxu1 %v6465_v23 }
0x10ee   :  { %4926 = vmatprep.subr.bf16.mxu1 %v6470_v60 }
0x10f1   :  { %4927 = vmatpush1.bf16.msra.mxu1 %v6468_v26 }
0x10f2   :  { %4928 = vmatprep.subr.bf16.mxu1 %v6473_v27 }
0x10f5   :  { %4929 = vmatpush1.bf16.msra.mxu1 %v6471_v28 }
0x10f6   :  { %4930 = vmatprep.subr.bf16.mxu1 %v6476_v29 }
0x10f9   :  { %4931 = vmatpush1.bf16.msra.mxu1 %v6474_v56 }
0x10fc   :  { %4933 = vmatmul.mubr.bf16.vlgmr.msra.gmra.mrb[52].mxu1 %v7166_v55 }
0x11cf   :  { %v4934_v32 = vpop.f32.mrb[52].mxu1 }
0x11d0   :  { %v5684_v33 = vadd.f32 %v4934_v32, %v4532_v30  ;;  %v4936_v34 = vpop.f32.mrb[53].mxu1 }
0x11d1   :  { %v5685_v36 = vadd.f32 %v4936_v34, %v4536_v31  ;;  %v4938_v40 = vpop.f32.mrb[54].mxu1 }
0x11d2   :  { %v4943_v48 = vadd.f32 %v5684_v33, %v7158_v1  ;;  %v5686_v46 = vadd.f32 %v4938_v40, %v4532_v30  ;;  %v4940_v41 = vpop.f32.mrb[55].mxu1 }
0x11d3   :  { %v4944_v42 = vadd.f32 %v5685_v36, %v7154_v3  ;;  %v5687_v49 = vadd.f32 %v4940_v41, %v4536_v31 }
0x11d4   :  { %v4945_v50 = vadd.f32 %v5686_v46, %v7160_v9 }
0x11d5   :  { %v4946_v51 = vadd.f32 %v5687_v49, %v7156_v0  ;;  %v4947_v62 = vadd.f32 %v4944_v42, %v4943_v48 }
0x11d7   :  { %4948 = vadd.xlane.f32.xlu0 %v4947_v62  ;;  %v4950_v61 = vadd.f32 %v4946_v51, %v4945_v50 }
0x11d9   :  { %4951 = vadd.xlane.f32.xlu1 %v4950_v61 }
0x1264   :  { %v4949_v35 = vpop.xlane.xlu0 %4948 }
0x1265   :  { %v4953_v4 = vmul.f32 0.00390625, %v4949_v35 }
0x1266   :  { %v4952_v52 = vpop.xlane.xlu1 %4951 }
0x1267   :  { %v4955_v53 = vsub.f32 %v4943_v48, %v4953_v4  ;;  %v4956_v54 = vsub.f32 %v4944_v42, %v4953_v4  ;;  %v4954_v2 = vmul.f32 0.00390625, %v4952_v52 }
0x1269   :  { %v4957_v1 = vsub.f32 %v4945_v50, %v4954_v2  ;;  %v4958_v55 = vsub.f32 %v4946_v51, %v4954_v2  ;;  %v4959_v63 = vmul.f32 %v4955_v53, %v4955_v53  ;;  %v4960_v24 = vmul.f32 %v4956_v54, %v4956_v54 }
0x126b   :  { %v4963_v3 = vadd.f32 %v4960_v24, %v4959_v63  ;;  %v4961_v43 = vmul.f32 %v4957_v1, %v4957_v1  ;;  %v4962_v6 = vmul.f32 %v4958_v55, %v4958_v55 }
0x126d   :  { %4964 = vadd.xlane.f32.xlu0 %v4963_v3  ;;  %v4966_v9 = vadd.f32 %v4962_v6, %v4961_v43 }
0x126f   :  { %4967 = vadd.xlane.f32.xlu1 %v4966_v9 }
0x12fa   :  { %v4965_v0 = vpop.xlane.xlu0 %4964 }
0x12fb   :  { %v4969_v44 = vmul.f32 0.00390625, %v4965_v0 }
0x12fc   :  { %v4968_v10 = vpop.xlane.xlu1 %4967 }
0x12fd   :  { %v4971_v8 = vadd.f32 1e-05, %v4969_v44  ;;  %v4970_v38 = vmul.f32 0.00390625, %v4968_v10 }
0x12ff   :  { %6521 = vrsqrt.f32 %v4971_v8  ;;  %v4972_v7 = vadd.f32 1e-05, %v4970_v38 }
0x1301   :  { %6523 = vrsqrt.f32 %v4972_v7 }
0x1309   :  { %v6522_v11 = vpop.eup %6521 }
0x130a   :  { %v4975_v59 = vmul.f32 %v6522_v11, %v4955_v53  ;;  %v4976_v13 = vmul.f32 %v6522_v11, %v4956_v54 }
0x130b   :  { %v6524_v15 = vpop.eup %6523 }
0x130c   :  { %v4977_v16 = vmul.f32 %v6524_v15, %v4957_v1  ;;  %v4978_v17 = vmul.f32 %v6524_v15, %v4958_v55  ;;  %v4987_v45 = vmul.f32 %v4982_v57, %v4975_v59  ;;  %v4988_v58 = vmul.f32 %v4986_v12, %v4976_v13 }
0x130e   :  { %v4989_v18 = vmul.f32 %v4982_v57, %v4977_v16  ;;  %v4990_v39 = vmul.f32 %v4986_v12, %v4978_v17  ;;  %v4999_v47 = vadd.f32 %v4994_v37, %v4987_v45  ;;  %v5000_v21 = vadd.f32 %v4998_v14, %v4988_v58 }
0x1310   :  { %v5001_v19 = vadd.f32 %v4994_v37, %v4989_v18  ;;  %v5002_v20 = vadd.f32 %v4998_v14, %v4990_v39  ;;  %5003 = vst [vmem:[#allocation10] sm:$0xff] %v4999_v47  ;;  %5004 = vst [vmem:[#allocation10 + $0x8] sm:$0xff] %v5000_v21 }
0x1312   :  { %5005 = vst [vmem:[#allocation10 + $0x10] sm:$0xff] %v5001_v19  ;;  %5006 = vst [vmem:[#allocation10 + $0x18] sm:$0xff] %v5002_v20 }
0x1313   :  { %6634 = shalt.err (!%p6631_p8)
}
0x1314   :  { %s6635_s27 = scalar_lea.hbm %s7207_s7, 512 }
0x1315   :  { %p6636_p9 = scmp.ne.s32.totalorder %s7207_s7, %s6635_s27  ;;  %p6639_p10 = scmp.lt.u32.totalorder %s6635_s27, %s7207_s7 }
0x1317   :  { %p6641_p11 = pnand %p6639_p10, %p6636_p9 }
0x1319   :  { %6644 = shalt.err (!%p6641_p11)
}
0x131a   :  { %5018 = dma.vmem_to_hbm [thread:$0]  %s5013_s24, 512, %s7207_s7, [#allocation4], %s6660_s2, %s6660_s2, %s6661_s16  }
0x131b   :  { %6651 = dma.done.wait [#allocation4], 512  }
0x131c   :  { %6652 = vsyncadd [#allocation4], 4294966784 }
0x131d   :  { %5022 = vsyncpa [#allocation3], 1 }
0x131e   :  { %5023 = vsyncpa [#allocation6], 1 }
0x131f   :  { %5024 = vsyncpa [#allocation9], 1 }
0x1320   :  { %5025 = vsyncpa [#allocation4], 1 }

</bundles_post_ra>
